<compile_context>
chip_gen: v7x
topology: tpu7x:2x2x1
jax: 0.10.0
libtpu: 0.0.40
codegen_flags: <defaults>
</compile_context>

<pallas_src>
import jax
import jax.numpy as jnp
from jax import lax
from jax.experimental import pallas as pl
from jax.experimental.pallas import tpu as pltpu


def _make_resblock_kernel(H, W, C):
    HW = H * W

    def _conv3x3_fused(v_flat, w_ref, b_ref):
        # v_flat: (C, HW) f32 activations.
        # w_ref : (C, 9C) folded weights, column index = (dy*3 + dx)*C + ci.
        # b_ref : (C, 1) folded bias.
        v = v_flat.reshape(C, H, W)
        # Value-level zero padding (halo of 1) — no scratch ref, no HBM pass.
        zrow = jnp.zeros((C, 1, W), jnp.float32)
        v = jnp.concatenate([zrow, v, zrow], axis=1)           # (C, H+2, W)
        zcol = jnp.zeros((C, H + 2, 1), jnp.float32)
        v = jnp.concatenate([zcol, v, zcol], axis=2)           # (C, H+2, W+2)
        # im2col rows ordered (dy, dx, ci) -> one fused K = 9C matmul on the MXU.
        cols = [v[:, dy:dy + H, dx:dx + W].reshape(C, HW)
                for dy in range(3) for dx in range(3)]
        im = jnp.concatenate(cols, axis=0)                     # (9C, HW)
        out = jnp.dot(w_ref[...], im, preferred_element_type=jnp.float32)
        return out + b_ref[...]                                # (C, HW) lane-dense

    def kernel(x_ref, w1_ref, b1_ref, w2_ref, b2_ref, out_ref):
        x0 = x_ref[0].astype(jnp.float32)                      # (C, HW)
        h = jnp.maximum(_conv3x3_fused(x0, w1_ref, b1_ref), 0.0)
        y = _conv3x3_fused(h, w2_ref, b2_ref) + x0             # residual from original x
        out_ref[0] = jnp.maximum(y, 0.0).astype(out_ref.dtype)

    return kernel


def residual_block_forward(x, params, eps=1e-5):
    """x: (N, C, H, W) float32, matching PyTorch NCHW. Returns (N, C, H, W)."""
    N, C, H, W = x.shape
    HW = H * W
    w1, g1, be1, rm1, rv1, w2, g2, be2, rm2, rv2 = params

    # Fold BatchNorm (eval mode) into a per-output-channel scale (into the weights)
    # and a bias added inside the kernel.  Folding is done in f32.
    s1 = g1 / jnp.sqrt(rv1 + eps)
    b1 = (be1 - rm1 * s1).reshape(C, 1).astype(jnp.float32)
    s2 = g2 / jnp.sqrt(rv2 + eps)
    b2 = (be2 - rm2 * s2).reshape(C, 1).astype(jnp.float32)

    # PyTorch conv weights are OIHW.  Arrange as the im2col weight matrix
    # (C_out, 9*C_in) with column index (dy*3 + dx)*C + ci, matching the kernel.
    w1m = (w1 * s1[:, None, None, None]).transpose(0, 2, 3, 1).reshape(C, 9 * C)
    w2m = (w2 * s2[:, None, None, None]).transpose(0, 2, 3, 1).reshape(C, 9 * C)
    w1m = w1m.astype(jnp.float32)
    w2m = w2m.astype(jnp.float32)

    # Lane-dense NCHW-native view: (N, C, H*W).  Pure reshape — no transpose, no pad,
    # no extra HBM pass in the wrapper.
    x_flat = x.reshape(N, C, HW).astype(jnp.float32)

    # TODO(synk): for large H/W add a spatial grid axis with a 2-row halo (matters for
    # v7x's 64 MiB VMEM); at 16x16x4 one image per grid step is far below any limit.
    # TODO(synk): optionally cast activations/weights to bf16 (keep f32 accumulation) to
    # halve HBM traffic; kept f32 here for exact parity with the PyTorch module.
    out_flat = pl.pallas_call(
        _make_resblock_kernel(H, W, C),
        out_shape=jax.ShapeDtypeStruct((N, C, HW), jnp.float32),
        grid_spec=pltpu.PrefetchScalarGridSpec(
            num_scalar_prefetch=0,
            grid=(N,),
            in_specs=[
                pl.BlockSpec((1, C, HW), lambda n: (n, 0, 0)),
                pl.BlockSpec((C, 9 * C), lambda n: (0, 0)),
                pl.BlockSpec((C, 1), lambda n: (0, 0)),
                pl.BlockSpec((C, 9 * C), lambda n: (0, 0)),
                pl.BlockSpec((C, 1), lambda n: (0, 0)),
            ],
            out_specs=pl.BlockSpec((1, C, HW), lambda n: (n, 0, 0)),
        ),
        compiler_params=pltpu.CompilerParams(
            dimension_semantics=("parallel",),
            vmem_limit_bytes=32 * 1024 * 1024,
        ),
    )(x_flat, w1m, b1, w2m, b2)

    return out_flat.reshape(N, C, H, W)


def _ref_forward(x, params, eps=1e-5):
    """Pure-JAX reference matching PyTorch eval-mode semantics."""
    w1, g1, be1, rm1, rv1, w2, g2, be2, rm2, rv2 = params

    def conv(inp, w):
        return lax.conv_general_dilated(
            inp, w, window_strides=(1, 1), padding=((1, 1), (1, 1)),
            dimension_numbers=("NCHW", "OIHW", "NCHW"))

    def bn(inp, g, b, rm, rv):
        inv = g / jnp.sqrt(rv + eps)
        return inp * inv[None, :, None, None] + (b - rm * inv)[None, :, None, None]

    out = jax.nn.relu(bn(conv(x, w1), g1, be1, rm1, rv1))
    out = bn(conv(out, w2), g2, be2, rm2, rv2)
    return jax.nn.relu(out + x)


if __name__ == "__main__":
    key = jax.random.PRNGKey(0)
    N, C, H, W = 2, 4, 16, 16
    keys = jax.random.split(key, 12)

    x = jax.random.normal(keys[0], (N, C, H, W), jnp.float32)

    # Deterministic synthetic parameters (shapes from ResidualBlock.__init__).
    w1 = jax.random.normal(keys[1], (C, C, 3, 3), jnp.float32) * 0.1   # conv1.weight (OIHW)
    w2 = jax.random.normal(keys[2], (C, C, 3, 3), jnp.float32) * 0.1   # conv2.weight (OIHW)
    g1 = jax.random.uniform(keys[3], (C,), jnp.float32, 0.5, 1.5)      # bn1.weight
    be1 = jax.random.normal(keys[4], (C,), jnp.float32) * 0.1          # bn1.bias
    rm1 = jax.random.normal(keys[5], (C,), jnp.float32) * 0.1          # bn1.running_mean
    rv1 = jax.random.uniform(keys[6], (C,), jnp.float32, 0.5, 1.5)     # bn1.running_var
    g2 = jax.random.uniform(keys[7], (C,), jnp.float32, 0.5, 1.5)      # bn2.weight
    be2 = jax.random.normal(keys[8], (C,), jnp.float32) * 0.1          # bn2.bias
    rm2 = jax.random.normal(keys[9], (C,), jnp.float32) * 0.1          # bn2.running_mean
    rv2 = jax.random.uniform(keys[10], (C,), jnp.float32, 0.5, 1.5)    # bn2.running_var

    params = (w1, g1, be1, rm1, rv1, w2, g2, be2, rm2, rv2)

    out = residual_block_forward(x, params)
    out = jax.block_until_ready(out)

    ref = jax.block_until_ready(_ref_forward(x, params))
    assert out.shape == (N, C, H, W)
    assert jnp.allclose(out, ref, atol=1e-4, rtol=1e-4), \
        f"max abs err {jnp.max(jnp.abs(out - ref))}"

    print("KERNEL_OK")
</pallas_src>

<mosaic_0001>
module attributes {stable_mosaic.version = 11 : i64} {
  func.func @kernel(%arg0: i32, %arg1: memref<1x4x256xf32, #tpu.memory_space<vmem>>, %arg2: memref<4x36xf32, #tpu.memory_space<vmem>>, %arg3: memref<4x1xf32, #tpu.memory_space<vmem>>, %arg4: memref<4x36xf32, #tpu.memory_space<vmem>>, %arg5: memref<4x1xf32, #tpu.memory_space<vmem>>, %arg6: memref<1x4x256xf32, #tpu.memory_space<vmem>>) attributes {dimension_semantics = [#tpu.dimension_semantics<parallel>], iteration_bounds = array<i64: 2>, scalar_prefetch = 0 : i64, scratch_operands = 0 : i64, tpu.core_type = #tpu.core_type<tc>, window_params = [{transform_indices = @transform_0, window_bounds = array<i64: 1, 4, 256>}, {pipeline_mode = #tpu.pipeline_mode<synchronous>, transform_indices = @transform_1, window_bounds = array<i64: 4, 36>}, {pipeline_mode = #tpu.pipeline_mode<synchronous>, transform_indices = @transform_2, window_bounds = array<i64: 4, 1>}, {pipeline_mode = #tpu.pipeline_mode<synchronous>, transform_indices = @transform_3, window_bounds = array<i64: 4, 36>}, {pipeline_mode = #tpu.pipeline_mode<synchronous>, transform_indices = @transform_4, window_bounds = array<i64: 4, 1>}, {transform_indices = @transform_5, window_bounds = array<i64: 1, 4, 256>}]} {
    %c0 = arith.constant 0 : index
    %c0_0 = arith.constant 0 : index
    %c0_1 = arith.constant 0 : index
    %0 = vector.load %arg1[%c0, %c0_0, %c0_1] : memref<1x4x256xf32, #tpu.memory_space<vmem>>, vector<1x4x256xf32>
    %1 = vector.shape_cast %0 : vector<1x4x256xf32> to vector<4x256xf32>
    %2 = vector.shape_cast %1 : vector<4x256xf32> to vector<4x16x16xf32>
    %cst = arith.constant 0.000000e+00 : f32
    %3 = vector.broadcast %cst : f32 to vector<4x1x16xf32>
    %4 = tpu.concatenate %3, %2, %3 in 1 : vector<4x1x16xf32>, vector<4x16x16xf32>, vector<4x1x16xf32> -> vector<4x18x16xf32>
    %cst_2 = arith.constant 0.000000e+00 : f32
    %5 = vector.broadcast %cst_2 : f32 to vector<4x18x1xf32>
    %6 = tpu.concatenate %5, %4, %5 in 2 : vector<4x18x1xf32>, vector<4x18x16xf32>, vector<4x18x1xf32> -> vector<4x18x18xf32>
    %7 = vector.extract_strided_slice %6 {offsets = [0, 0, 0], sizes = [4, 16, 16], strides = [1, 1, 1]} : vector<4x18x18xf32> to vector<4x16x16xf32>
    %8 = vector.shape_cast %7 : vector<4x16x16xf32> to vector<4x256xf32>
    %9 = vector.extract_strided_slice %6 {offsets = [0, 0, 1], sizes = [4, 16, 16], strides = [1, 1, 1]} : vector<4x18x18xf32> to vector<4x16x16xf32>
    %10 = vector.shape_cast %9 : vector<4x16x16xf32> to vector<4x256xf32>
    %11 = vector.extract_strided_slice %6 {offsets = [0, 0, 2], sizes = [4, 16, 16], strides = [1, 1, 1]} : vector<4x18x18xf32> to vector<4x16x16xf32>
    %12 = vector.shape_cast %11 : vector<4x16x16xf32> to vector<4x256xf32>
    %13 = vector.extract_strided_slice %6 {offsets = [0, 1, 0], sizes = [4, 16, 16], strides = [1, 1, 1]} : vector<4x18x18xf32> to vector<4x16x16xf32>
    %14 = vector.shape_cast %13 : vector<4x16x16xf32> to vector<4x256xf32>
    %15 = vector.extract_strided_slice %6 {offsets = [0, 1, 1], sizes = [4, 16, 16], strides = [1, 1, 1]} : vector<4x18x18xf32> to vector<4x16x16xf32>
    %16 = vector.shape_cast %15 : vector<4x16x16xf32> to vector<4x256xf32>
    %17 = vector.extract_strided_slice %6 {offsets = [0, 1, 2], sizes = [4, 16, 16], strides = [1, 1, 1]} : vector<4x18x18xf32> to vector<4x16x16xf32>
    %18 = vector.shape_cast %17 : vector<4x16x16xf32> to vector<4x256xf32>
    %19 = vector.extract_strided_slice %6 {offsets = [0, 2, 0], sizes = [4, 16, 16], strides = [1, 1, 1]} : vector<4x18x18xf32> to vector<4x16x16xf32>
    %20 = vector.shape_cast %19 : vector<4x16x16xf32> to vector<4x256xf32>
    %21 = vector.extract_strided_slice %6 {offsets = [0, 2, 1], sizes = [4, 16, 16], strides = [1, 1, 1]} : vector<4x18x18xf32> to vector<4x16x16xf32>
    %22 = vector.shape_cast %21 : vector<4x16x16xf32> to vector<4x256xf32>
    %23 = vector.extract_strided_slice %6 {offsets = [0, 2, 2], sizes = [4, 16, 16], strides = [1, 1, 1]} : vector<4x18x18xf32> to vector<4x16x16xf32>
    %24 = vector.shape_cast %23 : vector<4x16x16xf32> to vector<4x256xf32>
    %25 = tpu.concatenate %8, %10, %12, %14, %16, %18, %20, %22, %24 in 0 : vector<4x256xf32>, vector<4x256xf32>, vector<4x256xf32>, vector<4x256xf32>, vector<4x256xf32>, vector<4x256xf32>, vector<4x256xf32>, vector<4x256xf32>, vector<4x256xf32> -> vector<36x256xf32>
    %c0_3 = arith.constant 0 : index
    %c0_4 = arith.constant 0 : index
    %26 = vector.load %arg2[%c0_3, %c0_4] : memref<4x36xf32, #tpu.memory_space<vmem>>, vector<4x36xf32>
    %cst_5 = arith.constant dense<0.000000e+00> : vector<4x256xf32>
    %27 = tpu.matmul %26, %25, %cst_5 {dimension_numbers = #tpu.dot_dimension_numbers<[1], [0], [0], [1], [0, 0, 1, 1], [], []>} : vector<4x36xf32>, vector<36x256xf32>, vector<4x256xf32> -> vector<4x256xf32>
    %c0_6 = arith.constant 0 : index
    %c0_7 = arith.constant 0 : index
    %28 = vector.load %arg3[%c0_6, %c0_7] : memref<4x1xf32, #tpu.memory_space<vmem>>, vector<4x1xf32>
    %29 = vector.broadcast %28 : vector<4x1xf32> to vector<4x256xf32>
    %30 = arith.addf %27, %29 : vector<4x256xf32>
    %cst_8 = arith.constant 0.000000e+00 : f32
    %31 = vector.broadcast %cst_8 : f32 to vector<4x256xf32>
    %32 = arith.maximumf %30, %31 : vector<4x256xf32>
    %33 = vector.shape_cast %32 : vector<4x256xf32> to vector<4x16x16xf32>
    %cst_9 = arith.constant 0.000000e+00 : f32
    %34 = vector.broadcast %cst_9 : f32 to vector<4x1x16xf32>
    %35 = tpu.concatenate %34, %33, %34 in 1 : vector<4x1x16xf32>, vector<4x16x16xf32>, vector<4x1x16xf32> -> vector<4x18x16xf32>
    %cst_10 = arith.constant 0.000000e+00 : f32
    %36 = vector.broadcast %cst_10 : f32 to vector<4x18x1xf32>
    %37 = tpu.concatenate %36, %35, %36 in 2 : vector<4x18x1xf32>, vector<4x18x16xf32>, vector<4x18x1xf32> -> vector<4x18x18xf32>
    %38 = vector.extract_strided_slice %37 {offsets = [0, 0, 0], sizes = [4, 16, 16], strides = [1, 1, 1]} : vector<4x18x18xf32> to vector<4x16x16xf32>
    %39 = vector.shape_cast %38 : vector<4x16x16xf32> to vector<4x256xf32>
    %40 = vector.extract_strided_slice %37 {offsets = [0, 0, 1], sizes = [4, 16, 16], strides = [1, 1, 1]} : vector<4x18x18xf32> to vector<4x16x16xf32>
    %41 = vector.shape_cast %40 : vector<4x16x16xf32> to vector<4x256xf32>
    %42 = vector.extract_strided_slice %37 {offsets = [0, 0, 2], sizes = [4, 16, 16], strides = [1, 1, 1]} : vector<4x18x18xf32> to vector<4x16x16xf32>
    %43 = vector.shape_cast %42 : vector<4x16x16xf32> to vector<4x256xf32>
    %44 = vector.extract_strided_slice %37 {offsets = [0, 1, 0], sizes = [4, 16, 16], strides = [1, 1, 1]} : vector<4x18x18xf32> to vector<4x16x16xf32>
    %45 = vector.shape_cast %44 : vector<4x16x16xf32> to vector<4x256xf32>
    %46 = vector.extract_strided_slice %37 {offsets = [0, 1, 1], sizes = [4, 16, 16], strides = [1, 1, 1]} : vector<4x18x18xf32> to vector<4x16x16xf32>
    %47 = vector.shape_cast %46 : vector<4x16x16xf32> to vector<4x256xf32>
    %48 = vector.extract_strided_slice %37 {offsets = [0, 1, 2], sizes = [4, 16, 16], strides = [1, 1, 1]} : vector<4x18x18xf32> to vector<4x16x16xf32>
    %49 = vector.shape_cast %48 : vector<4x16x16xf32> to vector<4x256xf32>
    %50 = vector.extract_strided_slice %37 {offsets = [0, 2, 0], sizes = [4, 16, 16], strides = [1, 1, 1]} : vector<4x18x18xf32> to vector<4x16x16xf32>
    %51 = vector.shape_cast %50 : vector<4x16x16xf32> to vector<4x256xf32>
    %52 = vector.extract_strided_slice %37 {offsets = [0, 2, 1], sizes = [4, 16, 16], strides = [1, 1, 1]} : vector<4x18x18xf32> to vector<4x16x16xf32>
    %53 = vector.shape_cast %52 : vector<4x16x16xf32> to vector<4x256xf32>
    %54 = vector.extract_strided_slice %37 {offsets = [0, 2, 2], sizes = [4, 16, 16], strides = [1, 1, 1]} : vector<4x18x18xf32> to vector<4x16x16xf32>
    %55 = vector.shape_cast %54 : vector<4x16x16xf32> to vector<4x256xf32>
    %56 = tpu.concatenate %39, %41, %43, %45, %47, %49, %51, %53, %55 in 0 : vector<4x256xf32>, vector<4x256xf32>, vector<4x256xf32>, vector<4x256xf32>, vector<4x256xf32>, vector<4x256xf32>, vector<4x256xf32>, vector<4x256xf32>, vector<4x256xf32> -> vector<36x256xf32>
    %c0_11 = arith.constant 0 : index
    %c0_12 = arith.constant 0 : index
    %57 = vector.load %arg4[%c0_11, %c0_12] : memref<4x36xf32, #tpu.memory_space<vmem>>, vector<4x36xf32>
    %cst_13 = arith.constant dense<0.000000e+00> : vector<4x256xf32>
    %58 = tpu.matmul %57, %56, %cst_13 {dimension_numbers = #tpu.dot_dimension_numbers<[1], [0], [0], [1], [0, 0, 1, 1], [], []>} : vector<4x36xf32>, vector<36x256xf32>, vector<4x256xf32> -> vector<4x256xf32>
    %c0_14 = arith.constant 0 : index
    %c0_15 = arith.constant 0 : index
    %59 = vector.load %arg5[%c0_14, %c0_15] : memref<4x1xf32, #tpu.memory_space<vmem>>, vector<4x1xf32>
    %60 = vector.broadcast %59 : vector<4x1xf32> to vector<4x256xf32>
    %61 = arith.addf %58, %60 : vector<4x256xf32>
    %62 = arith.addf %61, %1 : vector<4x256xf32>
    %cst_16 = arith.constant 0.000000e+00 : f32
    %63 = vector.broadcast %cst_16 : f32 to vector<4x256xf32>
    %64 = arith.maximumf %62, %63 : vector<4x256xf32>
    %c0_17 = arith.constant 0 : index
    %c0_18 = arith.constant 0 : index
    %c0_19 = arith.constant 0 : index
    %65 = vector.load %arg6[%c0_17, %c0_18, %c0_19] : memref<1x4x256xf32, #tpu.memory_space<vmem>>, vector<1x4x256xf32>
    %66 = vector.shape_cast %65 : vector<1x4x256xf32> to vector<4x256xf32>
    %67 = vector.shape_cast %64 : vector<4x256xf32> to vector<1x4x256xf32>
    tpu.vector_store %arg6[%c0_17, %c0_18, %c0_19], %67 {strides = array<i32>} : memref<1x4x256xf32, #tpu.memory_space<vmem>>, vector<1x4x256xf32>,
    return
  }
  func.func @transform_0(%arg0: i32) -> (i32, i32, i32) {
    %c0_i32 = arith.constant 0 : i32
    %c0_i32_0 = arith.constant 0 : i32
    %c0_i32_1 = arith.constant 0 : i32
    return %arg0, %c0_i32, %c0_i32_0 : i32, i32, i32
  }
  func.func @transform_1(%arg0: i32) -> (i32, i32) {
    %c0_i32 = arith.constant 0 : i32
    %c0_i32_0 = arith.constant 0 : i32
    %c0_i32_1 = arith.constant 0 : i32
    return %c0_i32, %c0_i32_0 : i32, i32
  }
  func.func @transform_2(%arg0: i32) -> (i32, i32) {
    %c0_i32 = arith.constant 0 : i32
    %c0_i32_0 = arith.constant 0 : i32
    %c0_i32_1 = arith.constant 0 : i32
    return %c0_i32, %c0_i32_0 : i32, i32
  }
  func.func @transform_3(%arg0: i32) -> (i32, i32) {
    %c0_i32 = arith.constant 0 : i32
    %c0_i32_0 = arith.constant 0 : i32
    %c0_i32_1 = arith.constant 0 : i32
    return %c0_i32, %c0_i32_0 : i32, i32
  }
  func.func @transform_4(%arg0: i32) -> (i32, i32) {
    %c0_i32 = arith.constant 0 : i32
    %c0_i32_0 = arith.constant 0 : i32
    %c0_i32_1 = arith.constant 0 : i32
    return %c0_i32, %c0_i32_0 : i32, i32
  }
  func.func @transform_5(%arg0: i32) -> (i32, i32, i32) {
    %c0_i32 = arith.constant 0 : i32
    %c0_i32_0 = arith.constant 0 : i32
    %c0_i32_1 = arith.constant 0 : i32
    return %arg0, %c0_i32, %c0_i32_0 : i32, i32, i32
  }
}

</mosaic_0001>

<bundles_post_ra>
// kernel: tpu_custom_call.1
= control target key start
LH: loop header
LB: loop body
LE: loop exit
PB: predicated region body
PF: predicated region fallthrough
CT: control target
= control target key end

     0   :  { %10 = vsyncpa [#allocation3], 0  ;;  %s9453_s0 = inlined_call_operand.hbm [shape: f32[2,4,256], index: 0, kind: input, shape index: {}]   ;;  %s9454_s1 = inlined_call_operand.vmem [shape: f32[4,36], index: 1, kind: input, shape index: {}]   ;;  %s9455_s2 = inlined_call_operand.vmem [shape: f32[4,1], index: 2, kind: input, shape index: {}]   ;;  %s9456_s3 = inlined_call_operand.vmem [shape: f32[4,36], index: 3, kind: input, shape index: {}]   ;;  %s9457_s4 = inlined_call_operand.vmem [shape: f32[4,1], index: 4, kind: input, shape index: {}]   ;;  %s9458_s5 = inlined_call_operand.hbm [shape: f32[2,4,256], index: 5, kind: output, shape index: {}]  }
   0x1   :  { %12 = vsyncpa [#allocation3 + $0x1], 0 }
   0x2   :  { %13 = vsyncpa [#allocation4], 0 }
   0x3   :  { %15 = vsyncpa [#allocation4 + $0x1], 0  ;;  %s6112_s18 = smov 0   ;;  %s6114_s19 = smov 0  }
   0x4   :  { %s6116_s20 = smov 0   ;;  %s6118_s21 = smov 0  }
   0x5 LB: > { %s6133_s22 = sadd.s32 4294967295, %s6064_s21   ;;  %s5302_s23 = sadd.s32 4294967294, %s6064_s21   ;;  %s6064_s21 = sphi %s6118_s21, %s9556_s21   ;;  %s6060_s20 = sphi %s6116_s20, %s9555_s20   ;;  %s6056_s19 = sphi %s6114_s19, %s9554_s19   ;;  %s6052_s18 = sphi %s6112_s18, %s9553_s18  }
   0x6   : > { %s6137_s24 = sadd.s32 1, %s6064_s21   ;;  %s28_s25 = sadd.s32 1, %s6060_s20 }
   0x7   : > { %s25_s26 = ssub.s32 %s6064_s21, %s6137_s24  ;;  %p35_p0 = scmp.ne.s32.totalorder %s6060_s20, %s6056_s19 }
   0x8   : > { %p26_p1 = scmp.eq.s32.totalorder %s25_s26, 0  ;;  %p36_p2 = scmp.eq.s32.totalorder %s6064_s21, 0 }
   0x9   : > { %p41_p3 = scmp.ne.s32.totalorder %s6056_s19, %s6052_s18  ;;  %p42_p4 = scmp.eq.s32.totalorder %s6133_s22, 0 }
   0xa   : > { %s6149_s27 = scalar_select %p26_p1, %s6060_s20, %s28_s25  }
   0xb   : > { %p6151_p5 = por %p36_p2, %p35_p0  ;;  %p6155_p6 = por %p42_p4, %p41_p3 }
   0xc   : > { %p149_p7 = scmp.eq.s32.totalorder %s6133_s22, 1  ;;  %p155_p8 = scmp.eq.s32.totalorder %s5302_s23, 1 }
   0xd   : > { %p5356_p10 = scmp.lt.s32.totalorder %s6064_s21, 2  ;;  %s187_s7 = sand.u32 1, %s6060_s20  }
   0xe   : > { %p6162_p11 = por %p149_p7, %p35_p0  ;;  %p6166_p12 = por %p155_p8, %p41_p3 }
   0xf   : > { %s5326_s8 = sshll.u32 %s6064_s21, 7  ;;  %s5305_s9 = sshll.u32 %s187_s7, 3 }
  0x10   : > { %s9481_s30 = scalar_select %p6162_p11, 1, 0 }
  0x11   : > { %s9482_s6 = scalar_select %p6166_p12, 1, 0 }
  0x12   : > { %s6175_s12 = scalar_lea.hbm %s9453_s0, %s5326_s8  ;;  %s191_s13 = scalar_lea.vmem [#allocation2], %s5305_s9 }
  0x13   : > { %s199_s14 = sshll.u32 %s191_s13, 4  ;;  %p6179_p13 = pnand %p5356_p10, %p6151_p5  ;;  %s6183_s14 = int_to_ptr.vmem [resolvable:$true] %s199_s14 }
  0x14   : > { %s188_s16 = scalar_lea.sflag [#allocation3], %s187_s7  ;;  %s5968_s17 = scalar_lea.hbm %s6175_s12, 128 }
  0x15   : > { %p5969_p2 = scmp.ne.s32.totalorder %s6175_s12, %s5968_s17  ;;  %p5970_p3 = pneg %p6179_p13 }
  0x16   : > { %s5973_s26 = scalar_lea.hbm %s9453_s0, 256  ;;  %p5974_p5 = scmp.lt.u32.totalorder %s6175_s12, %s9453_s0 }
  0x17   : > { %p5971_p4 = pnand %p5970_p3, %p5969_p2  ;;  %p5975_p8 = scmp.lt.u32.totalorder %s5973_s26, %s5968_s17 }
  0x18   : > { %p5977_p9 = scmp.lt.u32.totalorder %s5968_s17, %s6175_s12 }
  0x19   : > { %p5972_p7 = pneg %p5971_p4  ;;  %p5976_p10 = por %p5975_p8, %p5974_p5 }
  0x1b   : > { %p5978_p0 = por %p5977_p9, %p5976_p10 }
  0x1d   : > { %p5979_p1 = pnand %p5978_p0, %p5972_p7 }
  0x1f   : > { %5982 = shalt.err (!%p5979_p1)
}
  0x20   : > { %s5983_s7 = scalar_lea.vmem %s6183_s14, 128  ;;  %s6066_s9 = smov [#allocation2]  }
  0x21   : > { %p5984_p2 = scmp.ne.s32.totalorder %s6183_s14, %s5983_s7  ;;  %s5988_s10 = sshll.u32 %s6066_s9, 4  ;;  %s5989_s10 = int_to_ptr.vmem [resolvable:$false] %s5988_s10 }
  0x22   : > { %s5990_s11 = scalar_lea.vmem %s5989_s10, 256  ;;  %p5991_p11 = scmp.lt.s32.totalorder %s6183_s14, %s5989_s10 }
  0x23   : > { %p5986_p4 = pnand %p5984_p2, %p5970_p3  ;;  %p5992_p5 = scmp.lt.s32.totalorder %s5990_s11, %s5983_s7 }
  0x25   : > { %p5987_p12 = pneg %p5986_p4  ;;  %p5993_p8 = por %p5992_p5, %p5991_p11 }
  0x27   : > { %p5994_p9 = pnand %p5993_p8, %p5987_p12 }
  0x29   : > { %5997 = shalt.err (!%p5994_p9)
}
  0x2a   : > { %5351 = dma.hbm_to_vmem [thread:$0]  (!%p6179_p13), %s6175_s12, 128, %s6183_s14, %s188_s16  }
  0x2b   : > { %p9484_p0 = scmp.lt.s32.totalorder %s6064_s21, 3  ;;  %p9485_p1 = scmp.ge.s32.totalorder %s6064_s21, 1 }
  0x2d   : > { %p205_p3 = pnand %p9485_p1, %p9484_p0 }
  0x2f   : > { %208 = sbr.rel (%p205_p3) target bundleno = 1836 (0x72c), region = 40 }
  0x36   : > { %s6217_s13 = sand.u32 1, %s6056_s19  }
  0x37   : > { %s5309_s17 = sshll.u32 %s6217_s13, 3  ;;  %s211_s23 = scalar_lea.sflag [#allocation3], %s6217_s13 }
  0x38   : > { %s6223_s15 = scalar_lea.vmem [#allocation2], %s5309_s17 }
  0x39   : > { %6043 = dma.done.wait (%p6155_p6), %s211_s23, 128  }
  0x3a   : > { %6045 = vsyncadd (%p6155_p6), %s211_s23, 4294967168  ;;  %v241_v0 = vld [vmem:[%s6223_s15] sm:$0xff]  ;;  %s6067_s12 = smov 80   ;;  %s6068_s14 = smov 112   ;;  %v6074_v2 = vmov 1983009808   ;;  %v284_v4 = vlaneseq }
  0x3b   : > { %253 = vrot.lane.b32.xlu1 %v241_v0, %s6067_s12  ;;  %245 = vrot.lane.b32.xlu0 %v241_v0, %s6068_s14  ;;  %s6069_s16 = smov 64   ;;  %s6070_s25 = smov 96   ;;  %v282_v3 = vunpack.c.l.s4 %v6074_v2  ;;  %v243_v10 = vrot.slane %v241_v0, 4  ;;  %v6075_v14 = vmov 1934713408   ;;  %vm440_vm0 = vcmask 1040384  }
  0x3c   : > { %s6071_s26 = smov 32   ;;  %s6072_s28 = smov 48   ;;  %v285_v7 = vshrl.u32 %v284_v4, 7  ;;  %v299_v15 = vunpack.c.l.s4 %v6075_v14  ;;  %vm513_vm1 = vcmask 7168   ;;  %vm526_vm2 = vcmask 138240  }
  0x3d   : > { %s6073_s29 = smov 16   ;;  %v283_v6 = vunpack.c.0.s8 %v282_v3  ;;  %s6076_s8 = smov 1   ;;  %vm1224_vm3 = vcmask 1046528   ;;  %vm1919_vm4 = vcmask 1045504   ;;  %vm731_vm5 = vcmask 130048  }
  0x3e   : > { %v300_v25 = vunpack.c.0.s8 %v299_v15  ;;  %s6078_s7 = smov 127   ;;  %s6079_s9 = smov 126   ;;  %vm733_vm6 = vcmask 261120   ;;  %vm735_vm7 = vcmask 392192   ;;  %vm737_vm8 = vcmask 523264  }
  0x3f   : > { %257 = vrot.lane.b32.xlu1 %v241_v0, %s6069_s16  ;;  %249 = vrot.lane.b32.xlu0 %v241_v0, %s6070_s25  ;;  %v6237_v17 = vsub.s32 %v283_v6, %v285_v7  ;;  %vm739_vm9 = vcmask 654336   ;;  %vm741_vm10 = vcmask 785408   ;;  %vm743_vm11 = vcmask 916480   ;;  %p9550_p11 = scmp.ne.s32.totalorder %s9481_s30, 0 }
  0x40   : > { %v6243_v36 = vsub.s32 %v300_v25, %v285_v7  ;;  %vm2638_vm12 = vcmask 1043456   ;;  %vm2654_vm13 = vcmask 293888  }
  0x43   : > { %265 = vrot.lane.b32.xlu1 %v241_v0, %s6071_s26  ;;  %261 = vrot.lane.b32.xlu0 %v241_v0, %s6072_s28 }
  0x47   : > { %269 = vrot.lane.b32.xlu0 %v241_v0, %s6073_s29 }
  0xad   : > { %v254_v1 = vpop.permute.xlu1 %253  ;;  %v246_v5 = vpop.permute.xlu0 %245 }
  0xae   : > { %v255_v12 = vrot.slane %v254_v1, 4  ;;  %v247_v13 = vrot.slane %v246_v5, 4  ;;  %v288_v18 = vcombine.low %v246_v5, %v254_v1 }
  0xb0   : > { %v356_v24 = vcombine.low %v247_v13, %v255_v12  ;;  %v295_v28 = vrot.slane %v288_v18, %v6237_v17 }
  0xb1   : > { %v258_v8 = vpop.permute.xlu1 %257  ;;  %v250_v9 = vpop.permute.xlu0 %249 }
  0xb2   : > { %v251_v11 = vrot.slane %v250_v9, 4  ;;  %v280_v16 = vcombine.low %v241_v0, %v250_v9  ;;  %v259_v22 = vrot.slane %v258_v8, 4  ;;  %v363_v35 = vrot.slane %v356_v24, %v6237_v17 }
  0xb4   : > { %v348_v19 = vcombine.low %v243_v10, %v251_v11  ;;  %v287_v26 = vrot.slane %v280_v16, %v6237_v17 }
  0xb5   : > { %v266_v20 = vpop.permute.xlu1 %265  ;;  %v262_v21 = vpop.permute.xlu0 %261 }
  0xb6   : > { %v267_v23 = vrot.slane %v266_v20, 4  ;;  %v314_v27 = vcombine.low %v258_v8, %v266_v20  ;;  %v355_v29 = vrot.slane %v348_v19, %v6237_v17  ;;  %v263_v32 = vrot.slane %v262_v21, 4 }
  0xb7   : > { %v296_v37 = vcombine.low %v287_v26, %v295_v28  ;;  %v297_v47 = vcombine.high %v287_v26, %v295_v28 }
  0xb8   : > { %v382_v31 = vcombine.low %v259_v22, %v267_v23  ;;  %v321_v38 = vrot.slane %v314_v27, %v6237_v17  ;;  %v364_v41 = vcombine.low %v355_v29, %v363_v35  ;;  %v365_v42 = vcombine.high %v355_v29, %v363_v35 }
  0xb9   : > { %v270_v30 = vpop.permute.xlu0 %269  ;;  %v304_v50 = vrot.slane %v296_v37, %v6243_v36  ;;  %v311_v59 = vrot.slane %v297_v47, %v6243_v36  ;;  %v9461_v23 = vmov 0.0  }
  0xba   : > { %v271_v33 = vrot.slane %v270_v30, 4  ;;  %v322_v34 = vcombine.low %v262_v21, %v270_v30  ;;  %v389_v43 = vrot.slane %v382_v31, %v6237_v17  ;;  %v372_v52 = vrot.slane %v364_v41, %v6243_v36  ;;  %2728 = vmatprep.mubr.f32.mxu0 %v9461_v23  ;;  %5199 = vmatprep.mubr.f32.mxu1 %v9461_v23 }
  0xbb   : > { %v379_v54 = vrot.slane %v365_v42, %v6243_v36 }
  0xbc   : > { %v329_v39 = vrot.slane %v322_v34, %v6237_v17  ;;  %v390_v40 = vcombine.low %v263_v32, %v271_v33 }
  0xbe   : > { %v330_v44 = vcombine.low %v321_v38, %v329_v39  ;;  %v331_v45 = vcombine.high %v321_v38, %v329_v39  ;;  %v397_v46 = vrot.slane %v390_v40, %v6237_v17 }
  0xc0   : > { %v398_v48 = vcombine.low %v389_v43, %v397_v46  ;;  %v399_v49 = vcombine.high %v389_v43, %v397_v46  ;;  %v338_v51 = vrot.slane %v330_v44, %v6243_v36  ;;  %v345_v53 = vrot.slane %v331_v45, %v6243_v36 }
  0xc2   : > { %v432_v55 = vcombine.low %v304_v50, %v338_v51  ;;  %v406_v56 = vrot.slane %v398_v48, %v6243_v36  ;;  %v5311_v57 = vcombine.high %v304_v50, %v338_v51  ;;  %v413_v58 = vrot.slane %v399_v49, %v6243_v36 }
  0xc3   : > { %v5313_v63 = vcombine.high %v311_v59, %v345_v53  ;;  %v436_v3 = vcombine.low %v311_v59, %v345_v53 }
  0xc4   : > { %v441_v60 = vrot.slane %v432_v55, 7  ;;  %v5312_v61 = vcombine.high %v372_v52, %v406_v56  ;;  %v5314_v62 = vcombine.high %v379_v54, %v413_v58  ;;  %v444_v1 = vrot.slane %v5311_v57, 7 }
  0xc5   : > { %v433_v6 = vcombine.low %v372_v52, %v406_v56  ;;  %v450_v8 = vrot.slane %v5313_v63, 7  ;;  %v447_v9 = vrot.slane %v436_v3, 7  ;;  %v437_v14 = vcombine.low %v379_v54, %v413_v58 }
  0xc6   : > { %v461_v0 = vsel %vm440_vm0, 0.0, %v441_v60  ;;  %v445_v2 = vrot.slane %v5312_v61, 7  ;;  %v451_v5 = vrot.slane %v5314_v62, 7  ;;  %v462_v7 = vsel %vm440_vm0, 0.0, %v444_v1 }
  0xc7   : > { %477 = vrot.lane.b32.xlu1 %v461_v0, %s6076_s8  ;;  %v442_v11 = vrot.slane %v433_v6, 7  ;;  %v463_v12 = vsel %vm440_vm0, 0.0, %v447_v9  ;;  %v464_v15 = vsel %vm440_vm0, 0.0, %v450_v8  ;;  %v448_v18 = vrot.slane %v437_v14, 7 }
  0xc8   : > { %v446_v4 = vsel %vm440_vm0, %v444_v1, %v445_v2  ;;  %v452_v10 = vsel %vm440_vm0, %v450_v8, %v451_v5  ;;  %v466_v16 = vsel %vm440_vm0, %v445_v2, 0.0  ;;  %v468_v22 = vsel %vm440_vm0, %v451_v5, 0.0 }
  0xc9   : > { %485 = vrot.lane.b32.xlu0 %v446_v4, %s6076_s8  ;;  %v465_v13 = vsel %vm440_vm0, %v442_v11, 0.0  ;;  %v443_v19 = vsel %vm440_vm0, %v441_v60, %v442_v11  ;;  %v467_v20 = vsel %vm440_vm0, %v448_v18, 0.0  ;;  %v449_v21 = vsel %vm440_vm0, %v447_v9, %v448_v18 }
  0xcb   : > { %483 = vrot.lane.b32.xlu1 %v462_v7, %s6076_s8 }
  0xcd   : > { %497 = vrot.lane.b32.xlu0 %v452_v10, %s6076_s8 }
  0xcf   : > { %489 = vrot.lane.b32.xlu1 %v463_v12, %s6076_s8 }
  0xd1   : > { %481 = vrot.lane.b32.xlu0 %v465_v13, %s6076_s8 }
  0xd3   : > { %495 = vrot.lane.b32.xlu1 %v464_v15, %s6076_s8 }
  0xd5   : > { %487 = vrot.lane.b32.xlu0 %v466_v16, %s6076_s8 }
  0xd7   : > { %479 = vrot.lane.b32.xlu1 %v443_v19, %s6076_s8 }
  0xd9   : > { %493 = vrot.lane.b32.xlu0 %v467_v20, %s6076_s8 }
  0xdb   : > { %491 = vrot.lane.b32.xlu1 %v449_v21, %s6076_s8 }
  0xdd   : > { %499 = vrot.lane.b32.xlu0 %v468_v22, %s6076_s8 }
 0x139   : > { %v478_v24 = vpop.permute.xlu1 %477 }
 0x13a   : > { %v514_v25 = vsel %vm513_vm1, 0.0, %v478_v24 }
 0x13b   : > { %v6285_v26 = vsel %vm526_vm2, %v514_v25, 0.0  ;;  %v486_v27 = vpop.permute.xlu0 %485 }
 0x13c   : > { %760 = vrot.lane.b32.xlu1 %v6285_v26, %s6078_s7  ;;  %v518_v29 = vsel %vm513_vm1, 0.0, %v486_v27  ;;  %v1225_v61 = vrot.slane %v6285_v26, 1 }
 0x13d   : > { %v484_v28 = vpop.permute.xlu1 %483  ;;  %v6298_v34 = vsel %vm526_vm2, %v518_v29, 0.0 }
 0x13e   : > { %v517_v30 = vsel %vm513_vm1, 0.0, %v484_v28  ;;  %v1231_v60 = vrot.slane %v6298_v34, 1  ;;  %v1926_v1 = vrot.slane %v6298_v34, 2 }
 0x13f   : > { %v6292_v31 = vsel %vm526_vm2, %v517_v30, 0.0  ;;  %v498_v32 = vpop.permute.xlu0 %497 }
 0x140   : > { %v524_v33 = vsel %vm513_vm1, 0.0, %v498_v32  ;;  %764 = vrot.lane.b32.xlu0 %v6292_v31, %s6078_s7 }
 0x141   : > { %v6301_v35 = vsel %vm526_vm2, %v524_v33, 0.0  ;;  %v490_v37 = vpop.permute.xlu1 %489 }
 0x142   : > { %v623_v38 = vcombine.low %v6298_v34, %v6301_v35  ;;  %v624_v39 = vcombine.high %v6298_v34, %v6301_v35  ;;  %v520_v40 = vsel %vm513_vm1, 0.0, %v490_v37  ;;  %v1241_v0 = vrot.slane %v6301_v35, 1 }
 0x143   : > { %v6309_v41 = vsel %vm526_vm2, %v520_v40, 0.0  ;;  %v482_v42 = vpop.permute.xlu0 %481 }
 0x144   : > { %v539_v43 = vcombine.low %v6285_v26, %v6309_v41  ;;  %v540_v44 = vcombine.high %v6285_v26, %v6309_v41  ;;  %768 = vrot.lane.b32.xlu1 %v6309_v41, %s6078_s7  ;;  %v516_v47 = vsel %vm513_vm1, 0.0, %v482_v42  ;;  %v1235_v6 = vrot.slane %v6309_v41, 1 }
 0x145   : > { %v496_v45 = vpop.permute.xlu1 %495  ;;  %v529_v55 = vsel %vm526_vm2, %v516_v47, 0.0  ;;  %v1936_v47 = vrot.slane %v6301_v35, 2 }
 0x146   : > { %v523_v46 = vsel %vm513_vm1, 0.0, %v496_v45  ;;  %v1228_v2 = vrot.slane %v529_v55, 1  ;;  %v1923_v7 = vrot.slane %v529_v55, 2 }
 0x147   : > { %v6320_v48 = vsel %vm526_vm2, %v523_v46, 0.0  ;;  %v488_v49 = vpop.permute.xlu0 %487 }
 0x148   : > { %v555_v50 = vcombine.low %v6292_v31, %v6320_v48  ;;  %v556_v51 = vcombine.high %v6292_v31, %v6320_v48  ;;  %v519_v52 = vsel %vm513_vm1, 0.0, %v488_v49  ;;  %772 = vrot.lane.b32.xlu0 %v6320_v48, %s6078_s7  ;;  %990 = vrot.lane.b32.xlu1 %v6285_v26, %s6079_s9 }
 0x149   : > { %v532_v53 = vsel %vm526_vm2, %v519_v52, 0.0  ;;  %v480_v54 = vpop.permute.xlu1 %479 }
 0x14a   : > { %v1233_v56 = vrot.slane %v532_v53, 1  ;;  %v515_v57 = vsel %vm513_vm1, 0.0, %v480_v54  ;;  %v1928_v8 = vrot.slane %v532_v53, 2 }
 0x14b   : > { %v6335_v58 = vsel %vm526_vm2, %v515_v57, 0.0  ;;  %v494_v59 = vpop.permute.xlu0 %493 }
 0x14c   : > { %v522_v62 = vsel %vm513_vm1, 0.0, %v494_v59  ;;  %994 = vrot.lane.b32.xlu0 %v6292_v31, %s6079_s9  ;;  %998 = vrot.lane.b32.xlu1 %v6309_v41, %s6079_s9  ;;  %v1226_v63 = vrot.slane %v6335_v58, 1  ;;  %v1921_v5 = vrot.slane %v6335_v58, 2  ;;  %v6354_v10 = vsel %vm1224_vm3, %v1231_v60, %v1233_v56 }
 0x14d   : > { %v535_v3 = vsel %vm526_vm2, %v522_v62, 0.0  ;;  %v492_v4 = vpop.permute.xlu1 %491  ;;  %v6420_v53 = vsel %vm1919_vm4, %v1926_v1, %v1928_v8  ;;  %v6448_v62 = vrot.slane %v540_v44, %v6237_v17  ;;  %v6468_v44 = vrot.slane %v555_v50, %v6237_v17 }
 0x14e   : > { %v521_v9 = vsel %vm513_vm1, 0.0, %v492_v4  ;;  %v1238_v11 = vrot.slane %v535_v3, 1  ;;  %v1933_v12 = vrot.slane %v535_v3, 2  ;;  %v6360_v15 = vsel %vm1224_vm3, %v1226_v63, %v1228_v2 }
 0x14f   : > { %v6357_v13 = vsel %vm526_vm2, %v521_v9, 0.0  ;;  %v500_v14 = vpop.permute.xlu0 %499  ;;  %v6376_v22 = vsel %vm1919_vm4, %v1921_v5, %v1923_v7  ;;  %v6380_v25 = vsel %vm1224_vm3, %v1225_v61, %v1226_v63  ;;  %v6454_v63 = vrot.slane %v556_v51, %v6237_v17 }
 0x150   : > { %v607_v16 = vcombine.low %v6335_v58, %v6357_v13  ;;  %v608_v18 = vcombine.high %v6335_v58, %v6357_v13  ;;  %v525_v19 = vsel %vm513_vm1, 0.0, %v500_v14  ;;  %1002 = vrot.lane.b32.xlu0 %v6320_v48, %s6079_s9  ;;  %762 = vrot.lane.b32.xlu1 %v6335_v58, %s6078_s7  ;;  %v1236_v20 = vrot.slane %v6357_v13, 1 }
 0x151   : > { %v538_v21 = vsel %vm526_vm2, %v525_v19, 0.0  ;;  %v1931_v24 = vrot.slane %v6357_v13, 2  ;;  %v6462_v3 = vrot.slane %v539_v43, %v6237_v17  ;;  %v587_v4 = vcombine.low %v6448_v62, %v6454_v63 }
 0x152   : > { %v1243_v27 = vrot.slane %v538_v21, 1  ;;  %v1938_v28 = vrot.slane %v538_v21, 2  ;;  %v6383_v29 = vsel %vm1224_vm3, %v1236_v20, %v1238_v11  ;;  %v6386_v30 = vsel %vm1224_vm3, %v1235_v6, %v1236_v20 }
 0x153   : > { %v1321_v32 = vcombine.low %v6360_v15, %v6383_v29  ;;  %v1322_v33 = vcombine.high %v6360_v15, %v6383_v29  ;;  %v6395_v37 = vsel %vm1919_vm4, %v1931_v24, %v1933_v12  ;;  %v1253_v40 = vcombine.low %v6380_v25, %v6386_v30 }
 0x154   : > { %766 = vrot.lane.b32.xlu0 %v6298_v34, %s6078_s7  ;;  %770 = vrot.lane.b32.xlu1 %v6357_v13, %s6078_s7  ;;  %v6406_v42 = vsel %vm1224_vm3, %v1241_v0, %v1243_v27  ;;  %v2016_v45 = vcombine.low %v6376_v22, %v6395_v37  ;;  %v2017_v46 = vcombine.high %v6376_v22, %v6395_v37  ;;  %v1920_v2 = vrot.slane %v6285_v26, 2 }
 0x155   : > { %v1337_v49 = vcombine.low %v6354_v10, %v6406_v42  ;;  %v1338_v52 = vcombine.high %v6354_v10, %v6406_v42  ;;  %v6425_v54 = vsel %vm1919_vm4, %v1936_v47, %v1938_v28  ;;  %v1254_v55 = vcombine.high %v6380_v25, %v6386_v30 }
 0x156   : > { %v2032_v56 = vcombine.low %v6420_v53, %v6425_v54  ;;  %v6436_v57 = vrot.slane %v2016_v45, %v6237_v17  ;;  %v6475_v51 = vrot.slane %v1321_v32, %v6237_v17  ;;  %v572_v6 = vcombine.high %v6462_v3, %v6468_v44 }
 0x157   : > { %v6442_v61 = vrot.slane %v1337_v49, %v6237_v17  ;;  %v6480_v43 = vrot.slane %v1338_v52, %v6237_v17  ;;  %v588_v50 = vcombine.high %v6448_v62, %v6454_v63  ;;  %v6489_v8 = vrot.slane %v1322_v33, %v6237_v17 }
 0x158   : > { %774 = vrot.lane.b32.xlu0 %v6301_v35, %s6078_s7  ;;  %992 = vrot.lane.b32.xlu1 %v6335_v58, %s6079_s9  ;;  %v6439_v59 = vrot.slane %v2032_v56, %v6237_v17  ;;  %v571_v9 = vcombine.low %v6462_v3, %v6468_v44  ;;  %v6501_v11 = vrot.slane %v623_v38, %v6237_v17  ;;  %v1230_v56 = vrot.slane %v6292_v31, 1 }
 0x159   : > { %v1354_v7 = vcombine.high %v6475_v51, %v6442_v61  ;;  %v6504_v12 = vrot.slane %v607_v16, %v6237_v17  ;;  %v6507_v14 = vrot.slane %v608_v18, %v6237_v17  ;;  %v6513_v19 = vrot.slane %v624_v39, %v6237_v17 }
 0x15a   : > { %v1369_v20 = vcombine.low %v6489_v8, %v6480_v43  ;;  %v2033_v21 = vcombine.high %v6420_v53, %v6425_v54  ;;  %v6543_v33 = vrot.slane %v2017_v46, %v6237_v17  ;;  %v6563_v46 = vsel %vm1224_vm3, %v1230_v56, %v1231_v60 }
 0x15b   : > { %v640_v16 = vcombine.high %v6504_v12, %v6501_v11  ;;  %v655_v18 = vcombine.low %v6507_v14, %v6513_v19  ;;  %v6579_v60 = vsel %vm1919_vm4, %v1920_v2, %v1921_v5  ;;  %v1925_v56 = vrot.slane %v6292_v31, 2 }
 0x15c   : > { %996 = vrot.lane.b32.xlu0 %v6298_v34, %s6079_s9  ;;  %1000 = vrot.lane.b32.xlu1 %v6357_v13, %s6079_s9  ;;  %v6534_v28 = vrot.slane %v2033_v21, %v6237_v17  ;;  %v1240_v21 = vrot.slane %v6320_v48, 1  ;;  %v1930_v26 = vrot.slane %v6309_v41, 2  ;;  %v1935_v31 = vrot.slane %v6320_v48, 2 }
 0x15d   : > { %v6647_v5 = vrot.slane %v1253_v40, %v6237_v17 }
 0x15e   : > { %v6574_v52 = vsel %vm1224_vm3, %v1240_v21, %v1241_v0  ;;  %v6590_v0 = vsel %vm1919_vm4, %v1925_v56, %v1926_v1  ;;  %v6595_v58 = vsel %vm1919_vm4, %v1930_v26, %v1931_v24  ;;  %v6605_v34 = vsel %vm1919_vm4, %v1935_v31, %v1936_v47 }
 0x15f   : > { %v1269_v1 = vcombine.low %v6563_v46, %v6574_v52 }
 0x160   : > { %1004 = vrot.lane.b32.xlu0 %v6301_v35, %s6079_s9  ;;  %1691 = vrot.lane.b32.xlu1 %v6360_v15, %s6079_s9 }
 0x164   : > { %1695 = vrot.lane.b32.xlu0 %v6354_v10, %s6079_s9  ;;  %1699 = vrot.lane.b32.xlu1 %v6383_v29, %s6079_s9 }
 0x168   : > { %1703 = vrot.lane.b32.xlu0 %v6406_v42, %s6079_s9  ;;  %2156 = vrot.lane.b32.xlu1 %v6376_v22, %s6078_s7 }
 0x16c   : > { %2160 = vrot.lane.b32.xlu0 %v6420_v53, %s6078_s7  ;;  %2164 = vrot.lane.b32.xlu1 %v6395_v37, %s6078_s7 }
 0x170   : > { %2168 = vrot.lane.b32.xlu0 %v6425_v54, %s6078_s7  ;;  %1689 = vrot.lane.b32.xlu1 %v6380_v25, %s6079_s9 }
 0x174   : > { %1693 = vrot.lane.b32.xlu0 %v6563_v46, %s6079_s9  ;;  %1697 = vrot.lane.b32.xlu1 %v6386_v30, %s6079_s9 }
 0x178   : > { %1701 = vrot.lane.b32.xlu0 %v6574_v52, %s6079_s9  ;;  %2154 = vrot.lane.b32.xlu1 %v6579_v60, %s6078_s7 }
 0x17c   : > { %2158 = vrot.lane.b32.xlu0 %v6590_v0, %s6078_s7  ;;  %2162 = vrot.lane.b32.xlu1 %v6595_v58, %s6078_s7 }
 0x180   : > { %2166 = vrot.lane.b32.xlu0 %v6605_v34, %s6078_s7  ;;  %1461 = vrot.lane.b32.xlu1 %v6360_v15, %s6078_s7 }
 0x184   : > { %1465 = vrot.lane.b32.xlu0 %v6354_v10, %s6078_s7  ;;  %1469 = vrot.lane.b32.xlu1 %v6383_v29, %s6078_s7 }
 0x188   : > { %1473 = vrot.lane.b32.xlu0 %v6406_v42, %s6078_s7  ;;  %1459 = vrot.lane.b32.xlu1 %v6380_v25, %s6078_s7 }
 0x18c   : > { %1463 = vrot.lane.b32.xlu0 %v6563_v46, %s6078_s7  ;;  %1467 = vrot.lane.b32.xlu1 %v6386_v30, %s6078_s7 }
 0x190   : > { %1471 = vrot.lane.b32.xlu0 %v6574_v52, %s6078_s7  ;;  %2386 = vrot.lane.b32.xlu1 %v6376_v22, %s6079_s9  ;;  %v6650_v22 = vrot.slane %v1269_v1, %v6237_v17  ;;  %v1270_v1 = vcombine.high %v6563_v46, %v6574_v52 }
 0x192   : > { %v1286_v42 = vcombine.high %v6647_v5, %v6650_v22 }
 0x194   : > { %2390 = vrot.lane.b32.xlu0 %v6420_v53, %s6079_s9  ;;  %2394 = vrot.lane.b32.xlu1 %v6395_v37, %s6079_s9  ;;  %v6660_v31 = vrot.slane %v1286_v42, %v6243_v36 }
 0x198   : > { %2398 = vrot.lane.b32.xlu0 %v6425_v54, %s6079_s9  ;;  %2384 = vrot.lane.b32.xlu1 %v6579_v60, %s6079_s9 }
 0x19c   : > { %2388 = vrot.lane.b32.xlu0 %v6590_v0, %s6079_s9  ;;  %2392 = vrot.lane.b32.xlu1 %v6595_v58, %s6079_s9 }
 0x1a0   : > { %2396 = vrot.lane.b32.xlu0 %v6605_v34, %s6079_s9 }
 0x1ae   : > { %v761_v35 = vpop.permute.xlu1 %760 }
 0x1b2   : > { %v765_v41 = vpop.permute.xlu0 %764 }
 0x1b6   : > { %v769_v48 = vpop.permute.xlu1 %768 }
 0x1b7   : > { %v784_v10 = vcombine.low %v761_v35, %v769_v48  ;;  %v785_v40 = vcombine.high %v761_v35, %v769_v48  ;;  %v1268_v48 = vrot.slane %v1254_v55, %v6237_v17  ;;  %v6684_v55 = vrot.slane %v587_v4, %v6243_v36 }
 0x1b9   : > { %v792_v29 = vrot.slane %v784_v10, %v6237_v17 }
 0x1ba   : > { %v773_v13 = vpop.permute.xlu0 %772  ;;  %v991_v15 = vpop.permute.xlu1 %990 }
 0x1bb   : > { %v800_v24 = vcombine.low %v765_v41, %v773_v13  ;;  %v801_v47 = vcombine.high %v765_v41, %v773_v13 }
 0x1bd   : > { %v808_v37 = vrot.slane %v800_v24, %v6237_v17  ;;  %v815_v10 = vrot.slane %v801_v47, %v6237_v17 }
 0x1be   : > { %v995_v53 = vpop.permute.xlu0 %994  ;;  %v999_v54 = vpop.permute.xlu1 %998 }
 0x1bf   : > { %v817_v2 = vcombine.high %v792_v29, %v808_v37  ;;  %v1014_v21 = vcombine.low %v991_v15, %v999_v54  ;;  %v1015_v56 = vcombine.high %v991_v15, %v999_v54  ;;  %v799_v15 = vrot.slane %v785_v40, %v6237_v17 }
 0x1c1   : > { %v6657_v26 = vrot.slane %v817_v2, %v6243_v36  ;;  %v1022_v42 = vrot.slane %v1014_v21, %v6237_v17  ;;  %v1029_v52 = vrot.slane %v1015_v56, %v6237_v17  ;;  %v833_v54 = vcombine.high %v799_v15, %v815_v10 }
 0x1c2   : > { %v1003_v24 = vpop.permute.xlu0 %1002  ;;  %v6665_v49 = vpop.permute.xlu1 %762  ;;  %v832_v45 = vcombine.low %v799_v15, %v815_v10 }
 0x1c3   : > { %v1030_v41 = vcombine.low %v995_v53, %v1003_v24  ;;  %v1031_v13 = vcombine.high %v995_v53, %v1003_v24  ;;  %v5404_v35 = vpack.i.bf16 %v6660_v31, %v6657_v26  ;;  %v1284_v53 = vrot.slane %v1270_v1, %v6237_v17 }
 0x1c4   : > { %v6694_v1 = vrot.slane %v572_v6, %v6243_v36  ;;  %v6707_v6 = vrot.slane %v832_v45, %v6243_v36 }
 0x1c5   : > { %v1038_v46 = vrot.slane %v1030_v41, %v6237_v17  ;;  %v1045_v47 = vrot.slane %v1031_v13, %v6237_v17  ;;  %5405 = vrot.lane.b32.xlu1 %v5404_v35, %s6071_s26  ;;  %v1302_v40 = vcombine.high %v1268_v48, %v1284_v53  ;;  %v1301_v21 = vcombine.low %v1268_v48, %v1284_v53 }
 0x1c6   : > { %v767_v2 = vpop.permute.xlu0 %766  ;;  %v771_v24 = vpop.permute.xlu1 %770  ;;  %v816_v13 = vcombine.low %v792_v29, %v808_v37  ;;  %v6700_v48 = vrot.slane %v833_v54, %v6243_v36  ;;  %v1285_v29 = vcombine.low %v6647_v5, %v6650_v22  ;;  %v6729_v5 = vrot.slane %v588_v50, %v6243_v36 }
 0x1c7   : > { %v1047_v25 = vcombine.high %v1022_v42, %v1038_v46  ;;  %v1062_v30 = vcombine.low %v1029_v52, %v1045_v47  ;;  %v852_v56 = vcombine.low %v6665_v49, %v771_v24  ;;  %v1046_v35 = vcombine.low %v1022_v42, %v1038_v46 }
 0x1c8   : > { %v1063_v4 = vcombine.high %v1029_v52, %v1045_v47  ;;  %v6723_v52 = vrot.slane %v1301_v21, %v6243_v36  ;;  %v6735_v47 = vrot.slane %v816_v13, %v6243_v36  ;;  %v853_v63 = vcombine.high %v6665_v49, %v771_v24 }
 0x1c9   : > { %v6688_v41 = vrot.slane %v1062_v30, %v6243_v36  ;;  %v6697_v10 = vrot.slane %v1047_v25, %v6243_v36  ;;  %v6710_v25 = vrot.slane %v1302_v40, %v6243_v36  ;;  %v6715_v37 = vrot.slane %v852_v56, %v6237_v17 }
 0x1ca   : > { %v775_v15 = vpop.permute.xlu0 %774  ;;  %v993_v32 = vpop.permute.xlu1 %992  ;;  %v6732_v22 = vrot.slane %v1063_v4, %v6243_v36  ;;  %9486 = vst [vmem:[#allocation8_spill] sm:$0xff] %v6735_v47  ;;  %v6738_v54 = vrot.slane %v1046_v35, %v6243_v36  ;;  %v5414_v62 = vpack.i.bf16 %v6723_v52, %v6707_v6  ;;  %v6748_v56 = vrot.slane %v1285_v29, %v6243_v36 }
 0x1cb   : > { %v868_v53 = vcombine.low %v767_v2, %v775_v15  ;;  %v5419_v30 = vpack.i.bf16 %v6688_v41, %v6684_v55  ;;  %v5409_v27 = vpack.i.bf16 %v6697_v10, %v6694_v1  ;;  %v5424_v21 = vpack.i.bf16 %v6710_v25, %v6700_v48 }
 0x1cc   : > { %9487 = vst [vmem:[#allocation9_spill] sm:$0xff] %v6738_v54  ;;  %v6765_v49 = vrot.slane %v1354_v7, %v6243_v36  ;;  %v5429_v3 = vpack.i.bf16 %v6732_v22, %v6729_v5  ;;  %v848_v44 = vcombine.high %v6735_v47, %v9461_v23 }
 0x1cd   : > { %v6718_v42 = vrot.slane %v868_v53, %v6237_v17  ;;  %5420 = vrot.lane.b32.xlu0 %v5419_v30, %s6069_s16  ;;  %5410 = vrot.lane.b32.xlu1 %v5409_v27, %s6071_s26  ;;  %v869_v27 = vcombine.high %v767_v2, %v775_v15  ;;  %v6754_v2 = vrot.slane %v571_v9, %v6243_v36 }
 0x1ce   : > { %v997_v45 = vpop.permute.xlu0 %996  ;;  %v1001_v46 = vpop.permute.xlu1 %1000  ;;  %v1078_v9 = vcombine.high %v6738_v54, %v9461_v23  ;;  %v867_v30 = vrot.slane %v853_v63, %v6237_v17 }
 0x1cf   : > { %v885_v40 = vcombine.high %v6715_v37, %v6718_v42  ;;  %v1082_v50 = vcombine.low %v993_v32, %v1001_v46  ;;  %9488 = vst [vmem:[#allocation10_spill] sm:$0xff] %v6754_v2  ;;  %v1083_v13 = vcombine.high %v993_v32, %v1001_v46  ;;  %v883_v32 = vrot.slane %v869_v27, %v6237_v17 }
 0x1d0   : > { %v1317_v46 = vcombine.high %v6748_v56, %v9461_v23 }
 0x1d1   : > { %5425 = vrot.lane.b32.xlu0 %v5424_v21, %s6070_s25  ;;  %5415 = vrot.lane.b32.xlu1 %v5414_v62, %s6069_s16  ;;  %v6759_v35 = vrot.slane %v885_v40, %v6243_v36  ;;  %v6780_v29 = vrot.slane %v1082_v50, %v6237_v17  ;;  %v603_v40 = vcombine.high %v6754_v2, %v9461_v23 }
 0x1d2   : > { %v1005_v24 = vpop.permute.xlu0 %1004  ;;  %v6767_v4 = vpop.permute.xlu1 %1691  ;;  %v1097_v21 = vrot.slane %v1083_v13, %v6237_v17  ;;  %v5434_v50 = vpack.i.bf16 %v1317_v46, %v848_v44  ;;  %v900_v39 = vcombine.low %v867_v30, %v883_v32  ;;  %v901_v46 = vcombine.high %v867_v30, %v883_v32 }
 0x1d3   : > { %v1098_v15 = vcombine.low %v997_v45, %v1005_v24  ;;  %v1099_v53 = vcombine.high %v997_v45, %v1005_v24  ;;  %v5439_v7 = vpack.i.bf16 %v6765_v49, %v6759_v35  ;;  %v849_v24 = vcombine.high %v6657_v26, %v9461_v23 }
 0x1d4   : > { %v5444_v38 = vpack.i.bf16 %v1078_v9, %v603_v40  ;;  %v6822_v40 = vrot.slane %v900_v39, %v6243_v36  ;;  %v6836_v32 = vrot.slane %v1369_v20, %v6243_v36  ;;  %v9489_v20 = vcombine.high %v6489_v8, %v6480_v43 }
 0x1d5   : > { %v6788_v27 = vrot.slane %v1098_v15, %v6237_v17  ;;  %v1113_v45 = vrot.slane %v1099_v53, %v6237_v17  ;;  %5430 = vrot.lane.b32.xlu0 %v5429_v3, %s6070_s25  ;;  %5440 = vrot.lane.b32.xlu1 %v5439_v7, %s6071_s26  ;;  %v1318_v53 = vcombine.high %v6660_v31, %v9461_v23 }
 0x1d6   : > { %v6793_v62 = vpop.permute.xlu0 %1695  ;;  %v6795_v63 = vpop.permute.xlu1 %1699  ;;  %v6809_v3 = vrot.slane %v640_v16, %v6243_v36  ;;  %v6830_v16 = vrot.slane %v655_v18, %v6243_v36  ;;  %v1079_v18 = vcombine.high %v6697_v10, %v9461_v23  ;;  %v1080_v10 = vcombine.high %v6688_v41, %v9461_v23 }
 0x1d7   : > { %v1115_v13 = vcombine.high %v6780_v29, %v6788_v27  ;;  %v1130_v15 = vcombine.low %v1097_v21, %v1113_v45  ;;  %v5454_v9 = vpack.i.bf16 %v1318_v53, %v849_v24  ;;  %v5459_v24 = vpack.i.bf16 %v6836_v32, %v6822_v40 }
 0x1d8   : > { %v604_v53 = vcombine.high %v6694_v1, %v9461_v23  ;;  %v1319_v1 = vcombine.high %v6723_v52, %v9461_v23  ;;  %v605_v41 = vcombine.high %v6684_v55, %v9461_v23  ;;  %v1320_v55 = vcombine.high %v6710_v25, %v9461_v23 }
 0x1d9   : > { %5435 = vrot.lane.b32.xlu0 %v5434_v50, %s6073_s29  ;;  %5445 = vrot.lane.b32.xlu1 %v5444_v38, %s6073_s29  ;;  %v6812_v26 = vrot.slane %v1115_v13, %v6243_v36  ;;  %v1138_v38 = vrot.slane %v1130_v15, %v6243_v36  ;;  %v6846_v13 = vrot.slane %v901_v46, %v6243_v36 }
 0x1da   : > { %v6814_v44 = vpop.permute.xlu0 %1703  ;;  %v6816_v7 = vpop.permute.xlu1 %2156  ;;  %v6856_v15 = vrot.slane %v9489_v20, %v6243_v36  ;;  %v5464_v8 = vpack.i.bf16 %v1079_v18, %v604_v53 }
 0x1db   : > { %v5449_v31 = vpack.i.bf16 %v6812_v26, %v6809_v3  ;;  %v5469_v50 = vpack.i.bf16 %v1138_v38, %v6830_v16 }
 0x1dc   : > { %v5479_v43 = vpack.i.bf16 %v6856_v15, %v6846_v13 }
 0x1dd   : > { %5455 = vrot.lane.b32.xlu1 %v5454_v9, %s6072_s28  ;;  %5450 = vrot.lane.b32.xlu0 %v5449_v31, %s6071_s26  ;;  %v850_v31 = vcombine.high %v6707_v6, %v9461_v23 }
 0x1de   : > { %v6838_v30 = vpop.permute.xlu0 %2160  ;;  %v6840_v39 = vpop.permute.xlu1 %2164 }
 0x1e1   : > { %5470 = vrot.lane.b32.xlu1 %v5469_v50, %s6069_s16  ;;  %5460 = vrot.lane.b32.xlu0 %v5459_v24, %s6069_s16  ;;  %v884_v50 = vcombine.low %v6715_v37, %v6718_v42  ;;  %v1131_v24 = vcombine.high %v1097_v21, %v1113_v45  ;;  %v5474_v37 = vpack.i.bf16 %v1319_v1, %v850_v31 }
 0x1e2   : > { %v6860_v9 = vpop.permute.xlu0 %2168  ;;  %v6862_v46 = vpop.permute.xlu1 %1689  ;;  %v851_v42 = vcombine.high %v6700_v48, %v9461_v23  ;;  %v1114_v21 = vcombine.low %v6780_v29, %v6788_v27  ;;  %v5484_v45 = vpack.i.bf16 %v1080_v10, %v605_v41  ;;  %v9491_v48 = vcombine.high %v6507_v14, %v6513_v19 }
 0x1e3   : > { %v1145_v52 = vrot.slane %v1131_v24, %v6243_v36  ;;  %v6888_v18 = vrot.slane %v884_v50, %v6243_v36  ;;  %v9492_v29 = vcombine.low %v6475_v51, %v6442_v61  ;;  %v1081_v50 = vcombine.high %v6732_v22, %v9461_v23 }
 0x1e4   : > { %v6898_v53 = vrot.slane %v9491_v48, %v6243_v36  ;;  %v5494_v25 = vpack.i.bf16 %v1320_v55, %v851_v42  ;;  %v6916_v19 = vrot.slane %v1114_v21, %v6243_v36  ;;  %v1948_v61 = vcombine.low %v6579_v60, %v6595_v58 }
 0x1e5   : > { %5480 = vrot.lane.b32.xlu1 %v5479_v43, %s6070_s25  ;;  %5465 = vrot.lane.b32.xlu0 %v5464_v8, %s6072_s28  ;;  %9490 = vst [vmem:[#allocation11_spill] sm:$0xff] %v6888_v18  ;;  %v6904_v27 = vrot.slane %v9492_v29, %v6243_v36  ;;  %v916_v14 = vcombine.high %v6888_v18, %v9461_v23 }
 0x1e6   : > { %v6878_v20 = vpop.permute.xlu0 %1693  ;;  %v6880_v6 = vpop.permute.xlu1 %1697  ;;  %v5489_v24 = vpack.i.bf16 %v1145_v52, %v6898_v53  ;;  %9494 = vst [vmem:[#allocation13_spill] sm:$0xff] %v6916_v19  ;;  %v1964_v51 = vcombine.low %v6590_v0, %v6605_v34  ;;  %v606_v43 = vcombine.high %v6729_v5, %v9461_v23  ;;  %v9495_v8 = vcombine.low %v6504_v12, %v6501_v11 }
 0x1e7   : > { %9493 = vst [vmem:[#allocation12_spill] sm:$0xff] %v6904_v27  ;;  %v1385_v22 = vcombine.high %v6904_v27, %v9461_v23  ;;  %v1949_v41 = vcombine.high %v6579_v60, %v6595_v58  ;;  %v2262_v21 = vcombine.low %v6838_v30, %v6860_v9  ;;  %v1148_v55 = vcombine.high %v1138_v38, %v9461_v23 }
 0x1e8   : > { %v6932_v1 = vrot.slane %v9495_v8, %v6243_v36  ;;  %v5499_v5 = vpack.i.bf16 %v1081_v50, %v606_v43  ;;  %v1146_v48 = vcombine.high %v6916_v19, %v9461_v23  ;;  %v6946_v11 = vrot.slane %v1948_v61, %v6237_v17 }
 0x1e9   : > { %5485 = vrot.lane.b32.xlu1 %v5484_v45, %s6067_s12  ;;  %5475 = vrot.lane.b32.xlu0 %v5474_v37, %s6067_s12  ;;  %v5504_v45 = vpack.i.bf16 %v1385_v22, %v916_v14  ;;  %v6951_v60 = vrot.slane %v1964_v51, %v6237_v17  ;;  %v1797_v58 = vcombine.low %v6793_v62, %v6814_v44 }
 0x1ea   : > { %v6906_v10 = vpop.permute.xlu0 %1701  ;;  %v6908_v31 = vpop.permute.xlu1 %2154  ;;  %9496 = vst [vmem:[#allocation14_spill] sm:$0xff] %v6932_v1  ;;  %v2246_v29 = vcombine.low %v6816_v7, %v6840_v39  ;;  %v673_v38 = vcombine.high %v6830_v16, %v9461_v23  ;;  %v671_v50 = vcombine.high %v6932_v1, %v9461_v23  ;;  %v919_v51 = vcombine.high %v6846_v13, %v9461_v23 }
 0x1eb   : > { %v917_v43 = vcombine.high %v6759_v35, %v9461_v23  ;;  %v6977_v16 = vrot.slane %v2262_v21, %v6237_v17  ;;  %v1386_v13 = vcombine.high %v6765_v49, %v9461_v23  ;;  %v672_v35 = vcombine.high %v6809_v3, %v9461_v23 }
 0x1ec   : > { %v5529_v8 = vpack.i.bf16 %v1148_v55, %v673_v38  ;;  %v6991_v21 = vrot.slane %v2246_v29, %v6237_v17  ;;  %v1729_v12 = vcombine.low %v6878_v20, %v6906_v10  ;;  %v1147_v29 = vcombine.high %v6812_v26, %v9461_v23 }
 0x1ed   : > { %5495 = vrot.lane.b32.xlu1 %v5494_v25, %s6068_s14  ;;  %5490 = vrot.lane.b32.xlu0 %v5489_v24, %s6070_s25  ;;  %v6964_v25 = vrot.slane %v1949_v41, %v6237_v17  ;;  %v1781_v24 = vcombine.low %v6767_v4, %v6795_v63  ;;  %v5509_v41 = vpack.i.bf16 %v1146_v48, %v671_v50 }
 0x1ee   : > { %v6936_v37 = vpop.permute.xlu0 %2158  ;;  %v6938_v42 = vpop.permute.xlu1 %2162  ;;  %v2279_v38 = vcombine.high %v6991_v21, %v6977_v16  ;;  %v1713_v50 = vcombine.low %v6862_v46, %v6880_v6  ;;  %v1387_v26 = vcombine.high %v6836_v32, %v9461_v23 }
 0x1ef   : > { %v2178_v55 = vcombine.low %v6908_v31, %v6938_v42 }
 0x1f1   : > { %5505 = vrot.lane.b32.xlu1 %v5504_v45, %s6073_s29  ;;  %5500 = vrot.lane.b32.xlu0 %v5499_v5, %s6068_s14  ;;  %v6982_v5 = vrot.slane %v1797_v58, %v6237_v17  ;;  %v1388_v45 = vcombine.high %v6856_v15, %v9461_v23  ;;  %v7000_v15 = vrot.slane %v1781_v24, %v6237_v17 }
 0x1f2   : > { %v6968_v14 = vpop.permute.xlu0 %2166  ;;  %v6970_v61 = vpop.permute.xlu1 %1461  ;;  %v1149_v58 = vcombine.high %v1145_v52, %v9461_v23  ;;  %v5514_v24 = vpack.i.bf16 %v1386_v13, %v917_v43  ;;  %v918_v52 = vcombine.high %v6822_v40, %v9461_v23  ;;  %v7028_v1 = vrot.slane %v2178_v55, %v6237_v17 }
 0x1f3   : > { %v2194_v22 = vcombine.low %v6936_v37, %v6968_v14  ;;  %v5534_v3 = vpack.i.bf16 %v1388_v45, %v919_v51  ;;  %v674_v51 = vcombine.high %v6898_v53, %v9461_v23  ;;  %v7025_v45 = vrot.slane %v1729_v12, %v6237_v17 }
 0x1f4   : > { %v1782_v53 = vcombine.high %v6767_v4, %v6795_v63  ;;  %v2263_v40 = vcombine.high %v6838_v30, %v6860_v9  ;;  %v5519_v13 = vpack.i.bf16 %v1147_v29, %v672_v35  ;;  %v7039_v55 = vrot.slane %v1713_v50, %v6237_v17 }
 0x1f5   : > { %5530 = vrot.lane.b32.xlu1 %v5529_v8, %s6067_s12  ;;  %5510 = vrot.lane.b32.xlu0 %v5509_v41, %s6073_s29  ;;  %v7014_v8 = vrot.slane %v2194_v22, %v6237_v17  ;;  %v1814_v41 = vcombine.high %v7000_v15, %v6982_v5  ;;  %v5539_v12 = vpack.i.bf16 %v1149_v58, %v674_v51 }
 0x1f6   : > { %v7002_v49 = vpop.permute.xlu0 %1465  ;;  %v7004_v48 = vpop.permute.xlu1 %1469  ;;  %v1798_v4 = vcombine.high %v6793_v62, %v6814_v44  ;;  %v2247_v63 = vcombine.high %v6816_v7, %v6840_v39  ;;  %v1981_v9 = vcombine.high %v6946_v11, %v6951_v60  ;;  %v1746_v35 = vcombine.high %v7039_v55, %v7025_v45 }
 0x1f7   : > { %v1551_v43 = vcombine.low %v6970_v61, %v7004_v48  ;;  %v2211_v23 = vcombine.high %v7028_v1, %v7014_v8  ;;  %v7052_v30 = vrot.slane %v1814_v41, %v6243_v36  ;;  %v7067_v62 = vrot.slane %v2263_v40, %v6237_v17 }
 0x1f8   : > { %v2195_v44 = vcombine.high %v6936_v37, %v6968_v14  ;;  %v9497_v50 = vcombine.high %v6436_v57, %v6439_v59  ;;  %v7078_v51 = vrot.slane %v1782_v53, %v6237_v17  ;;  %v7088_v14 = vrot.slane %v1798_v4, %v6237_v17 }
 0x1f9   : > { %5535 = vrot.lane.b32.xlu1 %v5534_v3, %s6068_s14  ;;  %5515 = vrot.lane.b32.xlu0 %v5514_v24, %s6072_s28  ;;  %v7045_v24 = vrot.slane %v2279_v38, %v6243_v36  ;;  %v7059_v58 = vrot.slane %v1551_v43, %v6237_v17  ;;  %v5524_v38 = vpack.i.bf16 %v1387_v26, %v918_v52 }
 0x1fa   : > { %v1474_v32 = vpop.permute.xlu0 %1473  ;;  %v1460_v22 = vpop.permute.xlu1 %1459  ;;  %v7075_v41 = vrot.slane %v9497_v50, %v6243_v36  ;;  %v7085_v37 = vrot.slane %v2211_v23, %v6243_v36  ;;  %v7091_v52 = vrot.slane %v2247_v63, %v6237_v17  ;;  %v1730_v26 = vcombine.high %v6878_v20, %v6906_v10 }
 0x1fb   : > { %v1567_v3 = vcombine.low %v7002_v49, %v1474_v32  ;;  %v5544_v40 = vpack.i.bf16 %v7045_v24, %v7052_v30  ;;  %v2179_v53 = vcombine.high %v6908_v31, %v6938_v42  ;;  %v7100_v23 = vrot.slane %v1746_v35, %v6243_v36 }
 0x1fc   : > { %v1714_v4 = vcombine.high %v6862_v46, %v6880_v6  ;;  %v2209_v20 = vrot.slane %v2195_v44, %v6237_v17  ;;  %v1568_v10 = vcombine.high %v7002_v49, %v1474_v32  ;;  %v1829_v35 = vcombine.low %v7078_v51, %v7088_v14 }
 0x1fd   : > { %v7062_v29 = vrot.slane %v1567_v3, %v6237_v17  ;;  %5540 = vrot.lane.b32.xlu1 %v5539_v12, %s6068_s14  ;;  %5520 = vrot.lane.b32.xlu0 %v5519_v13, %s6072_s28  ;;  %v2294_v3 = vcombine.low %v7091_v52, %v7067_v62  ;;  %v5549_v63 = vpack.i.bf16 %v7085_v37, %v7100_v23 }
 0x1fe   : > { %v1464_v7 = vpop.permute.xlu0 %1463  ;;  %v1468_v39 = vpop.permute.xlu1 %1467  ;;  %v2193_v46 = vrot.slane %v2179_v53, %v6237_v17  ;;  %v1552_v6 = vcombine.high %v6970_v61, %v7004_v48  ;;  %v1728_v48 = vrot.slane %v1714_v4, %v6237_v17  ;;  %v2295_v2 = vcombine.high %v7091_v52, %v7067_v62 }
 0x1ff   : > { %v1584_v43 = vcombine.high %v7059_v58, %v7062_v29  ;;  %v1483_v12 = vcombine.low %v1460_v22, %v1468_v39  ;;  %v1484_v13 = vcombine.high %v1460_v22, %v1468_v39  ;;  %v7140_v53 = vrot.slane %v2294_v3, %v6243_v36 }
 0x200   : > { %v1566_v4 = vrot.slane %v1552_v6, %v6237_v17  ;;  %v1830_v62 = vcombine.high %v7078_v51, %v7088_v14  ;;  %v7212_v51 = vrot.slane %v2295_v2, %v6243_v36 }
 0x201   : > { %5525 = vrot.lane.b32.xlu0 %v5524_v38, %s6067_s12  ;;  %5545 = vrot.lane.b32.xlu1 %v5544_v40, %s6071_s26  ;;  %v7111_v39 = vrot.slane %v1584_v43, %v6243_v36  ;;  %v1744_v38 = vrot.slane %v1730_v26, %v6237_v17  ;;  %v7120_v32 = vrot.slane %v1483_v12, %v6237_v17 }
 0x202   : > { %v1472_v31 = vpop.permute.xlu0 %1471  ;;  %v2387_v49 = vpop.permute.xlu1 %2386  ;;  %v7123_v44 = vrot.slane %v1484_v13, %v6237_v17  ;;  %v9498_v43 = vcombine.high %v6590_v0, %v6605_v34  ;;  %v2226_v40 = vcombine.low %v2193_v46, %v2209_v20  ;;  %v1582_v12 = vrot.slane %v1568_v10, %v6237_v17 }
 0x203   : > { %v1499_v42 = vcombine.low %v1464_v7, %v1472_v31  ;;  %v1500_v22 = vcombine.high %v1464_v7, %v1472_v31  ;;  %v5554_v0 = vpack.i.bf16 %v7075_v41, %v7111_v39  ;;  %v1761_v34 = vcombine.low %v1728_v48, %v1744_v38 }
 0x204   : > { %v7136_v61 = vrot.slane %v9498_v43, %v6237_v17  ;;  %v7158_v10 = vrot.slane %v1981_v9, %v6243_v36  ;;  %v7165_v18 = vrot.slane %v2226_v40, %v6243_v36  ;;  %v1599_v6 = vcombine.low %v1566_v4, %v1582_v12 }
 0x205   : > { %v7126_v7 = vrot.slane %v1499_v42, %v6237_v17  ;;  %v7129_v50 = vrot.slane %v1500_v22, %v6237_v17  ;;  %5550 = vrot.lane.b32.xlu1 %v5549_v63, %s6071_s26  ;;  %v7150_v42 = vrot.slane %v1829_v35, %v6243_v36  ;;  %v2227_v63 = vcombine.high %v2193_v46, %v2209_v20 }
 0x206   : > { %v2391_v26 = vpop.permute.xlu0 %2390  ;;  %v1996_v22 = vcombine.low %v6964_v25, %v7136_v61  ;;  %v2395_v43 = vpop.permute.xlu1 %2394  ;;  %v7173_v27 = vrot.slane %v1761_v34, %v6243_v36  ;;  %v1762_v20 = vcombine.high %v1728_v48, %v1744_v38  ;;  %v7225_v2 = vrot.slane %v1830_v62, %v6243_v36 }
 0x207   : > { %v1516_v13 = vcombine.high %v7120_v32, %v7126_v7  ;;  %v1531_v31 = vcombine.low %v7123_v44, %v7129_v50  ;;  %v5559_v35 = vpack.i.bf16 %v7140_v53, %v7150_v42  ;;  %v2476_v46 = vcombine.low %v2387_v49, %v2395_v43 }
 0x208   : > { %v7178_v40 = vrot.slane %v1996_v22, %v6243_v36  ;;  %v7185_v47 = vrot.slane %v2227_v63, %v6243_v36  ;;  %v7193_v22 = vrot.slane %v1599_v6, %v6243_v36  ;;  %v7209_v6 = vrot.slane %v1762_v20, %v6243_v36 }
 0x209   : > { %5555 = vrot.lane.b32.xlu1 %v5554_v0, %s6071_s26  ;;  %v7155_v3 = vrot.slane %v1516_v13, %v6243_v36  ;;  %v7170_v9 = vrot.slane %v1531_v31, %v6243_v36  ;;  %v5569_v31 = vpack.i.bf16 %v7165_v18, %v7173_v27  ;;  %v9500_v62 = vcombine.high %v6543_v33, %v6534_v28 }
 0x20a   : > { %v2399_v19 = vpop.permute.xlu0 %2398  ;;  %v2385_v52 = vpop.permute.xlu1 %2384 }
 0x20b   : > { %v2492_v0 = vcombine.low %v2391_v26, %v2399_v19  ;;  %v5564_v13 = vpack.i.bf16 %v7158_v10, %v7155_v3  ;;  %v2493_v34 = vcombine.high %v2391_v26, %v2399_v19  ;;  %v5584_v48 = vpack.i.bf16 %v7178_v40, %v7170_v9 }
 0x20c   : > { %v2477_v19 = vcombine.high %v2387_v49, %v2395_v43  ;;  %v7204_v26 = vrot.slane %v2476_v46, %v6237_v17  ;;  %v5589_v49 = vpack.i.bf16 %v7185_v47, %v7209_v6 }
 0x20d   : > { %5560 = vrot.lane.b32.xlu1 %v5559_v35, %s6069_s16  ;;  %5565 = vrot.lane.b32.xlu0 %v5564_v13, %s6071_s26  ;;  %v7188_v38 = vrot.slane %v2492_v0, %v6237_v17  ;;  %v9499_v35 = vcombine.low %v6543_v33, %v6534_v28  ;;  %v1600_v0 = vcombine.high %v1566_v4, %v1582_v12 }
 0x20e   : > { %v2389_v54 = vpop.permute.xlu0 %2388  ;;  %v2507_v14 = vrot.slane %v2493_v34, %v6237_v17  ;;  %v2278_v12 = vcombine.low %v6991_v21, %v6977_v16  ;;  %v1532_v4 = vcombine.high %v7123_v44, %v7129_v50  ;;  %v2393_v20 = vpop.permute.xlu1 %2392  ;;  %v7243_v16 = vrot.slane %v9500_v62, %v6243_v36 }
 0x20f   : > { %v7201_v63 = vrot.slane %v9499_v35, %v6243_v36  ;;  %v2509_v13 = vcombine.high %v7204_v26, %v7188_v38  ;;  %v7232_v34 = vrot.slane %v1600_v0, %v6243_v36  ;;  %v1997_v21 = vcombine.high %v6964_v25, %v7136_v61 }
 0x210   : > { %v1813_v44 = vcombine.low %v7000_v15, %v6982_v5  ;;  %v2408_v50 = vcombine.low %v2385_v52, %v2393_v20  ;;  %v7253_v0 = vrot.slane %v2278_v12, %v6243_v36  ;;  %v7258_v33 = vrot.slane %v1532_v4, %v6243_v36 }
 0x211   : > { %5585 = vrot.lane.b32.xlu1 %v5584_v48, %s6069_s16  ;;  %5570 = vrot.lane.b32.xlu0 %v5569_v31, %s6069_s16  ;;  %v5574_v43 = vpack.i.bf16 %v7201_v63, %v7193_v22  ;;  %v2491_v31 = vrot.slane %v2477_v19, %v6237_v17  ;;  %v5579_v19 = vpack.i.bf16 %v7212_v51, %v7225_v2 }
 0x212   : > { %v2397_v46 = vpop.permute.xlu0 %2396  ;;  %v5594_v28 = vpack.i.bf16 %v7243_v16, %v7232_v34  ;;  %v7267_v15 = vrot.slane %v1997_v21, %v6243_v36  ;;  %v2409_v12 = vcombine.high %v2385_v52, %v2393_v20 }
 0x213   : > { %v2524_v48 = vcombine.low %v2491_v31, %v2507_v14  ;;  %v2424_v35 = vcombine.low %v2389_v54, %v2397_v46  ;;  %v2425_v25 = vcombine.high %v2389_v54, %v2397_v46  ;;  %v9501_v54 = vmov 0.0  }
 0x214   : > { %v5599_v4 = vpack.i.bf16 %v7267_v15, %v7258_v33  ;;  %v2423_v20 = vrot.slane %v2409_v12, %v6237_v17 }
 0x215   : > { %5590 = vrot.lane.b32.xlu1 %v5589_v49, %s6070_s25  ;;  %5575 = vrot.lane.b32.xlu0 %v5574_v43, %s6069_s16  ;;  %v7237_v49 = vrot.slane %v2509_v13, %v6243_v36  ;;  %v2525_v13 = vcombine.high %v2491_v31, %v2507_v14  ;;  %v7261_v61 = vrot.slane %v2424_v35, %v6237_v17 }
 0x216   : > { %v7264_v5 = vrot.slane %v2524_v48, %v6243_v36  ;;  %v7270_v43 = vrot.slane %v1813_v44, %v6243_v36  ;;  %v2310_v14 = vcombine.high %v7253_v0, %v9501_v54  ;;  %v2439_v46 = vrot.slane %v2425_v25, %v6237_v17 }
 0x217   : > { %v7286_v52 = vrot.slane %v2525_v13, %v6243_v36  ;;  %v2210_v35 = vcombine.low %v7028_v1, %v7014_v8  ;;  %v2081_v13 = vcombine.high %v7075_v41, %v9501_v54  ;;  %v2312_v8 = vcombine.high %v7140_v53, %v9501_v54 }
 0x218   : > { %v1845_v48 = vcombine.high %v7270_v43, %v9501_v54  ;;  %v2456_v62 = vcombine.low %v2423_v20, %v2439_v46  ;;  %v2457_v25 = vcombine.high %v2423_v20, %v2439_v46  ;;  %v2013_v46 = vcombine.high %v7158_v10, %v9501_v54 }
 0x219   : > { %5580 = vrot.lane.b32.xlu0 %v5579_v19, %s6070_s25  ;;  %2577 = vrot.lane.b32.xlu1 %v7237_v49, %s6071_s26  ;;  %v7273_v19 = vrot.slane %v2408_v50, %v6237_v17  ;;  %v1616_v50 = vcombine.high %v7111_v39, %v9501_v54  ;;  %v7309_v1 = vrot.slane %v2210_v35, %v6243_v36 }
 0x21a   : > { %v5604_v21 = vpack.i.bf16 %v2310_v14, %v1845_v48  ;;  %v1583_v39 = vcombine.low %v7059_v58, %v7062_v29  ;;  %v1548_v58 = vcombine.high %v7155_v3, %v9501_v54  ;;  %v7332_v29 = vrot.slane %v2457_v25, %v6243_v36 }
 0x21b   : > { %v2441_v31 = vcombine.high %v7273_v19, %v7261_v61  ;;  %v5634_v12 = vpack.i.bf16 %v2081_v13, %v1616_v50  ;;  %v9502_v3 = vcombine.low %v6436_v57, %v6439_v59  ;;  %v2244_v20 = vcombine.high %v7165_v18, %v9501_v54 }
 0x21c   : > { %v7327_v53 = vrot.slane %v1583_v39, %v6243_v36  ;;  %v1515_v10 = vcombine.low %v7120_v32, %v7126_v7  ;;  %v5644_v48 = vpack.i.bf16 %v2013_v46, %v1548_v58  ;;  %v1779_v57 = vcombine.high %v7173_v27, %v9501_v54 }
 0x21d   : > { %5595 = vrot.lane.b32.xlu0 %v5594_v28, %s6070_s25  ;;  %2585 = vrot.lane.b32.xlu1 %v7264_v5, %s6069_s16  ;;  %v7297_v44 = vrot.slane %v2441_v31, %v6243_v36  ;;  %v1745_v28 = vcombine.low %v7039_v55, %v7025_v45  ;;  %v7316_v45 = vrot.slane %v2456_v62, %v6243_v36 }
 0x21e   : > { %v1847_v55 = vcombine.high %v7150_v42, %v9501_v54  ;;  %v2242_v42 = vcombine.high %v7309_v1, %v9501_v54  ;;  %v1615_v62 = vcombine.high %v7327_v53, %v9501_v54  ;;  %v2311_v18 = vcombine.high %v7045_v24, %v9501_v54 }
 0x21f   : > { %v7321_v14 = vrot.slane %v1745_v28, %v6243_v36  ;;  %v7366_v32 = vrot.slane %v1515_v10, %v6243_v36  ;;  %v5649_v7 = vpack.i.bf16 %v2244_v20, %v1779_v57  ;;  %v2014_v27 = vcombine.high %v7178_v40, %v9501_v54 }
 0x220   : > { %v5639_v41 = vpack.i.bf16 %v2312_v8, %v1847_v55  ;;  %v2245_v8 = vcombine.high %v7185_v47, %v9501_v54  ;;  %v2243_v39 = vcombine.high %v7085_v37, %v9501_v54  ;;  %v2508_v25 = vcombine.low %v7204_v26, %v7188_v38 }
 0x221   : > { %5600 = vrot.lane.b32.xlu0 %v5599_v4, %s6070_s25  ;;  %2593 = vrot.lane.b32.xlu1 %v7286_v52, %s6070_s25  ;;  %v1777_v31 = vcombine.high %v7321_v14, %v9501_v54  ;;  %v7347_v4 = vrot.slane %v9502_v3, %v6243_v36  ;;  %v1778_v58 = vcombine.high %v7100_v23, %v9501_v54 }
 0x222   : > { %v2083_v37 = vcombine.high %v7243_v16, %v9501_v54  ;;  %v7408_v46 = vrot.slane %v2508_v25, %v6243_v36  ;;  %v2082_v23 = vcombine.high %v7201_v63, %v9501_v54  ;;  %v2313_v10 = vcombine.high %v7212_v51, %v9501_v54 }
 0x223   : > { %v5609_v35 = vpack.i.bf16 %v2242_v42, %v1777_v31  ;;  %v2080_v59 = vcombine.high %v7347_v4, %v9501_v54  ;;  %v5629_v42 = vpack.i.bf16 %v2243_v39, %v1778_v58  ;;  %v2440_v63 = vcombine.low %v7273_v19, %v7261_v61 }
 0x224   : > { %v2540_v3 = vcombine.high %v7408_v46, %v9501_v54  ;;  %v1550_v51 = vcombine.high %v7258_v33, %v9501_v54  ;;  %v2542_v19 = vcombine.high %v7264_v5, %v9501_v54  ;;  %v2648_v5 = vld [vmem:[%s9455_s2] sm:$0xf] }
 0x225   : > { %5605 = vrot.lane.b32.xlu1 %v5604_v21, %s6073_s29  ;;  %2549 = vrot.lane.b32.xlu0 %v7297_v44, %s6071_s26  ;;  %v1980_v21 = vcombine.low %v6946_v11, %v6951_v60  ;;  %v5614_v50 = vpack.i.bf16 %v2080_v59, %v1615_v62  ;;  %v1549_v11 = vcombine.high %v7170_v9, %v9501_v54 }
 0x226   : > { %v1846_v60 = vcombine.high %v7052_v30, %v9501_v54  ;;  %v1547_v9 = vcombine.high %v7366_v32, %v9501_v54  ;;  %v1780_v30 = vcombine.high %v7209_v6, %v9501_v54  ;;  %v2541_v62 = vcombine.high %v7237_v49, %v9501_v54 }
 0x227   : > { %v7377_v24 = vrot.slane %v1980_v21, %v6243_v36  ;;  %v5664_v28 = vpack.i.bf16 %v2014_v27, %v1549_v11  ;;  %v6080_v27 = vmov 0  }
 0x228   : > { %v5619_v13 = vpack.i.bf16 %v2311_v18, %v1846_v60  ;;  %v7445_v18 = vrot.slane %v2440_v63, %v6243_v36  ;;  %v2473_v60 = vcombine.high %v7297_v44, %v9501_v54  ;;  %5684 = vset.pattern.permute.xlu1 %v6080_v27  ;;  %5965 = vset.pattern.permute.xlu0 %v6080_v27  ;;  %v9504_v63 = vld [vmem:[#allocation9_spill] sm:$0xff] }
 0x229   : > { %5635 = vrot.lane.b32.xlu1 %v5634_v12, %s6072_s28  ;;  %2557 = vrot.lane.b32.xlu0 %v7316_v45, %s6069_s16  ;;  %v2012_v40 = vcombine.high %v7377_v24, %v9501_v54  ;;  %v5669_v12 = vpack.i.bf16 %v2245_v8, %v1780_v30  ;;  %v2475_v44 = vcombine.high %v7332_v29, %v9501_v54 }
 0x22b   : > { %v5624_v55 = vpack.i.bf16 %v2012_v40, %v1547_v9 }
 0x22d   : > { %5640 = vrot.lane.b32.xlu1 %v5639_v41, %s6067_s12  ;;  %2565 = vrot.lane.b32.xlu0 %v7332_v29, %s6070_s25  ;;  %v1618_v41 = vcombine.high %v7232_v34, %v9501_v54  ;;  %v1617_v34 = vcombine.high %v7193_v22, %v9501_v54  ;;  %v1848_v22 = vcombine.high %v7225_v2, %v9501_v54 }
 0x22e   : > { %v2015_v2 = vcombine.high %v7267_v15, %v9501_v54  ;;  %v2543_v15 = vcombine.high %v7286_v52, %v9501_v54 }
 0x22f   : > { %v5674_v26 = vpack.i.bf16 %v2083_v37, %v1618_v41  ;;  %v5654_v20 = vpack.i.bf16 %v2082_v23, %v1617_v34  ;;  %v5659_v21 = vpack.i.bf16 %v2313_v10, %v1848_v22  ;;  %v9503_v23 = vld [vmem:[#allocation8_spill] sm:$0xff] }
 0x230   : > { %v5679_v59 = vpack.i.bf16 %v2015_v2, %v1550_v51 }
 0x231   : > { %5645 = vrot.lane.b32.xlu1 %v5644_v48, %s6072_s28  ;;  %5610 = vrot.lane.b32.xlu0 %v5609_v35, %s6073_s29 }
 0x235   : > { %5650 = vrot.lane.b32.xlu1 %v5649_v7, %s6067_s12  ;;  %5615 = vrot.lane.b32.xlu0 %v5614_v50, %s6073_s29  ;;  %v2472_v7 = vcombine.high %v7445_v18, %v9501_v54 }
 0x237   : > { %v7393_v47 = vpop.permute.xlu1 %5405 }
 0x238   : > { %v5408_v39 = vunpack.i.h.bf16 %v7393_v47  ;;  %v5407_v25 = vunpack.i.l.bf16 %v7393_v47 }
 0x239   : > { %5665 = vrot.lane.b32.xlu1 %v5664_v28, %s6067_s12  ;;  %5620 = vrot.lane.b32.xlu0 %v5619_v13, %s6072_s28  ;;  %v2474_v13 = vcombine.high %v7316_v45, %v9501_v54 }
 0x23d   : > { %5670 = vrot.lane.b32.xlu1 %v5669_v12, %s6068_s14  ;;  %5625 = vrot.lane.b32.xlu0 %v5624_v55, %s6073_s29 }
 0x23f   : > { %v7403_v6 = vpop.permute.xlu0 %5420  ;;  %v7405_v38 = vpop.permute.xlu1 %5410 }
 0x240   : > { %v5423_v45 = vunpack.i.h.bf16 %v7403_v6  ;;  %v5422_v12 = vunpack.i.l.bf16 %v7403_v6  ;;  %v5413_v29 = vunpack.i.h.bf16 %v7405_v38  ;;  %v5412_v58 = vunpack.i.l.bf16 %v7405_v38 }
 0x241   : > { %5675 = vrot.lane.b32.xlu1 %v5674_v26, %s6068_s14  ;;  %5630 = vrot.lane.b32.xlu0 %v5629_v42, %s6072_s28 }
 0x243   : > { %v7416_v16 = vpop.permute.xlu0 %5425  ;;  %v7418_v31 = vpop.permute.xlu1 %5415 }
 0x244   : > { %v5428_v37 = vunpack.i.h.bf16 %v7416_v16  ;;  %v5427_v26 = vunpack.i.l.bf16 %v7416_v16  ;;  %v5418_v38 = vunpack.i.h.bf16 %v7418_v31  ;;  %v5417_v10 = vunpack.i.l.bf16 %v7418_v31 }
 0x245   : > { %2573 = vrot.lane.b32.xlu1 %v2540_v3, %s6073_s29  ;;  %5655 = vrot.lane.b32.xlu0 %v5654_v20, %s6067_s12 }
 0x247   : > { %v7430_v48 = vpop.permute.xlu0 %5430  ;;  %v7432_v35 = vpop.permute.xlu1 %5440 }
 0x248   : > { %v5433_v16 = vunpack.i.h.bf16 %v7430_v48  ;;  %v5432_v22 = vunpack.i.l.bf16 %v7430_v48 }
 0x249   : > { %2581 = vrot.lane.b32.xlu1 %v2541_v62, %s6072_s28  ;;  %5660 = vrot.lane.b32.xlu0 %v5659_v21, %s6068_s14  ;;  %v9505_v62 = vld [vmem:[#allocation10_spill] sm:$0xff] }
 0x24b   : > { %v5436_v57 = vpop.permute.xlu0 %5435  ;;  %v5446_v61 = vpop.permute.xlu1 %5445 }
 0x24c   : > { %v5438_v30 = vunpack.i.h.bf16 %v5436_v57  ;;  %v5437_v40 = vunpack.i.l.bf16 %v5436_v57  ;;  %v5448_v55 = vunpack.i.h.bf16 %v5446_v61  ;;  %v5447_v41 = vunpack.i.l.bf16 %v5446_v61 }
 0x24d   : > { %2589 = vrot.lane.b32.xlu1 %v2542_v19, %s6067_s12  ;;  %5680 = vrot.lane.b32.xlu0 %v5679_v59, %s6068_s14  ;;  %v5443_v57 = vunpack.i.h.bf16 %v7432_v35  ;;  %v5442_v61 = vunpack.i.l.bf16 %v7432_v35 }
 0x24e   : > { %v1445_v34 = vsel %vm731_vm5, %v6748_v56, %v5438_v30  ;;  %v976_v3 = vsel %vm731_vm5, %v9503_v23, %v5437_v40  ;;  %v1206_v56 = vsel %vm731_vm5, %v9504_v63, %v5448_v55  ;;  %v732_v21 = vsel %vm731_vm5, %v9505_v62, %v5447_v41 }
 0x24f   : > { %v7449_v49 = vpop.permute.xlu0 %5450  ;;  %v7451_v33 = vpop.permute.xlu1 %5455  ;;  %v977_v19 = vsel %vm733_vm6, %v976_v3, %v5407_v25  ;;  %v1446_v31 = vsel %vm733_vm6, %v1445_v34, %v5408_v39 }
 0x250   : > { %v5458_v6 = vunpack.i.h.bf16 %v7451_v33  ;;  %v5457_v20 = vunpack.i.l.bf16 %v7451_v33  ;;  %v5452_v27 = vunpack.i.l.bf16 %v7449_v49 }
 0x251   : > { %2597 = vrot.lane.b32.xlu1 %v2543_v15, %s6068_s14  ;;  %2545 = vrot.lane.b32.xlu0 %v2472_v7, %s6073_s29 }
 0x252   : > { %v978_v33 = vsel %vm735_vm7, %v977_v19, %v5457_v20  ;;  %v1447_v15 = vsel %vm735_vm7, %v1446_v31, %v5458_v6 }
 0x253   : > { %v7462_v50 = vpop.permute.xlu0 %5460  ;;  %v7464_v11 = vpop.permute.xlu1 %5470  ;;  %v979_v55 = vsel %vm737_vm8, %v978_v33, %v5417_v10 }
 0x254   : > { %v5463_v25 = vunpack.i.h.bf16 %v7462_v50 }
 0x255   : > { %2553 = vrot.lane.b32.xlu0 %v2473_v60, %s6072_s28  ;;  %2651 = vperm.xlu1 %5684, %v2648_v5   ;;  %v5453_v60 = vunpack.i.h.bf16 %v7449_v49  ;;  %v1448_v49 = vsel %vm737_vm8, %v1447_v15, %v5418_v38  ;;  %v9506_v15 = vld [vmem:[#allocation12_spill] sm:$0xff] }
 0x257   : > { %v5466_v52 = vpop.permute.xlu0 %5465  ;;  %v7469_v28 = vpop.permute.xlu1 %5480 }
 0x258   : > { %v5468_v51 = vunpack.i.h.bf16 %v5466_v52  ;;  %v5467_v2 = vunpack.i.l.bf16 %v5466_v52  ;;  %v734_v52 = vsel %vm733_vm6, %v732_v21, %v5412_v58  ;;  %v5473_v21 = vunpack.i.h.bf16 %v7464_v11 }
 0x259   : > { %2561 = vrot.lane.b32.xlu0 %v2474_v13, %s6067_s12  ;;  %v1207_v13 = vsel %vm733_vm6, %v1206_v56, %v5413_v29  ;;  %v5482_v31 = vunpack.i.l.bf16 %v7469_v28 }
 0x25a   : > { %v1208_v30 = vsel %vm735_vm7, %v1207_v13, %v5468_v51  ;;  %v5472_v51 = vunpack.i.l.bf16 %v7464_v11  ;;  %v9508_v13 = vld [vmem:[#allocation13_spill] sm:$0xff] }
 0x25b   : > { %v7474_v8 = vpop.permute.xlu0 %5475  ;;  %v7476_v9 = vpop.permute.xlu1 %5485 }
 0x25c   : > { %v5478_v7 = vunpack.i.h.bf16 %v7474_v8  ;;  %v5477_v5 = vunpack.i.l.bf16 %v7474_v8  ;;  %v5488_v40 = vunpack.i.h.bf16 %v7476_v9  ;;  %v5487_v39 = vunpack.i.l.bf16 %v7476_v9 }
 0x25d   : > { %2569 = vrot.lane.b32.xlu0 %v2475_v44, %s6068_s14  ;;  %v736_v44 = vsel %vm735_vm7, %v734_v52, %v5467_v2  ;;  %v5462_v8 = vunpack.i.l.bf16 %v7462_v50  ;;  %v1209_v9 = vsel %vm737_vm8, %v1208_v30, %v5423_v45  ;;  %v5483_v45 = vunpack.i.h.bf16 %v7469_v28 }
 0x25e   : > { %v980_v29 = vsel %vm739_vm9, %v979_v55, %v5477_v5  ;;  %v1449_v34 = vsel %vm739_vm9, %v1448_v49, %v5478_v7  ;;  %v738_v6 = vsel %vm737_vm8, %v736_v44, %v5422_v12  ;;  %v1210_v10 = vsel %vm739_vm9, %v1209_v9, %v5488_v40  ;;  %v9507_v5 = vld [vmem:[#allocation11_spill] sm:$0xff]  ;;  %v9509_v44 = vld [vmem:[#allocation14_spill] sm:$0xff] }
 0x25f   : > { %v7489_v42 = vpop.permute.xlu0 %5490  ;;  %v5496_v47 = vpop.permute.xlu1 %5495  ;;  %v740_v56 = vsel %vm739_vm9, %v738_v6, %v5487_v39  ;;  %v1450_v12 = vsel %vm741_vm10, %v1449_v34, %v5428_v37 }
 0x260   : > { %v5498_v23 = vunpack.i.h.bf16 %v5496_v47  ;;  %v5497_v3 = vunpack.i.l.bf16 %v5496_v47  ;;  %v981_v47 = vsel %vm741_vm10, %v980_v29, %v5427_v26  ;;  %v742_v52 = vsel %vm741_vm10, %v740_v56, %v5432_v22 }
 0x261   : > { %v1211_v26 = vsel %vm741_vm10, %v1210_v10, %v5433_v16  ;;  %v5493_v39 = vunpack.i.h.bf16 %v7489_v42  ;;  %v5492_v55 = vunpack.i.l.bf16 %v7489_v42 }
 0x262   : > { %v1451_v33 = vsel %vm743_vm11, %v1450_v12, %v5498_v23 }
 0x263   : > { %v7509_v59 = vpop.permute.xlu0 %5500  ;;  %v5506_v48 = vpop.permute.xlu1 %5505  ;;  %v2622_v34 = vrot.slane %v1451_v33, 4 }
 0x264   : > { %v5508_v20 = vunpack.i.h.bf16 %v5506_v48  ;;  %v5507_v63 = vunpack.i.l.bf16 %v5506_v48  ;;  %v982_v48 = vsel %vm743_vm11, %v981_v47, %v5497_v3  ;;  %v5503_v22 = vunpack.i.h.bf16 %v7509_v59 }
 0x265   : > { %v2616_v29 = vrot.slane %v982_v48, 4  ;;  %v5502_v16 = vunpack.i.l.bf16 %v7509_v59 }
 0x266   : > { %v1452_v7 = vsel %vm731_vm5, %v9506_v15, %v5508_v20  ;;  %v983_v11 = vsel %vm731_vm5, %v9507_v5, %v5507_v63  ;;  %v1212_v12 = vsel %vm743_vm11, %v1211_v26, %v5503_v22 }
 0x267   : > { %v5511_v41 = vpop.permute.xlu0 %5510  ;;  %v7527_v58 = vpop.permute.xlu1 %5530  ;;  %v984_v6 = vsel %vm733_vm6, %v983_v11, %v5442_v61  ;;  %v1453_v9 = vsel %vm733_vm6, %v1452_v7, %v5443_v57  ;;  %v744_v47 = vsel %vm743_vm11, %v742_v52, %v5502_v16 }
 0x268   : > { %v5513_v38 = vunpack.i.h.bf16 %v5511_v41  ;;  %v5512_v62 = vunpack.i.l.bf16 %v5511_v41  ;;  %v5532_v61 = vunpack.i.l.bf16 %v7527_v58 }
 0x26a   : > { %v1213_v37 = vsel %vm731_vm5, %v9508_v13, %v5513_v38  ;;  %v745_v28 = vsel %vm731_vm5, %v9509_v44, %v5512_v62  ;;  %v5533_v38 = vunpack.i.h.bf16 %v7527_v58 }
 0x26b   : > { %v5516_v2 = vpop.permute.xlu0 %5515  ;;  %v5536_v19 = vpop.permute.xlu1 %5535  ;;  %v746_v42 = vsel %vm733_vm6, %v745_v28, %v5452_v27  ;;  %v1214_v20 = vsel %vm733_vm6, %v1213_v37, %v5453_v60 }
 0x26c   : > { %v5518_v30 = vunpack.i.h.bf16 %v5516_v2  ;;  %v5517_v40 = vunpack.i.l.bf16 %v5516_v2  ;;  %v5538_v15 = vunpack.i.h.bf16 %v5536_v19 }
 0x26e   : > { %v985_v63 = vsel %vm735_vm7, %v984_v6, %v5517_v40  ;;  %v1454_v56 = vsel %vm735_vm7, %v1453_v9, %v5518_v30 }
 0x26f   : > { %v5521_v49 = vpop.permute.xlu0 %5520  ;;  %v5541_v41 = vpop.permute.xlu1 %5540  ;;  %v986_v48 = vsel %vm737_vm8, %v985_v63, %v5462_v8  ;;  %v1455_v58 = vsel %vm737_vm8, %v1454_v56, %v5463_v25 }
 0x270   : > { %v5523_v23 = vunpack.i.h.bf16 %v5521_v49  ;;  %v5522_v3 = vunpack.i.l.bf16 %v5521_v49  ;;  %v5543_v26 = vunpack.i.h.bf16 %v5541_v41  ;;  %v5542_v13 = vunpack.i.l.bf16 %v5541_v41 }
 0x272   : > { %v747_v59 = vsel %vm735_vm7, %v746_v42, %v5522_v3  ;;  %v1215_v10 = vsel %vm735_vm7, %v1214_v20, %v5523_v23 }
 0x273   : > { %v5526_v62 = vpop.permute.xlu0 %5525  ;;  %v7571_v35 = vpop.permute.xlu1 %5545  ;;  %v748_v57 = vsel %vm737_vm8, %v747_v59, %v5472_v51  ;;  %v1216_v27 = vsel %vm737_vm8, %v1215_v10, %v5473_v21  ;;  %v5537_v21 = vunpack.i.l.bf16 %v5536_v19 }
 0x274   : > { %v5528_v60 = vunpack.i.h.bf16 %v5526_v62  ;;  %v5527_v2 = vunpack.i.l.bf16 %v5526_v62  ;;  %v749_v33 = vsel %vm739_vm9, %v748_v57, %v5532_v61  ;;  %v1217_v51 = vsel %vm739_vm9, %v1216_v27, %v5533_v38 }
 0x275   : > { %v750_v52 = vsel %vm741_vm10, %v749_v33, %v5492_v55  ;;  %v1218_v50 = vsel %vm741_vm10, %v1217_v51, %v5493_v39  ;;  %v2639_v55 = vsel %vm2638_vm12, %v744_v47, %v2616_v29  ;;  %v5548_v47 = vunpack.i.h.bf16 %v7571_v35 }
 0x276   : > { %v987_v7 = vsel %vm739_vm9, %v986_v48, %v5527_v2  ;;  %v1456_v5 = vsel %vm739_vm9, %v1455_v58, %v5528_v60  ;;  %v751_v30 = vsel %vm743_vm11, %v750_v52, %v5542_v13  ;;  %v1219_v40 = vsel %vm743_vm11, %v1218_v50, %v5543_v26 }
 0x277   : > { %v7587_v11 = vpop.permute.xlu1 %5550  ;;  %v988_v8 = vsel %vm741_vm10, %v987_v7, %v5482_v31  ;;  %v1457_v25 = vsel %vm741_vm10, %v1456_v5, %v5483_v45  ;;  %v2641_v31 = vsel %vm2638_vm12, %v1212_v12, %v2622_v34  ;;  %v5547_v12 = vunpack.i.l.bf16 %v7571_v35 }
 0x278   : > { %v989_v37 = vsel %vm743_vm11, %v988_v8, %v5537_v21  ;;  %v1458_v19 = vsel %vm743_vm11, %v1457_v25, %v5538_v15  ;;  %v5330_v22 = vpack.c.bf16 %v2641_v31, %v2639_v55  ;;  %v5553_v48 = vunpack.i.h.bf16 %v7587_v11 }
 0x279   : > { %v2617_v44 = vrot.slane %v989_v37, 4  ;;  %v2623_v28 = vrot.slane %v1458_v19, 4  ;;  %v5552_v58 = vunpack.i.l.bf16 %v7587_v11 }
 0x27b   : > { %v7599_v49 = vpop.permute.xlu1 %5555  ;;  %v2640_v45 = vsel %vm2638_vm12, %v751_v30, %v2617_v44  ;;  %v2642_v39 = vsel %vm2638_vm12, %v1219_v40, %v2623_v28 }
 0x27c   : > { %v5328_v41 = vpack.c.bf16 %v2642_v39, %v2640_v45  ;;  %v5558_v33 = vunpack.i.h.bf16 %v7599_v49  ;;  %v5557_v51 = vunpack.i.l.bf16 %v7599_v49 }
 0x27e   : > { %5329 = vmatprep.subr.bf16.mxu0 %v5328_v41 }
 0x27f   : > { %v7603_v16 = vpop.permute.xlu0 %5565  ;;  %v7605_v23 = vpop.permute.xlu1 %5560  ;;  %5331 = vmatpush1.bf16.msra.mxu0 %v5330_v22 }
 0x280   : > { %v5568_v15 = vunpack.i.h.bf16 %v7603_v16  ;;  %v5567_v7 = vunpack.i.l.bf16 %v7603_v16  ;;  %v5563_v5 = vunpack.i.h.bf16 %v7605_v23  ;;  %v5562_v52 = vunpack.i.l.bf16 %v7605_v23 }
 0x283   : > { %v7607_v3 = vpop.permute.xlu0 %5570  ;;  %v7609_v6 = vpop.permute.xlu1 %5585 }
 0x284   : > { %v5573_v35 = vunpack.i.h.bf16 %v7607_v3  ;;  %v5572_v50 = vunpack.i.l.bf16 %v7607_v3  ;;  %v5587_v25 = vunpack.i.l.bf16 %v7609_v6 }
 0x287   : > { %v7611_v29 = vpop.permute.xlu0 %5575  ;;  %v7613_v34 = vpop.permute.xlu1 %5590 }
 0x288   : > { %v5578_v37 = vunpack.i.h.bf16 %v7611_v29  ;;  %v5577_v19 = vunpack.i.l.bf16 %v7611_v29  ;;  %v5592_v40 = vunpack.i.l.bf16 %v7613_v34 }
 0x28b   : > { %v7615_v9 = vpop.permute.xlu0 %5580  ;;  %v7617_v42 = vpop.permute.xlu1 %2577 }
 0x28c   : > { %v5582_v45 = vunpack.i.l.bf16 %v7615_v9 }
 0x28f   : > { %v7619_v20 = vpop.permute.xlu0 %5595  ;;  %v7621_v63 = vpop.permute.xlu1 %2585 }
 0x293   : > { %v7623_v56 = vpop.permute.xlu0 %5600  ;;  %v7625_v59 = vpop.permute.xlu1 %2593 }
 0x297   : > { %v7627_v10 = vpop.permute.xlu0 %2549  ;;  %v5606_v38 = vpop.permute.xlu1 %5605 }
 0x298   : > { %v5607_v21 = vunpack.i.l.bf16 %v5606_v38  ;;  %v5608_v8 = vunpack.i.h.bf16 %v5606_v38 }
 0x29a   : > { %v1912_v55 = vsel %vm731_vm5, %v7270_v43, %v5607_v21  ;;  %v2377_v39 = vsel %vm731_vm5, %v7253_v0, %v5608_v8 }
 0x29b   : > { %v7629_v61 = vpop.permute.xlu0 %2557  ;;  %v7631_v62 = vpop.permute.xlu1 %5635  ;;  %v1913_v0 = vsel %vm733_vm6, %v1912_v55, %v5547_v12 }
 0x29c   : > { %v5637_v22 = vunpack.i.l.bf16 %v7631_v62 }
 0x29f   : > { %v7633_v57 = vpop.permute.xlu0 %2565  ;;  %v7635_v27 = vpop.permute.xlu1 %5640 }
 0x2a0   : > { %v5643_v29 = vunpack.i.h.bf16 %v7635_v27 }
 0x2a3   : > { %v5611_v60 = vpop.permute.xlu0 %5610  ;;  %v7637_v2 = vpop.permute.xlu1 %5645 }
 0x2a4   : > { %v5612_v31 = vunpack.i.l.bf16 %v5611_v60  ;;  %v5613_v41 = vunpack.i.h.bf16 %v5611_v60  ;;  %v5638_v60 = vunpack.i.h.bf16 %v7631_v62  ;;  %v5647_v12 = vunpack.i.l.bf16 %v7637_v2 }
 0x2a6   : > { %v1905_v8 = vsel %vm731_vm5, %v7321_v14, %v5612_v31 }
 0x2a7   : > { %v5616_v26 = vpop.permute.xlu0 %5615  ;;  %v7653_v13 = vpop.permute.xlu1 %5650 }
 0x2a8   : > { %v5618_v44 = vunpack.i.h.bf16 %v5616_v26  ;;  %v5617_v28 = vunpack.i.l.bf16 %v5616_v26  ;;  %v2378_v26 = vsel %vm733_vm6, %v2377_v39, %v5548_v47  ;;  %v5653_v39 = vunpack.i.h.bf16 %v7653_v13 }
 0x2aa   : > { %v2147_v43 = vsel %vm731_vm5, %v7347_v4, %v5618_v44  ;;  %v1682_v21 = vsel %vm731_vm5, %v7327_v53, %v5617_v28  ;;  %v5642_v4 = vunpack.i.l.bf16 %v7635_v27  ;;  %v2370_v53 = vsel %vm731_vm5, %v7309_v1, %v5613_v41 }
 0x2ab   : > { %v5621_v30 = vpop.permute.xlu0 %5620  ;;  %v7669_v11 = vpop.permute.xlu1 %5665  ;;  %v5648_v44 = vunpack.i.h.bf16 %v7637_v2  ;;  %v1683_v28 = vsel %vm733_vm6, %v1682_v21, %v5557_v51  ;;  %v2148_v14 = vsel %vm733_vm6, %v2147_v43, %v5558_v33  ;;  %v1906_v27 = vsel %vm733_vm6, %v1905_v8, %v5552_v58 }
 0x2ac   : > { %v5622_v49 = vunpack.i.l.bf16 %v5621_v30  ;;  %v5623_v38 = vunpack.i.h.bf16 %v5621_v30  ;;  %v5652_v1 = vunpack.i.l.bf16 %v7653_v13  ;;  %v2371_v2 = vsel %vm733_vm6, %v2370_v53, %v5553_v48 }
 0x2ad   : > { %v2149_v43 = vsel %vm735_vm7, %v2148_v14, %v5638_v60  ;;  %v5668_v21 = vunpack.i.h.bf16 %v7669_v11 }
 0x2ae   : > { %v1914_v62 = vsel %vm735_vm7, %v1913_v0, %v5622_v49  ;;  %v2379_v41 = vsel %vm735_vm7, %v2378_v26, %v5623_v38  ;;  %v1684_v49 = vsel %vm735_vm7, %v1683_v28, %v5637_v22 }
 0x2af   : > { %v5626_v30 = vpop.permute.xlu0 %5625  ;;  %v7689_v55 = vpop.permute.xlu1 %5670  ;;  %v1915_v58 = vsel %vm737_vm8, %v1914_v62, %v5562_v52  ;;  %v5667_v52 = vunpack.i.l.bf16 %v7669_v11  ;;  %v1685_v16 = vsel %vm737_vm8, %v1684_v49, %v5577_v19 }
 0x2b0   : > { %v5628_v47 = vunpack.i.h.bf16 %v5626_v30  ;;  %v5627_v31 = vunpack.i.l.bf16 %v5626_v30  ;;  %v5673_v60 = vunpack.i.h.bf16 %v7689_v55 }
 0x2b2   : > { %v2140_v33 = vsel %vm731_vm5, %v7377_v24, %v5628_v47  ;;  %v1675_v51 = vsel %vm731_vm5, %v7366_v32, %v5627_v31  ;;  %v2380_v32 = vsel %vm737_vm8, %v2379_v41, %v5563_v5  ;;  %v1916_v5 = vsel %vm739_vm9, %v1915_v58, %v5642_v4 }
 0x2b3   : > { %v2141_v13 = vsel %vm733_vm6, %v2140_v33, %v5568_v15  ;;  %v1676_v48 = vsel %vm733_vm6, %v1675_v51, %v5567_v7  ;;  %v5631_v38 = vpop.permute.xlu0 %5630  ;;  %v5676_v26 = vpop.permute.xlu1 %5675  ;;  %v2150_v15 = vsel %vm737_vm8, %v2149_v43, %v5578_v37  ;;  %v2381_v37 = vsel %vm739_vm9, %v2380_v32, %v5643_v29 }
 0x2b4   : > { %v1677_v24 = vsel %vm735_vm7, %v1676_v48, %v5647_v12  ;;  %v5633_v22 = vunpack.i.h.bf16 %v5631_v38  ;;  %v5632_v0 = vunpack.i.l.bf16 %v5631_v38  ;;  %v2142_v7 = vsel %vm735_vm7, %v2141_v13, %v5648_v44 }
 0x2b5   : > { %v1678_v44 = vsel %vm737_vm8, %v1677_v24, %v5587_v25  ;;  %v1917_v3 = vsel %vm741_vm10, %v1916_v5, %v5582_v45  ;;  %v9510_v29 = vunpack.i.h.bf16 %v7609_v6  ;;  %v9512_v6 = vunpack.i.h.bf16 %v7613_v34 }
 0x2b6   : > { %v1907_v8 = vsel %vm735_vm7, %v1906_v27, %v5632_v0  ;;  %v2372_v23 = vsel %vm735_vm7, %v2371_v2, %v5633_v22  ;;  %v5678_v27 = vunpack.i.h.bf16 %v5676_v26  ;;  %v9513_v58 = vunpack.i.l.bf16 %v7619_v20 }
 0x2b7   : > { %v1908_v53 = vsel %vm737_vm8, %v1907_v8, %v5572_v50  ;;  %v2373_v11 = vsel %vm737_vm8, %v2372_v23, %v5573_v35  ;;  %v5656_v12 = vpop.permute.xlu0 %5655  ;;  %v2574_v19 = vpop.permute.xlu1 %2573  ;;  %v5672_v50 = vunpack.i.l.bf16 %v7689_v55  ;;  %v2143_v25 = vsel %vm737_vm8, %v2142_v7, %v9510_v29 }
 0x2b8   : > { %v1909_v28 = vsel %vm739_vm9, %v1908_v53, %v5652_v1  ;;  %v2374_v4 = vsel %vm739_vm9, %v2373_v11, %v5653_v39  ;;  %v5658_v14 = vunpack.i.h.bf16 %v5656_v12  ;;  %v5657_v30 = vunpack.i.l.bf16 %v5656_v12 }
 0x2b9   : > { %v1910_v35 = vsel %vm741_vm10, %v1909_v28, %v5592_v40  ;;  %v2607_v31 = vsel %vm731_vm5, %v7408_v46, %v2574_v19  ;;  %v1679_v55 = vsel %vm739_vm9, %v1678_v44, %v5667_v52  ;;  %v5677_v39 = vunpack.i.l.bf16 %v5676_v26 }
 0x2ba   : > { %v1686_v62 = vsel %vm739_vm9, %v1685_v16, %v5657_v30  ;;  %v2151_v47 = vsel %vm739_vm9, %v2150_v15, %v5658_v14  ;;  %v9511_v1 = vunpack.i.h.bf16 %v7615_v9  ;;  %v2375_v2 = vsel %vm741_vm10, %v2374_v4, %v9512_v6 }
 0x2bb   : > { %v5661_v45 = vpop.permute.xlu0 %5660  ;;  %v2582_v41 = vpop.permute.xlu1 %2581  ;;  %v1911_v49 = vsel %vm743_vm11, %v1910_v35, %v5672_v50  ;;  %v2144_v46 = vsel %vm739_vm9, %v2143_v25, %v5668_v21  ;;  %v2608_v43 = vsel %vm733_vm6, %v2607_v31, %v7617_v42  ;;  %v1687_v9 = vsel %vm741_vm10, %v1686_v62, %v9513_v58 }
 0x2bc   : > { %v2382_v40 = vsel %vm741_vm10, %v2381_v37, %v9511_v1  ;;  %v5663_v33 = vunpack.i.h.bf16 %v5661_v45  ;;  %v5662_v51 = vunpack.i.l.bf16 %v5661_v45  ;;  %v9514_v13 = vunpack.i.h.bf16 %v7619_v20 }
 0x2bd   : > { %v9515_v34 = vunpack.i.l.bf16 %v7623_v56  ;;  %v2609_v21 = vsel %vm735_vm7, %v2608_v43, %v2582_v41  ;;  %v2376_v42 = vsel %vm743_vm11, %v2375_v2, %v5673_v60  ;;  %v9516_v20 = vunpack.i.h.bf16 %v7623_v56 }
 0x2be   : > { %v2152_v48 = vsel %vm741_vm10, %v2151_v47, %v9514_v13  ;;  %v1918_v26 = vsel %vm743_vm11, %v1917_v3, %v5662_v51  ;;  %v2383_v32 = vsel %vm743_vm11, %v2382_v40, %v5663_v33  ;;  %v2628_v15 = vrot.slane %v1911_v49, 4 }
 0x2bf   : > { %v1680_v38 = vsel %vm741_vm10, %v1679_v55, %v9515_v34  ;;  %v2629_v24 = vrot.slane %v1918_v26, 4  ;;  %v2635_v22 = vrot.slane %v2383_v32, 4  ;;  %v5681_v0 = vpop.permute.xlu0 %5680  ;;  %v2590_v52 = vpop.permute.xlu1 %2589  ;;  %v2145_v16 = vsel %vm741_vm10, %v2144_v46, %v9516_v20 }
 0x2c0   : > { %v5683_v7 = vunpack.i.h.bf16 %v5681_v0  ;;  %v5682_v8 = vunpack.i.l.bf16 %v5681_v0  ;;  %v1688_v23 = vsel %vm743_vm11, %v1687_v9, %v5677_v39  ;;  %v2153_v5 = vsel %vm743_vm11, %v2152_v48, %v5678_v27  ;;  %v2647_v27 = vld [vmem:[%s9454_s1] sm:$0xf] }
 0x2c1   : > { %v2610_v53 = vsel %vm737_vm8, %v2609_v21, %v7621_v63  ;;  %v2644_v60 = vsel %vm2638_vm12, %v1688_v23, %v2629_v24  ;;  %v2646_v11 = vsel %vm2638_vm12, %v2153_v5, %v2635_v22  ;;  %v2634_v12 = vrot.slane %v2376_v42, 4 }
 0x2c2   : > { %v2611_v19 = vsel %vm739_vm9, %v2610_v53, %v2590_v52  ;;  %v5332_v56 = vpack.c.bf16 %v2646_v11, %v2644_v60  ;;  %v1681_v37 = vsel %vm743_vm11, %v1680_v38, %v5682_v8  ;;  %v2146_v44 = vsel %vm743_vm11, %v2145_v16, %v5683_v7 }
 0x2c3   : > { %v2546_v28 = vpop.permute.xlu0 %2545  ;;  %v2598_v4 = vpop.permute.xlu1 %2597  ;;  %v2643_v14 = vsel %vm2638_vm12, %v1681_v37, %v2628_v15  ;;  %v2645_v30 = vsel %vm2638_vm12, %v2146_v44, %v2634_v12  ;;  %v2612_v3 = vsel %vm741_vm10, %v2611_v19, %v7625_v59 }
 0x2c4   : > { %v2600_v63 = vsel %vm731_vm5, %v7445_v18, %v2546_v28  ;;  %5333 = vmatprep.subr.bf16.mxu0 %v5332_v56  ;;  %v5334_v50 = vpack.c.bf16 %v2645_v30, %v2643_v14  ;;  %v2613_v35 = vsel %vm743_vm11, %v2612_v3, %v2598_v4 }
 0x2c5   : > { %v2601_v29 = vsel %vm733_vm6, %v2600_v63, %v7627_v10 }
 0x2c6   : > { %5335 = vmatpush1.bf16.msra.mxu0 %v5334_v50 }
 0x2c7   : > { %v2554_v25 = vpop.permute.xlu0 %2553  ;;  %5315 = vmatprep.subr.msk.mxu0 %vm2638_vm12, %v2613_v35 }
 0x2c8   : > { %v2602_v62 = vsel %vm735_vm7, %v2601_v29, %v2554_v25 }
 0x2c9   : > { %v2603_v47 = vsel %vm737_vm8, %v2602_v62, %v7629_v61 }
 0x2cb   : > { %v2562_v18 = vpop.permute.xlu0 %2561 }
 0x2cc   : > { %v2604_v31 = vsel %vm739_vm9, %v2603_v47, %v2562_v18 }
 0x2cd   : > { %v2605_v59 = vsel %vm741_vm10, %v2604_v31, %v7633_v57 }
 0x2cf   : > { %v2570_v55 = vpop.permute.xlu0 %2569 }
 0x2d0   : > { %v2606_v10 = vsel %vm743_vm11, %v2605_v59, %v2570_v55 }
 0x2d1   : > { %5316 = vmatpush1.msk.msra.mxu0 %vm2638_vm12, %v2606_v10 }
 0x2d2   : > { %5317 = vmatmul.mubr.msk.f32.vlgmr.msra.gmra.mrb[0].mxu0 %vm2654_vm13, %v2647_v27 }
 0x2d4   : > { %v2652_v39 = vpop.permute.xlu1 %2651 }
 0x3a5   : > { %v2730_v61 = vpop.f32.mrb[0].mxu0 }
 0x3a6   : > { %v2731_v45 = vadd.f32 %v2730_v61, %v2652_v39  ;;  %v2732_v1 = vpop.f32.mrb[1].mxu0 }
 0x3a7   : > { %v2733_v57 = vadd.f32 %v2732_v1, %v2652_v39 }
 0x3a8   : > { %v2735_v40 = vmax.f32 %v2731_v45, 0.0 }
 0x3a9   : > { %v2736_v41 = vmax.f32 %v2733_v57, 0.0 }
 0x3aa   : > { %2741 = vrot.lane.b32.xlu1 %v2735_v40, %s6070_s25  ;;  %2738 = vrot.lane.b32.xlu0 %v2735_v40, %s6068_s14 }
 0x3ae   : > { %2747 = vrot.lane.b32.xlu1 %v2735_v40, %s6069_s16  ;;  %2744 = vrot.lane.b32.xlu0 %v2735_v40, %s6067_s12 }
 0x3b2   : > { %2753 = vrot.lane.b32.xlu1 %v2735_v40, %s6071_s26  ;;  %2750 = vrot.lane.b32.xlu0 %v2735_v40, %s6072_s28 }
 0x3b6   : > { %2760 = vrot.lane.b32.xlu1 %v2736_v41, %s6068_s14  ;;  %2756 = vrot.lane.b32.xlu0 %v2735_v40, %s6073_s29 }
 0x3ba   : > { %2766 = vrot.lane.b32.xlu1 %v2736_v41, %s6067_s12  ;;  %2763 = vrot.lane.b32.xlu0 %v2736_v41, %s6070_s25 }
 0x3be   : > { %2772 = vrot.lane.b32.xlu1 %v2736_v41, %s6072_s28  ;;  %2769 = vrot.lane.b32.xlu0 %v2736_v41, %s6069_s16 }
 0x3c2   : > { %2778 = vrot.lane.b32.xlu1 %v2736_v41, %s6073_s29  ;;  %2775 = vrot.lane.b32.xlu0 %v2736_v41, %s6071_s26 }
 0x41c   : > { %v2742_v6 = vpop.permute.xlu1 %2741  ;;  %v2739_v2 = vpop.permute.xlu0 %2738 }
 0x41d   : > { %v2781_v58 = vcombine.low %v2735_v40, %v2742_v6 }
 0x41f   : > { %v2788_v38 = vrot.slane %v2781_v58, %v6237_v17 }
 0x420   : > { %v2748_v33 = vpop.permute.xlu1 %2747  ;;  %v2745_v51 = vpop.permute.xlu0 %2744 }
 0x421   : > { %v2789_v49 = vcombine.low %v2739_v2, %v2745_v51 }
 0x423   : > { %v2796_v9 = vrot.slane %v2789_v49, %v6237_v17 }
 0x424   : > { %v2754_v46 = vpop.permute.xlu1 %2753  ;;  %v2751_v43 = vpop.permute.xlu0 %2750 }
 0x425   : > { %v2797_v13 = vcombine.low %v2748_v33, %v2754_v46  ;;  %v2813_v32 = vcombine.low %v2788_v38, %v2796_v9  ;;  %v2814_v20 = vcombine.high %v2788_v38, %v2796_v9 }
 0x427   : > { %v2804_v21 = vrot.slane %v2797_v13, %v6237_v17  ;;  %v2821_v16 = vrot.slane %v2813_v32, %v6243_v36  ;;  %v2828_v12 = vrot.slane %v2814_v20, %v6243_v36 }
 0x428   : > { %v2761_v48 = vpop.permute.xlu1 %2760  ;;  %v2757_v34 = vpop.permute.xlu0 %2756 }
 0x429   : > { %v2805_v26 = vcombine.low %v2751_v43, %v2757_v34 }
 0x42b   : > { %v2812_v42 = vrot.slane %v2805_v26, %v6237_v17 }
 0x42c   : > { %v2767_v24 = vpop.permute.xlu1 %2766  ;;  %v2764_v22 = vpop.permute.xlu0 %2763 }
 0x42d   : > { %v2829_v0 = vcombine.low %v2804_v21, %v2812_v42  ;;  %v2830_v52 = vcombine.high %v2804_v21, %v2812_v42  ;;  %v2857_v7 = vcombine.low %v2761_v48, %v2767_v24  ;;  %v2849_v8 = vcombine.low %v2736_v41, %v2764_v22 }
 0x42f   : > { %v2837_v15 = vrot.slane %v2829_v0, %v6243_v36  ;;  %v2844_v23 = vrot.slane %v2830_v52, %v6243_v36  ;;  %v2864_v19 = vrot.slane %v2857_v7, %v6237_v17  ;;  %v2856_v56 = vrot.slane %v2849_v8, %v6237_v17 }
 0x430   : > { %v2773_v5 = vpop.permute.xlu1 %2772  ;;  %v2770_v53 = vpop.permute.xlu0 %2769 }
 0x431   : > { %v2845_v60 = vcombine.low %v2821_v16, %v2837_v15  ;;  %v2846_v11 = vcombine.high %v2821_v16, %v2837_v15  ;;  %v2847_v4 = vcombine.low %v2828_v12, %v2844_v23  ;;  %v2881_v3 = vcombine.low %v2856_v56, %v2864_v19 }
 0x432   : > { %v2882_v35 = vcombine.high %v2856_v56, %v2864_v19  ;;  %v2848_v62 = vcombine.high %v2828_v12, %v2844_v23 }
 0x433   : > { %v2925_v37 = vrot.slane %v2845_v60, 7  ;;  %v2928_v50 = vrot.slane %v2846_v11, 7  ;;  %v2931_v59 = vrot.slane %v2847_v4, 7  ;;  %v2889_v55 = vrot.slane %v2881_v3, %v6243_v36 }
 0x434   : > { %v2779_v44 = vpop.permute.xlu1 %2778  ;;  %v2776_v28 = vpop.permute.xlu0 %2775  ;;  %v2896_v27 = vrot.slane %v2882_v35, %v6243_v36  ;;  %v2934_v61 = vrot.slane %v2848_v62, 7 }
 0x435   : > { %v2873_v14 = vcombine.low %v2773_v5, %v2779_v44  ;;  %v2865_v30 = vcombine.low %v2770_v53, %v2776_v28  ;;  %v2945_v63 = vsel %vm440_vm0, 0.0, %v2925_v37  ;;  %v2946_v31 = vsel %vm440_vm0, 0.0, %v2928_v50 }
 0x436   : > { %2961 = vrot.lane.b32.xlu0 %v2945_v63, %s6076_s8  ;;  %v2947_v45 = vsel %vm440_vm0, 0.0, %v2931_v59  ;;  %v2948_v6 = vsel %vm440_vm0, 0.0, %v2934_v61 }
 0x437   : > { %v2880_v29 = vrot.slane %v2873_v14, %v6237_v17  ;;  %v2872_v25 = vrot.slane %v2865_v30, %v6237_v17 }
 0x439   : > { %v2897_v47 = vcombine.low %v2872_v25, %v2880_v29  ;;  %v2898_v18 = vcombine.high %v2872_v25, %v2880_v29 }
 0x43a   : > { %2967 = vrot.lane.b32.xlu0 %v2946_v31, %s6076_s8 }
 0x43b   : > { %v2905_v10 = vrot.slane %v2897_v47, %v6243_v36  ;;  %v2912_v39 = vrot.slane %v2898_v18, %v6243_v36 }
 0x43d   : > { %v2914_v1 = vcombine.high %v2889_v55, %v2905_v10  ;;  %v2916_v40 = vcombine.high %v2896_v27, %v2912_v39  ;;  %v2913_v57 = vcombine.low %v2889_v55, %v2905_v10  ;;  %v2915_v49 = vcombine.low %v2896_v27, %v2912_v39 }
 0x43e   : > { %2973 = vrot.lane.b32.xlu0 %v2947_v45, %s6076_s8 }
 0x43f   : > { %v2929_v41 = vrot.slane %v2914_v1, 7  ;;  %v2935_v33 = vrot.slane %v2916_v40, 7  ;;  %v2926_v51 = vrot.slane %v2913_v57, 7  ;;  %v2932_v58 = vrot.slane %v2915_v49, 7 }
 0x441   : > { %v2930_v2 = vsel %vm440_vm0, %v2928_v50, %v2929_v41  ;;  %v2936_v46 = vsel %vm440_vm0, %v2934_v61, %v2935_v33  ;;  %v2927_v43 = vsel %vm440_vm0, %v2925_v37, %v2926_v51  ;;  %v2949_v9 = vsel %vm440_vm0, %v2926_v51, 0.0 }
 0x442   : > { %2979 = vrot.lane.b32.xlu0 %v2948_v6, %s6076_s8  ;;  %2969 = vrot.lane.b32.xlu1 %v2930_v2, %s6076_s8  ;;  %v2933_v13 = vsel %vm440_vm0, %v2931_v59, %v2932_v58  ;;  %v2950_v48 = vsel %vm440_vm0, %v2929_v41, 0.0  ;;  %v2951_v34 = vsel %vm440_vm0, %v2932_v58, 0.0  ;;  %v2952_v38 = vsel %vm440_vm0, %v2935_v33, 0.0 }
 0x446   : > { %2981 = vrot.lane.b32.xlu1 %v2936_v46, %s6076_s8  ;;  %2963 = vrot.lane.b32.xlu0 %v2927_v43, %s6076_s8 }
 0x44a   : > { %2965 = vrot.lane.b32.xlu1 %v2949_v9, %s6076_s8  ;;  %2975 = vrot.lane.b32.xlu0 %v2933_v13, %s6076_s8 }
 0x44e   : > { %2971 = vrot.lane.b32.xlu1 %v2950_v48, %s6076_s8 }
 0x452   : > { %2977 = vrot.lane.b32.xlu1 %v2951_v34, %s6076_s8 }
 0x456   : > { %2983 = vrot.lane.b32.xlu1 %v2952_v38, %s6076_s8 }
 0x4a8   : > { %v2962_v26 = vpop.permute.xlu0 %2961 }
 0x4a9   : > { %v2997_v32 = vsel %vm513_vm1, 0.0, %v2962_v26 }
 0x4aa   : > { %v7861_v21 = vsel %vm526_vm2, %v2997_v32, 0.0 }
 0x4ab   : > { %3235 = vrot.lane.b32.xlu0 %v7861_v21, %s6078_s7  ;;  %v3699_v57 = vrot.slane %v7861_v21, 1 }
 0x4ac   : > { %v2968_v42 = vpop.permute.xlu0 %2967 }
 0x4ad   : > { %v3000_v24 = vsel %vm513_vm1, 0.0, %v2968_v42 }
 0x4ae   : > { %v7867_v22 = vsel %vm526_vm2, %v3000_v24, 0.0 }
 0x4af   : > { %3239 = vrot.lane.b32.xlu1 %v7867_v22, %s6078_s7  ;;  %v3704_v61 = vrot.slane %v7867_v22, 1 }
 0x4b0   : > { %v2974_v0 = vpop.permute.xlu0 %2973 }
 0x4b1   : > { %v3003_v52 = vsel %vm513_vm1, 0.0, %v2974_v0 }
 0x4b2   : > { %v7873_v20 = vsel %vm526_vm2, %v3003_v52, 0.0 }
 0x4b3   : > { %v3021_v16 = vcombine.low %v7861_v21, %v7873_v20  ;;  %v3022_v15 = vcombine.high %v7861_v21, %v7873_v20  ;;  %3243 = vrot.lane.b32.xlu0 %v7873_v20, %s6078_s7  ;;  %v3709_v51 = vrot.slane %v7873_v20, 1 }
 0x4b4   : > { %v2970_v7 = vpop.permute.xlu1 %2969  ;;  %v2980_v8 = vpop.permute.xlu0 %2979 }
 0x4b5   : > { %v3006_v23 = vsel %vm513_vm1, 0.0, %v2980_v8  ;;  %v3001_v5 = vsel %vm513_vm1, 0.0, %v2970_v7  ;;  %v7900_v28 = vrot.slane %v3022_v15, %v6237_v17  ;;  %v7909_v30 = vrot.slane %v3021_v16, %v6237_v17 }
 0x4b6   : > { %v7884_v53 = vsel %vm526_vm2, %v3006_v23, 0.0  ;;  %v7895_v56 = vsel %vm526_vm2, %v3001_v5, 0.0 }
 0x4b7   : > { %v3037_v60 = vcombine.low %v7867_v22, %v7884_v53  ;;  %v3038_v11 = vcombine.high %v7867_v22, %v7884_v53  ;;  %3465 = vrot.lane.b32.xlu0 %v7861_v21, %s6079_s9  ;;  %3247 = vrot.lane.b32.xlu1 %v7884_v53, %s6078_s7  ;;  %v3705_v47 = vrot.slane %v7895_v56, 1  ;;  %v3714_v18 = vrot.slane %v7884_v53, 1 }
 0x4b8   : > { %v2982_v12 = vpop.permute.xlu1 %2981  ;;  %v2964_v19 = vpop.permute.xlu0 %2963  ;;  %v4399_v32 = vrot.slane %v7895_v56, 2 }
 0x4b9   : > { %v3007_v37 = vsel %vm513_vm1, 0.0, %v2982_v12  ;;  %v2998_v44 = vsel %vm513_vm1, 0.0, %v2964_v19  ;;  %v7906_v14 = vrot.slane %v3038_v11, %v6237_v17  ;;  %v7912_v63 = vrot.slane %v3037_v60, %v6237_v17 }
 0x4ba   : > { %v7903_v4 = vsel %vm526_vm2, %v3007_v37, 0.0  ;;  %v7919_v35 = vsel %vm526_vm2, %v2998_v44, 0.0  ;;  %v7958_v33 = vsel %vm1224_vm3, %v3704_v61, %v3705_v47 }
 0x4bb   : > { %v3105_v50 = vcombine.low %v7895_v56, %v7903_v4  ;;  %v3106_v3 = vcombine.high %v7895_v56, %v7903_v4  ;;  %3473 = vrot.lane.b32.xlu0 %v7873_v20, %s6079_s9  ;;  %3469 = vrot.lane.b32.xlu1 %v7867_v22, %s6079_s9  ;;  %v3715_v29 = vrot.slane %v7903_v4, 1  ;;  %v3069_v31 = vcombine.low %v7900_v28, %v7906_v14 }
 0x4bc   : > { %v2966_v25 = vpop.permute.xlu1 %2965  ;;  %v2976_v62 = vpop.permute.xlu0 %2975  ;;  %v3054_v59 = vcombine.high %v7909_v30, %v7912_v63  ;;  %v3700_v39 = vrot.slane %v7919_v35, 1  ;;  %v4394_v15 = vrot.slane %v7919_v35, 2 }
 0x4bd   : > { %v2999_v55 = vsel %vm513_vm1, 0.0, %v2966_v25  ;;  %v3004_v27 = vsel %vm513_vm1, 0.0, %v2976_v62  ;;  %v7942_v45 = vsel %vm1224_vm3, %v3714_v18, %v3715_v29 }
 0x4be   : > { %v7935_v10 = vsel %vm526_vm2, %v3004_v27, 0.0  ;;  %v3011_v41 = vsel %vm526_vm2, %v2999_v55, 0.0  ;;  %v3743_v49 = vcombine.low %v7958_v33, %v7942_v45  ;;  %v7965_v43 = vsel %vm1224_vm3, %v3699_v57, %v3700_v39 }
 0x4bf   : > { %v3089_v1 = vcombine.low %v7919_v35, %v7935_v10  ;;  %v3090_v40 = vcombine.high %v7919_v35, %v7935_v10  ;;  %3477 = vrot.lane.b32.xlu1 %v7884_v53, %s6079_s9  ;;  %3237 = vrot.lane.b32.xlu0 %v7919_v35, %s6078_s7  ;;  %v3710_v2 = vrot.slane %v7935_v10, 1  ;;  %v3744_v9 = vcombine.high %v7958_v33, %v7942_v45 }
 0x4c0   : > { %v2972_v6 = vpop.permute.xlu1 %2971  ;;  %v3702_v13 = vrot.slane %v3011_v41, 1  ;;  %v4396_v38 = vrot.slane %v3011_v41, 2  ;;  %v7987_v52 = vrot.slane %v3743_v49, %v6237_v17  ;;  %v4404_v7 = vrot.slane %v7935_v10, 2 }
 0x4c1   : > { %v3002_v46 = vsel %vm513_vm1, 0.0, %v2972_v6  ;;  %v7968_v58 = vsel %vm1224_vm3, %v3709_v51, %v3710_v2  ;;  %v7993_v8 = vrot.slane %v3744_v9, %v6237_v17  ;;  %v4409_v49 = vrot.slane %v7903_v4, 2 }
 0x4c2   : > { %v3727_v48 = vcombine.low %v7965_v43, %v7968_v58  ;;  %v3728_v34 = vcombine.high %v7965_v43, %v7968_v58  ;;  %v3014_v42 = vsel %vm526_vm2, %v3002_v46, 0.0  ;;  %v8000_v60 = vsel %vm1224_vm3, %v3700_v39, %v3702_v13 }
 0x4c3   : > { %3241 = vrot.lane.b32.xlu1 %v7895_v56, %s6078_s7  ;;  %3245 = vrot.lane.b32.xlu0 %v7935_v10, %s6078_s7  ;;  %v3707_v12 = vrot.slane %v3014_v42, 1  ;;  %v8007_v37 = vsel %vm1919_vm4, %v4394_v15, %v4396_v38  ;;  %v4401_v62 = vrot.slane %v3014_v42, 2 }
 0x4c4   : > { %v2978_v26 = vpop.permute.xlu1 %2977  ;;  %v7984_v0 = vrot.slane %v3727_v48, %v6237_v17  ;;  %v8010_v44 = vrot.slane %v3728_v34, %v6237_v17 }
 0x4c5   : > { %v3005_v24 = vsel %vm513_vm1, 0.0, %v2978_v26  ;;  %v3708_v46 = vsel %vm1224_vm3, %v3705_v47, %v3707_v12  ;;  %v8048_v48 = vsel %vm1919_vm4, %v4399_v32, %v4401_v62 }
 0x4c6   : > { %v3017_v16 = vsel %vm526_vm2, %v3005_v24, 0.0  ;;  %v3760_v25 = vcombine.high %v7984_v0, %v7987_v52  ;;  %v3776_v9 = vcombine.high %v8010_v44, %v7993_v8  ;;  %v3775_v38 = vcombine.low %v8010_v44, %v7993_v8 }
 0x4c7   : > { %v3712_v23 = vrot.slane %v3017_v16, 1  ;;  %v4406_v5 = vrot.slane %v3017_v16, 2  ;;  %3249 = vrot.lane.b32.xlu1 %v7903_v4, %s6078_s7  ;;  %3467 = vrot.lane.b32.xlu0 %v7919_v35, %s6079_s9  ;;  %v3070_v16 = vcombine.high %v7900_v28, %v7906_v14 }
 0x4c8   : > { %v2984_v19 = vpop.permute.xlu1 %2983 }
 0x4c9   : > { %v3008_v18 = vsel %vm513_vm1, 0.0, %v2984_v19  ;;  %v8016_v55 = vsel %vm1224_vm3, %v3710_v2, %v3712_v23  ;;  %v8021_v27 = vsel %vm1919_vm4, %v4404_v7, %v4406_v5  ;;  %v8312_v8 = vrot.slane %v3070_v16, %v6243_v36 }
 0x4ca   : > { %v3020_v39 = vsel %vm526_vm2, %v3008_v18, 0.0  ;;  %v3795_v61 = vcombine.low %v8000_v60, %v8016_v55  ;;  %v3796_v57 = vcombine.high %v8000_v60, %v8016_v55  ;;  %v4489_v41 = vcombine.low %v8007_v37, %v8021_v27 }
 0x4cb   : > { %v3717_v6 = vrot.slane %v3020_v39, 1  ;;  %v4411_v51 = vrot.slane %v3020_v39, 2  ;;  %3471 = vrot.lane.b32.xlu1 %v7895_v56, %s6079_s9  ;;  %3475 = vrot.lane.b32.xlu0 %v7935_v10, %s6079_s9  ;;  %v4490_v2 = vcombine.high %v8007_v37, %v8021_v27  ;;  %v8087_v18 = vrot.slane %v3090_v40, %v6237_v17 }
 0x4cc   : > { %v8075_v12 = vrot.slane %v4489_v41, %v6237_v17  ;;  %v8081_v62 = vrot.slane %v3796_v57, %v6237_v17  ;;  %v8093_v39 = vrot.slane %v3106_v3, %v6237_v17  ;;  %v8111_v3 = vrot.slane %v3105_v50, %v6237_v17 }
 0x4cd   : > { %v3718_v13 = vsel %vm1224_vm3, %v3715_v29, %v3717_v6  ;;  %v8051_v34 = vsel %vm1919_vm4, %v4409_v49, %v4411_v51  ;;  %v8064_v29 = vrot.slane %v3795_v61, %v6237_v17  ;;  %v8099_v61 = vrot.slane %v3089_v1, %v6237_v17 }
 0x4ce   : > { %v3811_v26 = vcombine.low %v3708_v46, %v3718_v13  ;;  %v3812_v47 = vcombine.high %v3708_v46, %v3718_v13  ;;  %v4505_v42 = vcombine.low %v8048_v48, %v8051_v34  ;;  %v4506_v24 = vcombine.high %v8048_v48, %v8051_v34 }
 0x4cf   : > { %3479 = vrot.lane.b32.xlu1 %v7903_v4, %s6079_s9  ;;  %4165 = vrot.lane.b32.xlu0 %v8000_v60, %s6079_s9  ;;  %v3137_v1 = vcombine.low %v8087_v18, %v8093_v39  ;;  %v8137_v41 = vrot.slane %v4490_v2, %v6237_v17  ;;  %v4393_v2 = vrot.slane %v7861_v21, 2  ;;  %v4403_v57 = vrot.slane %v7873_v20, 2 }
 0x4d0   : > { %v8069_v23 = vrot.slane %v3811_v26, %v6237_v17  ;;  %v8072_v5 = vrot.slane %v3812_v47, %v6237_v17  ;;  %v8078_v19 = vrot.slane %v4505_v42, %v6237_v17  ;;  %v3122_v26 = vcombine.high %v8099_v61, %v8111_v3 }
 0x4d1   : > { %v8132_v47 = vrot.slane %v4506_v24, %v6237_v17  ;;  %v8161_v11 = vsel %vm1919_vm4, %v4393_v2, %v4394_v15  ;;  %v4398_v24 = vrot.slane %v7867_v22, 2  ;;  %v8177_v21 = vsel %vm1919_vm4, %v4403_v57, %v4404_v7 }
 0x4d2   : > { %v3828_v40 = vcombine.high %v8064_v29, %v8069_v23  ;;  %v3844_v6 = vcombine.high %v8081_v62, %v8072_v5  ;;  %v4408_v22 = vrot.slane %v7884_v53, 2 }
 0x4d3   : > { %4169 = vrot.lane.b32.xlu1 %v3708_v46, %s6079_s9  ;;  %4173 = vrot.lane.b32.xlu0 %v8016_v55, %s6079_s9  ;;  %9517 = vst [vmem:[#allocation8_spill] sm:$0xff] %v8132_v47  ;;  %v8172_v42 = vsel %vm1919_vm4, %v4398_v24, %v4399_v32 }
 0x4d4   : > { %v8185_v20 = vsel %vm1919_vm4, %v4408_v22, %v4409_v49 }
 0x4d7   : > { %4177 = vrot.lane.b32.xlu1 %v3718_v13, %s6079_s9  ;;  %4629 = vrot.lane.b32.xlu0 %v8007_v37, %s6078_s7 }
 0x4db   : > { %4633 = vrot.lane.b32.xlu1 %v8048_v48, %s6078_s7  ;;  %4637 = vrot.lane.b32.xlu0 %v8021_v27, %s6078_s7 }
 0x4df   : > { %4641 = vrot.lane.b32.xlu1 %v8051_v34, %s6078_s7  ;;  %4163 = vrot.lane.b32.xlu0 %v7965_v43, %s6079_s9 }
 0x4e3   : > { %4167 = vrot.lane.b32.xlu1 %v7958_v33, %s6079_s9  ;;  %4171 = vrot.lane.b32.xlu0 %v7968_v58, %s6079_s9 }
 0x4e7   : > { %4175 = vrot.lane.b32.xlu1 %v7942_v45, %s6079_s9  ;;  %4627 = vrot.lane.b32.xlu0 %v8161_v11, %s6078_s7 }
 0x4eb   : > { %4631 = vrot.lane.b32.xlu1 %v8172_v42, %s6078_s7  ;;  %4635 = vrot.lane.b32.xlu0 %v8177_v21, %s6078_s7 }
 0x4ef   : > { %4639 = vrot.lane.b32.xlu1 %v8185_v20, %s6078_s7  ;;  %3935 = vrot.lane.b32.xlu0 %v8000_v60, %s6078_s7 }
 0x4f3   : > { %3939 = vrot.lane.b32.xlu1 %v3708_v46, %s6078_s7  ;;  %3943 = vrot.lane.b32.xlu0 %v8016_v55, %s6078_s7 }
 0x4f7   : > { %3947 = vrot.lane.b32.xlu1 %v3718_v13, %s6078_s7  ;;  %3933 = vrot.lane.b32.xlu0 %v7965_v43, %s6078_s7  ;;  %v8234_v13 = vrot.slane %v3760_v25, %v6243_v36 }
 0x4fb   : > { %3937 = vrot.lane.b32.xlu1 %v7958_v33, %s6078_s7  ;;  %3941 = vrot.lane.b32.xlu0 %v7968_v58, %s6078_s7 }
 0x4ff   : > { %3945 = vrot.lane.b32.xlu1 %v7942_v45, %s6078_s7  ;;  %4859 = vrot.lane.b32.xlu0 %v8007_v37, %s6079_s9 }
 0x503   : > { %4863 = vrot.lane.b32.xlu1 %v8048_v48, %s6079_s9  ;;  %4867 = vrot.lane.b32.xlu0 %v8021_v27, %s6079_s9 }
 0x507   : > { %4871 = vrot.lane.b32.xlu1 %v8051_v34, %s6079_s9  ;;  %4857 = vrot.lane.b32.xlu0 %v8161_v11, %s6079_s9 }
 0x50b   : > { %4861 = vrot.lane.b32.xlu1 %v8172_v42, %s6079_s9  ;;  %4865 = vrot.lane.b32.xlu0 %v8177_v21, %s6079_s9 }
 0x50f   : > { %4869 = vrot.lane.b32.xlu1 %v8185_v20, %s6079_s9 }
 0x51d   : > { %v3236_v53 = vpop.permute.xlu0 %3235 }
 0x521   : > { %v3240_v56 = vpop.permute.xlu1 %3239 }
 0x525   : > { %v3244_v35 = vpop.permute.xlu0 %3243 }
 0x526   : > { %v3259_v10 = vcombine.low %v3236_v53, %v3244_v35  ;;  %v3260_v55 = vcombine.high %v3236_v53, %v3244_v35 }
 0x528   : > { %v8220_v58 = vrot.slane %v3259_v10, %v6237_v17  ;;  %v3274_v53 = vrot.slane %v3260_v55, %v6237_v17 }
 0x529   : > { %v3248_v45 = vpop.permute.xlu1 %3247  ;;  %v3466_v33 = vpop.permute.xlu0 %3465 }
 0x52a   : > { %v3275_v43 = vcombine.low %v3240_v56, %v3248_v45  ;;  %v3276_v15 = vcombine.high %v3240_v56, %v3248_v45 }
 0x52c   : > { %v8223_v32 = vrot.slane %v3275_v43, %v6237_v17  ;;  %v3290_v48 = vrot.slane %v3276_v15, %v6237_v17 }
 0x52d   : > { %v3470_v7 = vpop.permute.xlu1 %3469  ;;  %v3474_v60 = vpop.permute.xlu0 %3473 }
 0x52e   : > { %v3292_v37 = vcombine.high %v8220_v58, %v8223_v32  ;;  %v3489_v27 = vcombine.low %v3466_v33, %v3474_v60  ;;  %v3490_v49 = vcombine.high %v3466_v33, %v3474_v60  ;;  %v3307_v45 = vcombine.low %v3274_v53, %v3290_v48 }
 0x52f   : > { %v3308_v33 = vcombine.high %v3274_v53, %v3290_v48 }
 0x530   : > { %v8228_v46 = vrot.slane %v3292_v37, %v6243_v36  ;;  %v8241_v56 = vrot.slane %v3489_v27, %v6237_v17  ;;  %v3504_v35 = vrot.slane %v3490_v49, %v6237_v17  ;;  %v8255_v37 = vrot.slane %v3069_v31, %v6243_v36 }
 0x531   : > { %v3478_v34 = vpop.permute.xlu1 %3477  ;;  %v3238_v57 = vpop.permute.xlu0 %3237  ;;  %v8264_v49 = vrot.slane %v3054_v59, %v6243_v36  ;;  %v8273_v31 = vrot.slane %v3307_v45, %v6243_v36 }
 0x532   : > { %v3505_v24 = vcombine.low %v3470_v7, %v3478_v34  ;;  %v3506_v2 = vcombine.high %v3470_v7, %v3478_v34  ;;  %v5685_v22 = vpack.i.bf16 %v8234_v13, %v8228_v46  ;;  %v3324_v47 = vcombine.high %v8228_v46, %v9501_v54 }
 0x534   : > { %v8245_v10 = vrot.slane %v3505_v24, %v6237_v17  ;;  %v3520_v25 = vrot.slane %v3506_v2, %v6237_v17  ;;  %5686 = vrot.lane.b32.xlu0 %v5685_v22, %s6071_s26  ;;  %v8270_v2 = vrot.slane %v3308_v33, %v6243_v36 }
 0x535   : > { %v3242_v43 = vpop.permute.xlu1 %3241  ;;  %v3246_v15 = vpop.permute.xlu0 %3245 }
 0x536   : > { %v3522_v7 = vcombine.high %v8241_v56, %v8245_v10  ;;  %v3537_v60 = vcombine.low %v3504_v35, %v3520_v25  ;;  %v3327_v55 = vcombine.low %v3238_v57, %v3246_v15  ;;  %v3538_v22 = vcombine.high %v3504_v35, %v3520_v25 }
 0x537   : > { %v8297_v35 = vrot.slane %v3775_v38, %v6243_v36  ;;  %v3328_v4 = vcombine.high %v3238_v57, %v3246_v15  ;;  %v8323_v57 = vrot.slane %v3828_v40, %v6243_v36 }
 0x538   : > { %v8258_v27 = vrot.slane %v3537_v60, %v6243_v36  ;;  %v8267_v48 = vrot.slane %v3522_v7, %v6243_v36  ;;  %v8283_v7 = vrot.slane %v3776_v9, %v6243_v36  ;;  %v8286_v33 = vrot.slane %v3327_v55, %v6237_v17 }
 0x539   : > { %v3250_v34 = vpop.permute.xlu1 %3249  ;;  %v3468_v24 = vpop.permute.xlu0 %3467 }
 0x53a   : > { %v3343_v53 = vcombine.low %v3242_v43, %v3250_v34  ;;  %v5700_v60 = vpack.i.bf16 %v8258_v27, %v8255_v37  ;;  %v5690_v59 = vpack.i.bf16 %v8267_v48, %v8264_v49  ;;  %v3344_v25 = vcombine.high %v3242_v43, %v3250_v34 }
 0x53c   : > { %v8289_v45 = vrot.slane %v3343_v53, %v6237_v17  ;;  %5701 = vrot.lane.b32.xlu1 %v5700_v60, %s6069_s16  ;;  %5691 = vrot.lane.b32.xlu0 %v5690_v59, %s6071_s26  ;;  %v5705_v53 = vpack.i.bf16 %v8283_v7, %v8270_v2  ;;  %v5695_v60 = vpack.i.bf16 %v8297_v35, %v8273_v31 }
 0x53d   : > { %v3472_v50 = vpop.permute.xlu1 %3471  ;;  %v3476_v9 = vpop.permute.xlu0 %3475  ;;  %v8306_v59 = vrot.slane %v3538_v22, %v6243_v36  ;;  %v3358_v43 = vrot.slane %v3344_v25, %v6237_v17  ;;  %v3342_v22 = vrot.slane %v3328_v4, %v6237_v17 }
 0x53e   : > { %v3360_v55 = vcombine.high %v8286_v33, %v8289_v45  ;;  %v3557_v51 = vcombine.low %v3468_v24, %v3476_v9  ;;  %v3558_v44 = vcombine.high %v3468_v24, %v3476_v9  ;;  %v3359_v46 = vcombine.low %v8286_v33, %v8289_v45 }
 0x53f   : > { %v5710_v34 = vpack.i.bf16 %v8306_v59, %v8312_v8 }
 0x540   : > { %5706 = vrot.lane.b32.xlu1 %v5705_v53, %s6070_s25  ;;  %5696 = vrot.lane.b32.xlu0 %v5695_v60, %s6069_s16  ;;  %v8317_v38 = vrot.slane %v3360_v55, %v6243_v36  ;;  %v8334_v9 = vrot.slane %v3557_v51, %v6237_v17  ;;  %v3572_v40 = vrot.slane %v3558_v44, %v6237_v17 }
 0x541   : > { %v3480_v15 = vpop.permute.xlu1 %3479  ;;  %v8326_v28 = vpop.permute.xlu0 %4165  ;;  %v3376_v53 = vcombine.high %v3342_v22, %v3358_v43  ;;  %v3375_v51 = vcombine.low %v3342_v22, %v3358_v43 }
 0x542   : > { %v3573_v14 = vcombine.low %v3472_v50, %v3480_v15  ;;  %v3574_v16 = vcombine.high %v3472_v50, %v3480_v15  ;;  %v5715_v24 = vpack.i.bf16 %v8323_v57, %v8317_v38  ;;  %v3521_v50 = vcombine.low %v8241_v56, %v8245_v10 }
 0x543   : > { %v8364_v56 = vrot.slane %v3122_v26, %v6243_v36 }
 0x544   : > { %v8338_v25 = vrot.slane %v3573_v14, %v6237_v17  ;;  %v3588_v55 = vrot.slane %v3574_v16, %v6237_v17  ;;  %5711 = vrot.lane.b32.xlu1 %v5710_v34, %s6070_s25  ;;  %5716 = vrot.lane.b32.xlu0 %v5715_v24, %s6071_s26  ;;  %v8355_v14 = vrot.slane %v3137_v1, %v6243_v36 }
 0x545   : > { %v8345_v60 = vpop.permute.xlu1 %4169  ;;  %v8347_v4 = vpop.permute.xlu0 %4173  ;;  %v8370_v43 = vrot.slane %v3521_v50, %v6243_v36  ;;  %v8377_v1 = vrot.slane %v3376_v53, %v6243_v36  ;;  %v3291_v50 = vcombine.low %v8220_v58, %v8223_v32  ;;  %v9520_v58 = vcombine.low %v7909_v30, %v7912_v63 }
 0x546   : > { %v3590_v44 = vcombine.high %v8334_v9, %v8338_v25  ;;  %v3605_v15 = vcombine.low %v3572_v40, %v3588_v55  ;;  %v3606_v22 = vcombine.high %v3572_v40, %v3588_v55  ;;  %v8394_v40 = vrot.slane %v3844_v6, %v6243_v36 }
 0x547   : > { %9518 = vst [vmem:[#allocation9_spill] sm:$0xff] %v8370_v43  ;;  %v9519_v55 = vcombine.low %v8081_v62, %v8072_v5  ;;  %v8406_v32 = vrot.slane %v9520_v58, %v6243_v36  ;;  %v3553_v5 = vcombine.high %v8370_v43, %v9501_v54  ;;  %v8422_v30 = vrot.slane %v3291_v50, %v6243_v36 }
 0x548   : > { %v8358_v16 = vrot.slane %v3605_v15, %v6243_v36  ;;  %v8367_v10 = vrot.slane %v3590_v44, %v6243_v36  ;;  %v8384_v44 = vrot.slane %v3375_v51, %v6243_v36  ;;  %v5735_v6 = vpack.i.bf16 %v8394_v40, %v8377_v1 }
 0x549   : > { %v8372_v34 = vpop.permute.xlu1 %4177  ;;  %v8374_v24 = vpop.permute.xlu0 %4629  ;;  %v8400_v53 = vrot.slane %v9519_v55, %v6243_v36  ;;  %9521 = vst [vmem:[#allocation10_spill] sm:$0xff] %v8406_v32  ;;  %v8419_v62 = vrot.slane %v3606_v22, %v6243_v36  ;;  %9522 = vst [vmem:[#allocation12_spill] sm:$0xff] %v8422_v30  ;;  %v3085_v63 = vcombine.high %v8406_v32, %v9501_v54 }
 0x54a   : > { %v5730_v15 = vpack.i.bf16 %v8358_v16, %v8355_v14  ;;  %v5720_v26 = vpack.i.bf16 %v8367_v10, %v8364_v56  ;;  %v9523_v55 = vcombine.high %v8087_v18, %v8093_v39  ;;  %v9524_v50 = vcombine.low %v7984_v0, %v7987_v52 }
 0x54b   : > { %v3323_v18 = vcombine.high %v8422_v30, %v9501_v54  ;;  %v3792_v39 = vcombine.high %v8234_v13, %v9501_v54  ;;  %v3087_v13 = vcombine.high %v8255_v37, %v9501_v54  ;;  %v3589_v45 = vcombine.low %v8334_v9, %v8338_v25 }
 0x54c   : > { %5731 = vrot.lane.b32.xlu0 %v5730_v15, %s6069_s16  ;;  %5721 = vrot.lane.b32.xlu1 %v5720_v26, %s6071_s26  ;;  %v5725_v26 = vpack.i.bf16 %v8400_v53, %v8384_v44  ;;  %v8432_v58 = vrot.slane %v9523_v55, %v6243_v36  ;;  %v3555_v55 = vcombine.high %v8258_v27, %v9501_v54 }
 0x54d   : > { %v8408_v51 = vpop.permute.xlu1 %4633  ;;  %v8410_v15 = vpop.permute.xlu0 %4637  ;;  %v8477_v27 = vrot.slane %v3359_v46, %v6243_v36  ;;  %v4437_v9 = vcombine.low %v8172_v42, %v8185_v20  ;;  %v3793_v46 = vcombine.high %v8297_v35, %v9501_v54 }
 0x54e   : > { %v5740_v32 = vpack.i.bf16 %v8419_v62, %v8432_v58  ;;  %v5770_v33 = vpack.i.bf16 %v3555_v55, %v3087_v13  ;;  %v3556_v55 = vcombine.high %v8306_v59, %v9501_v54 }
 0x54f   : > { %9526 = vst [vmem:[#allocation13_spill] sm:$0xff] %v8477_v27 }
 0x550   : > { %5736 = vrot.lane.b32.xlu0 %v5735_v6, %s6070_s25  ;;  %5726 = vrot.lane.b32.xlu1 %v5725_v26, %s6069_s16  ;;  %v8442_v6 = vrot.slane %v9524_v50, %v6243_v36  ;;  %v5750_v26 = vpack.i.bf16 %v3553_v5, %v3085_v63  ;;  %v5755_v63 = vpack.i.bf16 %v3792_v39, %v3324_v47 }
 0x551   : > { %v8434_v43 = vpop.permute.xlu1 %4641  ;;  %v8436_v22 = vpop.permute.xlu0 %4163  ;;  %v3086_v47 = vcombine.high %v8264_v49, %v9501_v54  ;;  %v4421_v39 = vcombine.low %v8161_v11, %v8177_v21  ;;  %v3794_v49 = vcombine.high %v8283_v7, %v9501_v54  ;;  %v3391_v7 = vcombine.high %v8477_v27, %v9501_v54 }
 0x552   : > { %9525 = vst [vmem:[#allocation11_spill] sm:$0xff] %v8442_v6  ;;  %v3791_v5 = vcombine.high %v8442_v6, %v9501_v54  ;;  %v4735_v59 = vcombine.low %v8408_v51, %v8434_v43 }
 0x554   : > { %5751 = vrot.lane.b32.xlu0 %v5750_v26, %s6073_s29  ;;  %5741 = vrot.lane.b32.xlu1 %v5740_v32, %s6070_s25  ;;  %v5745_v50 = vpack.i.bf16 %v3791_v5, %v3323_v18  ;;  %v3554_v32 = vcombine.high %v8267_v48, %v9501_v54  ;;  %v3326_v48 = vcombine.high %v8270_v2, %v9501_v54 }
 0x555   : > { %v8454_v0 = vpop.permute.xlu1 %4167  ;;  %v8456_v52 = vpop.permute.xlu0 %4171  ;;  %v3325_v18 = vcombine.high %v8273_v31, %v9501_v54  ;;  %v9527_v5 = vcombine.low %v8064_v29, %v8069_v23  ;;  %v8508_v29 = vrot.slane %v3589_v45, %v6243_v36  ;;  %v3088_v45 = vcombine.high %v8312_v8, %v9501_v54 }
 0x556   : > { %v5760_v37 = vpack.i.bf16 %v3554_v32, %v3086_v47  ;;  %v8515_v32 = vrot.slane %v4421_v39, %v6237_v17  ;;  %v8523_v47 = vrot.slane %v4437_v9, %v6237_v17  ;;  %v4271_v39 = vcombine.low %v8345_v60, %v8372_v34 }
 0x557   : > { %v8494_v2 = vrot.slane %v9527_v5, %v6243_v36  ;;  %9529 = vst [vmem:[#allocation15_spill] sm:$0xff] %v8508_v29  ;;  %v5765_v23 = vpack.i.bf16 %v3793_v46, %v3325_v18  ;;  %v3155_v5 = vcombine.high %v8355_v14, %v9501_v54  ;;  %v3623_v9 = vcombine.high %v8358_v16, %v9501_v54 }
 0x558   : > { %5756 = vrot.lane.b32.xlu0 %v5755_v63, %s6072_s28  ;;  %5746 = vrot.lane.b32.xlu1 %v5745_v50, %s6073_s29  ;;  %v5775_v63 = vpack.i.bf16 %v3794_v49, %v3326_v48  ;;  %v4422_v50 = vcombine.high %v8161_v11, %v8177_v21  ;;  %v4719_v46 = vcombine.low %v8374_v24, %v8410_v15 }
 0x559   : > { %v8470_v26 = vpop.permute.xlu1 %4175  ;;  %v8472_v30 = vpop.permute.xlu0 %4627  ;;  %9528 = vst [vmem:[#allocation14_spill] sm:$0xff] %v8494_v2  ;;  %v3859_v13 = vcombine.high %v8494_v2, %v9501_v54  ;;  %v5780_v8 = vpack.i.bf16 %v3556_v55, %v3088_v45  ;;  %v3860_v14 = vcombine.high %v8323_v57, %v9501_v54  ;;  %v3156_v16 = vcombine.high %v8432_v58, %v9501_v54 }
 0x55a   : > { %v8584_v45 = vcombine.high %v8384_v44, %v9501_v54  ;;  %v8598_v44 = vcombine.high %v8400_v53, %v9501_v54 }
 0x55b   : > { %v5785_v49 = vpack.i.bf16 %v3859_v13, %v3391_v7  ;;  %v8561_v7 = vcombine.high %v8364_v56, %v9501_v54  ;;  %v8578_v56 = vrot.slane %v4271_v39, %v6237_v17  ;;  %v5810_v13 = vpack.i.bf16 %v3623_v9, %v3155_v5 }
 0x55c   : > { %5771 = vrot.lane.b32.xlu0 %v5770_v33, %s6067_s12  ;;  %5761 = vrot.lane.b32.xlu1 %v5760_v37, %s6072_s28  ;;  %v9530_v37 = vcombine.low %v8099_v61, %v8111_v3  ;;  %v3862_v61 = vcombine.high %v8394_v40, %v9501_v54  ;;  %v3394_v3 = vcombine.high %v8377_v1, %v9501_v54 }
 0x55d   : > { %v8499_v31 = vpop.permute.xlu1 %4631  ;;  %v8501_v25 = vpop.permute.xlu0 %4635  ;;  %v8566_v40 = vrot.slane %v4735_v59, %v6237_v17  ;;  %v3392_v59 = vcombine.high %v8317_v38, %v9501_v54  ;;  %v4256_v39 = vcombine.high %v8326_v28, %v8347_v4  ;;  %v5805_v5 = vpack.i.bf16 %v8598_v44, %v8584_v45 }
 0x55e   : > { %v8538_v18 = vrot.slane %v9530_v37, %v6243_v36  ;;  %v8587_v37 = vrot.slane %v4719_v46, %v6237_v17  ;;  %v5815_v38 = vpack.i.bf16 %v3862_v61, %v3394_v3 }
 0x55f   : > { %v5795_v3 = vpack.i.bf16 %v3860_v14, %v3392_v59  ;;  %v8631_v14 = vrot.slane %v4256_v39, %v6237_v17 }
 0x560   : > { %5776 = vrot.lane.b32.xlu0 %v5775_v63, %s6068_s14  ;;  %5766 = vrot.lane.b32.xlu1 %v5765_v23, %s6067_s12  ;;  %9531 = vst [vmem:[#allocation16_spill] sm:$0xff] %v8538_v18  ;;  %v3621_v63 = vcombine.high %v8508_v29, %v9501_v54  ;;  %v4255_v23 = vcombine.low %v8326_v28, %v8347_v4 }
 0x561   : > { %v8528_v33 = vpop.permute.xlu1 %4639  ;;  %v8530_v48 = vpop.permute.xlu0 %3935  ;;  %v3153_v58 = vcombine.high %v8538_v18, %v9501_v54  ;;  %v4752_v46 = vcombine.high %v8587_v37, %v8566_v40 }
 0x562   : > { %v4667_v55 = vcombine.low %v8499_v31, %v8528_v33  ;;  %v8603_v9 = vrot.slane %v4255_v23, %v6237_v17  ;;  %v3624_v23 = vcombine.high %v8419_v62, %v9501_v54  ;;  %v4272_v62 = vcombine.high %v8345_v60, %v8372_v34 }
 0x563   : > { %v5790_v35 = vpack.i.bf16 %v3621_v63, %v3153_v58  ;;  %v4187_v63 = vcombine.low %v8436_v22, %v8456_v52  ;;  %v3622_v58 = vcombine.high %v8367_v10, %v9501_v54  ;;  %v4736_v10 = vcombine.high %v8408_v51, %v8434_v43 }
 0x564   : > { %5786 = vrot.lane.b32.xlu0 %v5785_v49, %s6073_s29  ;;  %5781 = vrot.lane.b32.xlu1 %v5780_v8, %s6068_s14  ;;  %v4203_v49 = vcombine.low %v8454_v0, %v8470_v26  ;;  %v4651_v8 = vcombine.low %v8472_v30, %v8501_v25  ;;  %v8610_v28 = vrot.slane %v4667_v55, %v6237_v17 }
 0x565   : > { %v8571_v1 = vpop.permute.xlu1 %3939  ;;  %v8573_v57 = vpop.permute.xlu0 %3943  ;;  %v4668_v45 = vcombine.high %v8499_v31, %v8528_v33  ;;  %v4720_v51 = vcombine.high %v8374_v24, %v8410_v15  ;;  %v5800_v44 = vpack.i.bf16 %v3622_v58, %v8561_v7  ;;  %v4652_v33 = vcombine.high %v8472_v30, %v8501_v25 }
 0x566   : > { %v8623_v55 = vrot.slane %v4203_v49, %v6237_v17  ;;  %v4025_v59 = vcombine.low %v8530_v48, %v8573_v57  ;;  %v8641_v49 = vrot.slane %v4752_v46, %v6243_v36  ;;  %v4204_v46 = vcombine.high %v8454_v0, %v8470_v26 }
 0x567   : > { %v8667_v24 = vrot.slane %v4272_v62, %v6237_v17  ;;  %v8670_v15 = vrot.slane %v4736_v10, %v6237_v17  ;;  %v4188_v26 = vcombine.high %v8436_v22, %v8456_v52  ;;  %v8680_v30 = vrot.slane %v4668_v45, %v6237_v17 }
 0x568   : > { %5811 = vrot.lane.b32.xlu0 %v5810_v13, %s6067_s12  ;;  %5791 = vrot.lane.b32.xlu1 %v5790_v35, %s6073_s29  ;;  %v4288_v13 = vcombine.high %v8603_v9, %v8578_v56  ;;  %v8626_v35 = vrot.slane %v4651_v8, %v6237_v17  ;;  %v8644_v8 = vrot.slane %v4187_v63, %v6237_v17 }
 0x569   : > { %v3948_v4 = vpop.permute.xlu1 %3947  ;;  %v8613_v53 = vpop.permute.xlu0 %3933  ;;  %v4734_v22 = vrot.slane %v4720_v51, %v6237_v17  ;;  %v8693_v52 = vrot.slane %v4204_v46, %v6237_v17  ;;  %v4666_v10 = vrot.slane %v4652_v33, %v6237_v17  ;;  %v4202_v51 = vrot.slane %v4188_v26, %v6237_v17 }
 0x56a   : > { %v4041_v61 = vcombine.low %v8571_v1, %v3948_v4  ;;  %v4684_v60 = vcombine.high %v8626_v35, %v8610_v28  ;;  %v4220_v31 = vcombine.high %v8644_v8, %v8623_v55  ;;  %v8664_v63 = vrot.slane %v4288_v13, %v6243_v36 }
 0x56b   : > { %v9532_v33 = vcombine.high %v8075_v12, %v8078_v19  ;;  %v9533_v26 = vcombine.high %v8515_v32, %v8523_v47 }
 0x56c   : > { %5816 = vrot.lane.b32.xlu0 %v5815_v38, %s6068_s14  ;;  %5796 = vrot.lane.b32.xlu1 %v5795_v3, %s6072_s28  ;;  %v8654_v39 = vrot.slane %v4041_v61, %v6237_v17  ;;  %v5820_v38 = vpack.i.bf16 %v3624_v23, %v3156_v16  ;;  %v8673_v16 = vrot.slane %v4025_v59, %v6237_v17 }
 0x56d   : > { %v3938_v43 = vpop.permute.xlu1 %3937  ;;  %v3942_v34 = vpop.permute.xlu0 %3941  ;;  %v8683_v25 = vrot.slane %v4684_v60, %v6243_v36  ;;  %v5825_v61 = vpack.i.bf16 %v8641_v49, %v8664_v63  ;;  %v4042_v3 = vcombine.high %v8571_v1, %v3948_v4  ;;  %v8696_v62 = vrot.slane %v4220_v31, %v6243_v36 }
 0x56e   : > { %v3957_v0 = vcombine.low %v8613_v53, %v3942_v34  ;;  %v4058_v23 = vcombine.high %v8673_v16, %v8654_v39  ;;  %v4026_v1 = vcombine.high %v8530_v48, %v8573_v57  ;;  %v3958_v4 = vcombine.high %v8613_v53, %v3942_v34 }
 0x56f   : > { %v5830_v48 = vpack.i.bf16 %v8683_v25, %v8696_v62  ;;  %v4056_v57 = vrot.slane %v4042_v3, %v6237_v17  ;;  %v4303_v31 = vcombine.low %v8631_v14, %v8667_v24  ;;  %v9534_v3 = vcombine.high %v8172_v42, %v8185_v20 }
 0x570   : > { %5821 = vrot.lane.b32.xlu0 %v5820_v38, %s6068_s14  ;;  %5801 = vrot.lane.b32.xlu1 %v5800_v44, %s6072_s28  ;;  %v8705_v45 = vrot.slane %v3957_v0, %v6237_v17  ;;  %v4699_v38 = vcombine.low %v4666_v10, %v8680_v30  ;;  %v8721_v53 = vrot.slane %v4058_v23, %v6243_v36 }
 0x571   : > { %v3946_v7 = vpop.permute.xlu1 %3945  ;;  %v8699_v59 = vpop.permute.xlu0 %4859  ;;  %v8740_v0 = vrot.slane %v9532_v33, %v6243_v36  ;;  %v4040_v11 = vrot.slane %v4026_v1, %v6237_v17  ;;  %v8751_v21 = vrot.slane %v3958_v4, %v6237_v17  ;;  %v8761_v23 = vrot.slane %v9534_v3, %v6237_v17 }
 0x572   : > { %v3973_v58 = vcombine.low %v3938_v43, %v3946_v7  ;;  %v3974_v13 = vcombine.high %v3938_v43, %v3946_v7  ;;  %v4767_v43 = vcombine.low %v4734_v22, %v8670_v15  ;;  %v8746_v7 = vrot.slane %v9533_v26, %v6243_v36 }
 0x573   : > { %v4073_v33 = vcombine.low %v4040_v11, %v4056_v57  ;;  %v8776_v20 = vrot.slane %v4303_v31, %v6243_v36  ;;  %v4768_v26 = vcombine.high %v4734_v22, %v8670_v15  ;;  %v4700_v3 = vcombine.high %v4666_v10, %v8680_v30 }
 0x574   : > { %v8708_v60 = vrot.slane %v3973_v58, %v6237_v17  ;;  %5826 = vrot.lane.b32.xlu0 %v5825_v61, %s6071_s26  ;;  %5806 = vrot.lane.b32.xlu1 %v5805_v5, %s6067_s12  ;;  %v8724_v34 = vrot.slane %v3974_v13, %v6237_v17  ;;  %v8732_v5 = vrot.slane %v4422_v50, %v6237_v17 }
 0x575   : > { %v8715_v44 = vpop.permute.xlu1 %4863  ;;  %v4235_v61 = vcombine.low %v4202_v51, %v8693_v52  ;;  %v8764_v58 = vrot.slane %v4767_v43, %v6243_v36  ;;  %v8767_v13 = vrot.slane %v4699_v38, %v6243_v36  ;;  %v4868_v1 = vpop.permute.xlu0 %4867  ;;  %v8790_v31 = vrot.slane %v4073_v33, %v6243_v36 }
 0x576   : > { %v3990_v46 = vcombine.high %v8705_v45, %v8708_v60  ;;  %v4469_v43 = vcombine.low %v8732_v5, %v8761_v23  ;;  %v4304_v15 = vcombine.high %v8631_v14, %v8667_v24  ;;  %v4236_v10 = vcombine.high %v4202_v51, %v8693_v52 }
 0x577   : > { %v8781_v38 = vrot.slane %v4235_v61, %v6243_v36  ;;  %v5840_v29 = vpack.i.bf16 %v8764_v58, %v8776_v20  ;;  %v4949_v33 = vcombine.low %v8699_v59, %v4868_v1  ;;  %v8814_v14 = vrot.slane %v4768_v26, %v6243_v36 }
 0x578   : > { %v8754_v50 = vrot.slane %v3990_v46, %v6243_v36  ;;  %5831 = vrot.lane.b32.xlu0 %v5830_v48, %s6071_s26  ;;  %v4005_v46 = vcombine.low %v8751_v21, %v8724_v34  ;;  %v5835_v48 = vpack.i.bf16 %v8740_v0, %v8721_v53  ;;  %v8801_v30 = vrot.slane %v4469_v43, %v6243_v36 }
 0x579   : > { %v4872_v4 = vpop.permute.xlu1 %4871  ;;  %v4858_v22 = vpop.permute.xlu0 %4857  ;;  %v8817_v24 = vrot.slane %v4700_v3, %v6243_v36  ;;  %v4074_v43 = vcombine.high %v4040_v11, %v4056_v57  ;;  %v8828_v6 = vrot.slane %v4304_v15, %v6243_v36  ;;  %v8831_v26 = vrot.slane %v4236_v10, %v6243_v36 }
 0x57a   : > { %v5845_v42 = vpack.i.bf16 %v8746_v7, %v8754_v50  ;;  %v8793_v27 = vrot.slane %v4005_v46, %v6243_v36  ;;  %v4965_v61 = vcombine.low %v8715_v44, %v4872_v4  ;;  %v9535_v46 = vld [vmem:[#allocation8_spill] sm:$0xff]  ;;  %v4966_v52 = vcombine.high %v8715_v44, %v4872_v4 }
 0x57b   : > { %v4950_v57 = vcombine.high %v8699_v59, %v4868_v1  ;;  %v8835_v44 = vrot.slane %v4949_v33, %v6237_v17  ;;  %v8840_v11 = vrot.slane %v4074_v43, %v6243_v36  ;;  %v4006_v4 = vcombine.high %v8751_v21, %v8724_v34 }
 0x57c   : > { %5836 = vrot.lane.b32.xlu0 %v5835_v48, %s6071_s26  ;;  %5846 = vrot.lane.b32.xlu1 %v5845_v42, %s6071_s26  ;;  %v5850_v48 = vpack.i.bf16 %v8767_v13, %v8781_v38  ;;  %v9536_v42 = vcombine.low %v8137_v41, %v9535_v46  ;;  %v8821_v51 = vrot.slane %v4965_v61, %v6237_v17 }
 0x57d   : > { %v4862_v18 = vpop.permute.xlu1 %4861  ;;  %v4866_v3 = vpop.permute.xlu0 %4865  ;;  %v5860_v61 = vpack.i.bf16 %v8814_v14, %v8828_v6  ;;  %v4980_v15 = vrot.slane %v4966_v52, %v6237_v17  ;;  %v5870_v10 = vpack.i.bf16 %v8817_v24, %v8831_v26  ;;  %v9537_v33 = vcombine.high %v8137_v41, %v9535_v46 }
 0x57e   : > { %v8811_v2 = vrot.slane %v9536_v42, %v6243_v36  ;;  %v4982_v59 = vcombine.high %v8835_v44, %v8821_v51  ;;  %v4470_v34 = vcombine.high %v8732_v5, %v8761_v23  ;;  %v4964_v21 = vrot.slane %v4950_v57, %v6237_v17 }
 0x57f   : > { %v8855_v43 = vrot.slane %v9537_v33, %v6243_v36  ;;  %v4751_v52 = vcombine.low %v8587_v37, %v8566_v40  ;;  %v4287_v57 = vcombine.low %v8603_v9, %v8578_v56  ;;  %v4882_v40 = vcombine.high %v4858_v22, %v4866_v3 }
 0x580   : > { %5841 = vrot.lane.b32.xlu0 %v5840_v29, %s6069_s16  ;;  %5851 = vrot.lane.b32.xlu1 %v5850_v48, %s6069_s16  ;;  %v5865_v29 = vpack.i.bf16 %v8801_v30, %v8793_v27  ;;  %v5855_v48 = vpack.i.bf16 %v8811_v2, %v8790_v31  ;;  %v4997_v46 = vcombine.low %v4964_v21, %v4980_v15 }
 0x581   : > { %v4870_v42 = vpop.permute.xlu1 %4869  ;;  %v5875_v41 = vpack.i.bf16 %v8855_v43, %v8840_v11  ;;  %v8873_v23 = vrot.slane %v4982_v59, %v6243_v36  ;;  %v4896_v59 = vrot.slane %v4882_v40, %v6237_v17 }
 0x582   : > { %v4897_v1 = vcombine.low %v4862_v18, %v4870_v42  ;;  %v4898_v33 = vcombine.high %v4862_v18, %v4870_v42  ;;  %v8887_v18 = vrot.slane %v4751_v52, %v6243_v36  ;;  %v4057_v52 = vcombine.low %v8673_v16, %v8654_v39 }
 0x583   : > { %v4785_v39 = vcombine.high %v8764_v58, %v9501_v54  ;;  %v9538_v58 = vcombine.low %v8075_v12, %v8078_v19  ;;  %v4486_v12 = vcombine.high %v8746_v7, %v9501_v54  ;;  %v4320_v7 = vcombine.high %v8664_v63, %v9501_v54 }
 0x584   : > { %5866 = vrot.lane.b32.xlu0 %v5865_v29, %s6069_s16  ;;  %5856 = vrot.lane.b32.xlu1 %v5855_v48, %s6069_s16  ;;  %v4881_v29 = vcombine.low %v4858_v22, %v4866_v3  ;;  %v8865_v48 = vrot.slane %v4006_v4, %v6243_v36  ;;  %v8870_v5 = vrot.slane %v4897_v1, %v6237_v17 }
 0x585   : > { %v4998_v4 = vcombine.high %v4964_v21, %v4980_v15  ;;  %v4912_v56 = vrot.slane %v4898_v33, %v6237_v17  ;;  %v8895_v22 = vrot.slane %v4997_v46, %v6243_v36  ;;  %v8898_v3 = vrot.slane %v4287_v57, %v6243_v36 }
 0x586   : > { %v8881_v37 = vrot.slane %v4881_v29, %v6237_v17  ;;  %v4683_v15 = vcombine.low %v8626_v35, %v8610_v28  ;;  %v4783_v1 = vcombine.high %v8887_v18, %v9501_v54  ;;  %v4219_v29 = vcombine.low %v8644_v8, %v8623_v55 }
 0x587   : > { %v4319_v17 = vcombine.high %v8898_v3, %v9501_v54  ;;  %v4090_v55 = vcombine.high %v8721_v53, %v9501_v54  ;;  %v4554_v33 = vcombine.high %v8740_v0, %v9501_v54  ;;  %v8943_v16 = vrot.slane %v4057_v52, %v6243_v36 }
 0x588   : > { %5871 = vrot.lane.b32.xlu0 %v5870_v10, %s6070_s25  ;;  %5861 = vrot.lane.b32.xlu1 %v5860_v61, %s6070_s25  ;;  %v8878_v61 = vrot.slane %v4470_v34, %v6243_v36  ;;  %v4914_v9 = vcombine.high %v8881_v37, %v8870_v5  ;;  %v4929_v10 = vcombine.low %v4896_v59, %v4912_v56 }
 0x589   : > { %v8909_v34 = vrot.slane %v4998_v4, %v6243_v36  ;;  %v8923_v28 = vrot.slane %v4683_v15, %v6243_v36  ;;  %v5885_v35 = vpack.i.bf16 %v4783_v1, %v4319_v17  ;;  %v8933_v8 = vrot.slane %v4219_v29, %v6243_v36 }
 0x58a   : > { %v5880_v42 = vpack.i.bf16 %v8878_v61, %v8865_v48  ;;  %v8912_v21 = vrot.slane %v4914_v9, %v6243_v36  ;;  %v8928_v46 = vrot.slane %v4929_v10, %v6243_v36  ;;  %v5915_v57 = vpack.i.bf16 %v4554_v33, %v4090_v55 }
 0x58b   : > { %v4715_v40 = vcombine.high %v8923_v28, %v9501_v54  ;;  %v4251_v0 = vcombine.high %v8933_v8, %v9501_v54  ;;  %v8961_v4 = vrot.slane %v9538_v58, %v6243_v36  ;;  %v3989_v9 = vcombine.low %v8705_v45, %v8708_v60 }
 0x58c   : > { %5876 = vrot.lane.b32.xlu1 %v5875_v41, %s6070_s25  ;;  %5050 = vrot.lane.b32.xlu0 %v8873_v23, %s6071_s26  ;;  %v4930_v41 = vcombine.high %v4896_v59, %v4912_v56  ;;  %v4089_v15 = vcombine.high %v8943_v16, %v9501_v54  ;;  %v4453_v1 = vcombine.low %v8515_v32, %v8523_v47 }
 0x58d   : > { %v5890_v59 = vpack.i.bf16 %v4715_v40, %v4251_v0  ;;  %v4553_v19 = vcombine.high %v8961_v4, %v9501_v54  ;;  %v4784_v45 = vcombine.high %v8641_v49, %v9501_v54  ;;  %v8980_v60 = vrot.slane %v3989_v9, %v6243_v36 }
 0x58e   : > { %v8946_v53 = vrot.slane %v4930_v41, %v6243_v36  ;;  %v4717_v32 = vcombine.high %v8767_v13, %v9501_v54  ;;  %v4253_v47 = vcombine.high %v8781_v38, %v9501_v54  ;;  %v8991_v49 = vrot.slane %v4453_v1, %v6243_v36 }
 0x58f   : > { %v5895_v10 = vpack.i.bf16 %v4553_v19, %v4089_v15  ;;  %v5900_v29 = vpack.i.bf16 %v4784_v45, %v4320_v7  ;;  %v4021_v13 = vcombine.high %v8980_v60, %v9501_v54  ;;  %v4487_v38 = vcombine.high %v8801_v30, %v9501_v54 }
 0x590   : > { %5881 = vrot.lane.b32.xlu1 %v5880_v42, %s6070_s25  ;;  %5058 = vrot.lane.b32.xlu0 %v8895_v22, %s6069_s16  ;;  %v4321_v42 = vcombine.high %v8776_v20, %v9501_v54  ;;  %v4022_v20 = vcombine.high %v8754_v50, %v9501_v54  ;;  %v5930_v17 = vpack.i.bf16 %v4717_v32, %v4253_v47 }
 0x591   : > { %v4485_v63 = vcombine.high %v8991_v49, %v9501_v54  ;;  %v4718_v52 = vcombine.high %v8817_v24, %v9501_v54  ;;  %v4716_v33 = vcombine.high %v8683_v25, %v9501_v54  ;;  %v4252_v30 = vcombine.high %v8696_v62, %v9501_v54 }
 0x592   : > { %v5920_v56 = vpack.i.bf16 %v4785_v39, %v4321_v42  ;;  %v5925_v50 = vpack.i.bf16 %v4486_v12, %v4022_v20  ;;  %v4254_v39 = vcombine.high %v8831_v26, %v9501_v54  ;;  %v4981_v24 = vcombine.low %v8835_v44, %v8821_v51 }
 0x593   : > { %v5910_v0 = vpack.i.bf16 %v4716_v33, %v4252_v30  ;;  %v4092_v25 = vcombine.high %v8840_v11, %v9501_v54  ;;  %v4091_v26 = vcombine.high %v8790_v31, %v9501_v54  ;;  %v4556_v62 = vcombine.high %v8855_v43, %v9501_v54 }
 0x594   : > { %5066 = vrot.lane.b32.xlu0 %v8909_v34, %s6070_s25  ;;  %5022 = vrot.lane.b32.xlu1 %v8912_v21, %s6071_s26  ;;  %v4555_v51 = vcombine.high %v8811_v2, %v9501_v54  ;;  %v9032_v44 = vrot.slane %v4981_v24, %v6243_v36  ;;  %v4786_v11 = vcombine.high %v8814_v14, %v9501_v54  ;;  %s5327_s26 = sshll.u32 %s6133_s22, 7  ;;  %s6081_s22 = smov [#allocation5]  }
 0x595   : > { %v5955_v58 = vpack.i.bf16 %v4556_v62, %v4092_v25  ;;  %v4322_v43 = vcombine.high %v8828_v6, %v9501_v54  ;;  %v4913_v2 = vcombine.low %v8881_v37, %v8870_v5  ;;  %v4024_v14 = vcombine.high %v8865_v48, %v9501_v54  ;;  %s9409_s9 = scalar_lea.hbm %s9458_s5, %s5327_s26 }
 0x596   : > { %v4488_v15 = vcombine.high %v8878_v61, %v9501_v54  ;;  %v5014_v37 = vcombine.high %v8873_v23, %v9501_v54  ;;  %v4947_v7 = vcombine.high %v8928_v46, %v9501_v54 }
 0x597   : > { %v5940_v20 = vpack.i.bf16 %v4786_v11, %v4322_v43  ;;  %v9055_v1 = vrot.slane %v4913_v2, %v6243_v36  ;;  %v5015_v36 = vcombine.high %v8895_v22, %v9501_v54  ;;  %v5120_v22 = vld [vmem:[%s9457_s4] sm:$0xf] }
 0x598   : > { %5886 = vrot.lane.b32.xlu0 %v5885_v35, %s6073_s29  ;;  %5030 = vrot.lane.b32.xlu1 %v8928_v46, %s6069_s16  ;;  %v4023_v35 = vcombine.high %v8793_v27, %v9501_v54  ;;  %v5905_v27 = vpack.i.bf16 %v4485_v63, %v4021_v13  ;;  %v5960_v12 = vpack.i.bf16 %v4488_v15, %v4024_v14 }
 0x599   : > { %v4945_v61 = vcombine.high %v9055_v1, %v9501_v54 }
 0x59a   : > { %v5945_v55 = vpack.i.bf16 %v4487_v38, %v4023_v35 }
 0x59c   : > { %5916 = vrot.lane.b32.xlu0 %v5915_v57, %s6072_s28  ;;  %5038 = vrot.lane.b32.xlu1 %v8946_v53, %s6070_s25  ;;  %v5950_v57 = vpack.i.bf16 %v4718_v52, %v4254_v39 }
 0x5a0   : > { %5921 = vrot.lane.b32.xlu0 %v5920_v56, %s6067_s12  ;;  %5891 = vrot.lane.b32.xlu1 %v5890_v59, %s6073_s29  ;;  %v5935_v56 = vpack.i.bf16 %v4555_v51, %v4091_v26  ;;  %v5013_v59 = vcombine.high %v9032_v44, %v9501_v54  ;;  %v9541_v26 = vld [vmem:[#allocation9_spill] sm:$0xff]  ;;  %v9542_v51 = vld [vmem:[#allocation10_spill] sm:$0xff] }
 0x5a4   : > { %5926 = vrot.lane.b32.xlu0 %v5925_v50, %s6072_s28  ;;  %5896 = vrot.lane.b32.xlu1 %v5895_v10, %s6073_s29  ;;  %v5016_v50 = vcombine.high %v8909_v34, %v9501_v54  ;;  %v4946_v10 = vcombine.high %v8912_v21, %v9501_v54  ;;  %v4948_v21 = vcombine.high %v8946_v53, %v9501_v54 }
 0x5a6   : > { %v9005_v41 = vpop.permute.xlu0 %5686 }
 0x5a7   : > { %v5689_v54 = vunpack.i.h.bf16 %v9005_v41  ;;  %v5688_v53 = vunpack.i.l.bf16 %v9005_v41 }
 0x5a8   : > { %5931 = vrot.lane.b32.xlu0 %v5930_v17, %s6067_s12  ;;  %5901 = vrot.lane.b32.xlu1 %v5900_v29, %s6072_s28 }
 0x5ac   : > { %5946 = vrot.lane.b32.xlu0 %v5945_v55, %s6067_s12  ;;  %5906 = vrot.lane.b32.xlu1 %v5905_v27, %s6073_s29  ;;  %v9539_v55 = vld [vmem:[#allocation11_spill] sm:$0xff]  ;;  %v9540_v27 = vld [vmem:[#allocation12_spill] sm:$0xff] }
 0x5ae   : > { %v9017_v40 = vpop.permute.xlu1 %5701  ;;  %v9019_v42 = vpop.permute.xlu0 %5691 }
 0x5af   : > { %v5704_v30 = vunpack.i.h.bf16 %v9017_v40  ;;  %v5693_v25 = vunpack.i.l.bf16 %v9019_v42 }
 0x5b0   : > { %5951 = vrot.lane.b32.xlu0 %v5950_v57, %s6068_s14  ;;  %5911 = vrot.lane.b32.xlu1 %v5910_v0, %s6072_s28  ;;  %v5703_v57 = vunpack.i.l.bf16 %v9017_v40  ;;  %v5694_v0 = vunpack.i.h.bf16 %v9019_v42 }
 0x5b2   : > { %v9036_v9 = vpop.permute.xlu1 %5706  ;;  %v9038_v31 = vpop.permute.xlu0 %5696 }
 0x5b3   : > { %v5709_v2 = vunpack.i.h.bf16 %v9036_v9  ;;  %v5708_v40 = vunpack.i.l.bf16 %v9036_v9  ;;  %v5699_v42 = vunpack.i.h.bf16 %v9038_v31  ;;  %v5698_v15 = vunpack.i.l.bf16 %v9038_v31 }
 0x5b4   : > { %5956 = vrot.lane.b32.xlu0 %v5955_v58, %s6068_s14  ;;  %5936 = vrot.lane.b32.xlu1 %v5935_v56, %s6067_s12 }
 0x5b6   : > { %v9057_v6 = vpop.permute.xlu1 %5711  ;;  %v9059_v5 = vpop.permute.xlu0 %5716 }
 0x5b8   : > { %5046 = vrot.lane.b32.xlu0 %v5013_v59, %s6073_s29  ;;  %5941 = vrot.lane.b32.xlu1 %v5940_v20, %s6068_s14 }
 0x5bc   : > { %5054 = vrot.lane.b32.xlu0 %v5014_v37, %s6072_s28  ;;  %5961 = vrot.lane.b32.xlu1 %v5960_v12, %s6068_s14  ;;  %v5714_v37 = vunpack.i.h.bf16 %v9057_v6  ;;  %v5713_v12 = vunpack.i.l.bf16 %v9057_v6  ;;  %v5718_v6 = vunpack.i.l.bf16 %v9059_v5 }
 0x5be   : > { %v9065_v48 = vpop.permute.xlu1 %5721  ;;  %v9067_v19 = vpop.permute.xlu0 %5731 }
 0x5c0   : > { %5062 = vrot.lane.b32.xlu0 %v5015_v36, %s6067_s12  ;;  %5018 = vrot.lane.b32.xlu1 %v4945_v61, %s6073_s29 }
 0x5c2   : > { %v9075_v23 = vpop.permute.xlu1 %5726  ;;  %v9077_v45 = vpop.permute.xlu0 %5736 }
 0x5c4   : > { %5070 = vrot.lane.b32.xlu0 %v5016_v50, %s6068_s14  ;;  %5026 = vrot.lane.b32.xlu1 %v4946_v10, %s6072_s28  ;;  %s240_s28 = scalar_lea.vmem [#allocation5], %s5309_s17  ;;  %s6002_s17 = sshll.u32 %s6081_s22, 4  ;;  %s6003_s17 = int_to_ptr.vmem [resolvable:$false] %s6002_s17 }
 0x5c5   : > { %s5232_s29 = sshll.u32 %s240_s28, 4  ;;  %s6004_s23 = scalar_lea.vmem %s6003_s17, 256  ;;  %s9411_s29 = int_to_ptr.vmem [resolvable:$true] %s5232_s29 }
 0x5c6   : > { %v9088_v32 = vpop.permute.xlu1 %5741  ;;  %v5752_v47 = vpop.permute.xlu0 %5751  ;;  %s5998_s11 = scalar_lea.vmem %s9411_s29, 128  ;;  %p6005_p7 = scmp.lt.s32.totalorder %s9411_s29, %s6003_s17 }
 0x5c7   : > { %v5754_v63 = vunpack.i.h.bf16 %v5752_v47  ;;  %v5753_v52 = vunpack.i.l.bf16 %v5752_v47  ;;  %p5999_p6 = scmp.ne.s32.totalorder %s9411_s29, %s5998_s11  ;;  %p6006_p10 = scmp.lt.s32.totalorder %s6004_s23, %s5998_s11 }
 0x5c8   : > { %5034 = vrot.lane.b32.xlu1 %v4947_v7, %s6067_s12  ;;  %5123 = vperm.xlu0 %5965, %v5120_v22  }
 0x5c9   : > { %v3681_v62 = vsel %vm731_vm5, %v9541_v26, %v5754_v63  ;;  %v3213_v58 = vsel %vm731_vm5, %v9542_v51, %v5753_v52  ;;  %v5729_v63 = vunpack.i.h.bf16 %v9075_v23  ;;  %v5728_v52 = vunpack.i.l.bf16 %v9075_v23  ;;  %p6000_p12 = pnand %p5999_p6, %p9550_p11  ;;  %p6007_p2 = por %p6006_p10, %p6005_p7 }
 0x5ca   : > { %v5757_v34 = vpop.permute.xlu0 %5756  ;;  %v5747_v17 = vpop.permute.xlu1 %5746  ;;  %v3214_v10 = vsel %vm733_vm6, %v3213_v58, %v5693_v25  ;;  %v3682_v9 = vsel %vm733_vm6, %v3681_v62, %v5694_v0  ;;  %v5744_v51 = vunpack.i.h.bf16 %v9088_v32  ;;  %v5743_v58 = vunpack.i.l.bf16 %v9088_v32  ;;  %v9545_v32 = vld [vmem:[#allocation15_spill] sm:$0xff] }
 0x5cb   : > { %v5749_v29 = vunpack.i.h.bf16 %v5747_v17  ;;  %v5748_v35 = vunpack.i.l.bf16 %v5747_v17  ;;  %v5759_v59 = vunpack.i.h.bf16 %v5757_v34  ;;  %v5758_v20 = vunpack.i.l.bf16 %v5757_v34  ;;  %p6001_p13 = pneg %p6000_p12 }
 0x5cc   : > { %5042 = vrot.lane.b32.xlu1 %v4948_v21, %s6068_s14  ;;  %v5719_v34 = vunpack.i.h.bf16 %v9059_v5  ;;  %v5724_v21 = vunpack.i.h.bf16 %v9065_v48  ;;  %v5723_v17 = vunpack.i.l.bf16 %v9065_v48 }
 0x5cd   : > { %v3919_v46 = vsel %vm731_vm5, %v9539_v55, %v5749_v29  ;;  %v3451_v33 = vsel %vm731_vm5, %v9540_v27, %v5748_v35  ;;  %v5734_v35 = vunpack.i.h.bf16 %v9067_v19  ;;  %p6008_p4 = pnand %p6007_p2, %p6001_p13 }
 0x5ce   : > { %v9096_v13 = vpop.permute.xlu0 %5771  ;;  %v5762_v38 = vpop.permute.xlu1 %5761  ;;  %v3452_v56 = vsel %vm733_vm6, %v3451_v33, %v5688_v53  ;;  %v3920_v11 = vsel %vm733_vm6, %v3919_v46, %v5689_v54 }
 0x5cf   : > { %v5764_v41 = vunpack.i.h.bf16 %v5762_v38  ;;  %v5763_v43 = vunpack.i.l.bf16 %v5762_v38  ;;  %v3453_v61 = vsel %vm735_vm7, %v3452_v56, %v5758_v20  ;;  %v3921_v50 = vsel %vm735_vm7, %v3920_v11, %v5759_v59 }
 0x5d0   : > { %v5733_v38 = vunpack.i.l.bf16 %v9067_v19  ;;  %v3454_v5 = vsel %vm737_vm8, %v3453_v61, %v5698_v15  ;;  %v3922_v33 = vsel %vm737_vm8, %v3921_v50, %v5699_v42  ;;  %v5774_v19 = vunpack.i.h.bf16 %v9096_v13  ;;  %v9544_v42 = vld [vmem:[#allocation13_spill] sm:$0xff]  ;;  %v9546_v50 = vld [vmem:[#allocation16_spill] sm:$0xff] }
 0x5d1   : > { %v3215_v22 = vsel %vm735_vm7, %v3214_v10, %v5763_v43  ;;  %v3683_v47 = vsel %vm735_vm7, %v3682_v9, %v5764_v41  ;;  %v5773_v0 = vunpack.i.l.bf16 %v9096_v13 }
 0x5d2   : > { %v9102_v39 = vpop.permute.xlu0 %5776  ;;  %v5767_v24 = vpop.permute.xlu1 %5766  ;;  %v3216_v46 = vsel %vm737_vm8, %v3215_v22, %v5703_v57  ;;  %v3684_v27 = vsel %vm737_vm8, %v3683_v47, %v5704_v30  ;;  %v5739_v30 = vunpack.i.h.bf16 %v9077_v45  ;;  %v5738_v57 = vunpack.i.l.bf16 %v9077_v45 }
 0x5d3   : > { %v5769_v7 = vunpack.i.h.bf16 %v5767_v24  ;;  %v5768_v31 = vunpack.i.l.bf16 %v5767_v24  ;;  %v3217_v11 = vsel %vm739_vm9, %v3216_v46, %v5773_v0  ;;  %v3685_v41 = vsel %vm739_vm9, %v3684_v27, %v5774_v19 }
 0x5d4   : > { %v5779_v59 = vunpack.i.h.bf16 %v9102_v39  ;;  %v5778_v20 = vunpack.i.l.bf16 %v9102_v39 }
 0x5d5   : > { %v3455_v48 = vsel %vm739_vm9, %v3454_v5, %v5768_v31  ;;  %v3923_v54 = vsel %vm739_vm9, %v3922_v33, %v5769_v7  ;;  %v3218_v7 = vsel %vm741_vm10, %v3217_v11, %v5713_v12  ;;  %v3686_v31 = vsel %vm741_vm10, %v3685_v41, %v5714_v37 }
 0x5d6   : > { %v5787_v14 = vpop.permute.xlu0 %5786  ;;  %v9122_v36 = vpop.permute.xlu1 %5781  ;;  %v3456_v43 = vsel %vm741_vm10, %v3455_v48, %v5708_v40  ;;  %v3924_v13 = vsel %vm741_vm10, %v3923_v54, %v5709_v2 }
 0x5d7   : > { %v5789_v53 = vunpack.i.h.bf16 %v5787_v14  ;;  %v5788_v24 = vunpack.i.l.bf16 %v5787_v14  ;;  %v9543_v14 = vld [vmem:[#allocation14_spill] sm:$0xff]  ;;  %v3457_v2 = vsel %vm743_vm11, %v3456_v43, %v5778_v20  ;;  %v3925_v47 = vsel %vm743_vm11, %v3924_v13, %v5779_v59 }
 0x5d8   : > { %v5783_v46 = vunpack.i.l.bf16 %v9122_v36 }
 0x5d9   : > { %v3926_v45 = vsel %vm731_vm5, %v9543_v14, %v5789_v53  ;;  %v3458_v15 = vsel %vm731_vm5, %v9544_v42, %v5788_v24 }
 0x5da   : > { %v9134_v29 = vpop.permute.xlu0 %5811  ;;  %v5792_v55 = vpop.permute.xlu1 %5791  ;;  %v3459_v33 = vsel %vm733_vm6, %v3458_v15, %v5718_v6  ;;  %v3927_v48 = vsel %vm733_vm6, %v3926_v45, %v5719_v34 }
 0x5db   : > { %v5794_v25 = vunpack.i.h.bf16 %v5792_v55  ;;  %v5793_v26 = vunpack.i.l.bf16 %v5792_v55  ;;  %v5784_v55 = vunpack.i.h.bf16 %v9122_v36  ;;  %v5814_v36 = vunpack.i.h.bf16 %v9134_v29 }
 0x5dc   : > { %v5813_v6 = vunpack.i.l.bf16 %v9134_v29 }
 0x5dd   : > { %v3688_v61 = vsel %vm731_vm5, %v9545_v32, %v5794_v25  ;;  %v3220_v10 = vsel %vm731_vm5, %v9546_v50, %v5793_v26  ;;  %v5095_v26 = vrot.slane %v3925_v47, 4  ;;  %v3687_v45 = vsel %vm743_vm11, %v3686_v31, %v5784_v55 }
 0x5de   : > { %v9148_v62 = vpop.permute.xlu0 %5816  ;;  %v5797_v56 = vpop.permute.xlu1 %5796  ;;  %v3221_v54 = vsel %vm733_vm6, %v3220_v10, %v5723_v17  ;;  %v3689_v53 = vsel %vm733_vm6, %v3688_v61, %v5724_v21  ;;  %v5089_v21 = vrot.slane %v3457_v2, 4 }
 0x5df   : > { %v5799_v9 = vunpack.i.h.bf16 %v5797_v56  ;;  %v5798_v40 = vunpack.i.l.bf16 %v5797_v56  ;;  %v5819_v29 = vunpack.i.h.bf16 %v9148_v62  ;;  %v5113_v47 = vsel %vm2638_vm12, %v3687_v45, %v5095_v26 }
 0x5e1   : > { %v3460_v24 = vsel %vm735_vm7, %v3459_v33, %v5798_v40  ;;  %v3928_v12 = vsel %vm735_vm7, %v3927_v48, %v5799_v9 }
 0x5e2   : > { %v5822_v22 = vpop.permute.xlu0 %5821  ;;  %v5802_v39 = vpop.permute.xlu1 %5801  ;;  %v3461_v41 = vsel %vm737_vm8, %v3460_v24, %v5728_v52  ;;  %v3929_v43 = vsel %vm737_vm8, %v3928_v12, %v5729_v63  ;;  %v3219_v63 = vsel %vm743_vm11, %v3218_v7, %v5783_v46 }
 0x5e3   : > { %v5804_v27 = vunpack.i.h.bf16 %v5802_v39  ;;  %v5803_v5 = vunpack.i.l.bf16 %v5802_v39  ;;  %v5824_v61 = vunpack.i.h.bf16 %v5822_v22  ;;  %v5823_v50 = vunpack.i.l.bf16 %v5822_v22 }
 0x5e5   : > { %v3222_v37 = vsel %vm735_vm7, %v3221_v54, %v5803_v5  ;;  %v3690_v19 = vsel %vm735_vm7, %v3689_v53, %v5804_v27 }
 0x5e6   : > { %v9182_v0 = vpop.permute.xlu0 %5826  ;;  %v3223_v34 = vsel %vm737_vm8, %v3222_v37, %v5733_v38  ;;  %v3691_v17 = vsel %vm737_vm8, %v3690_v19, %v5734_v35  ;;  %v5807_v25 = vpop.permute.xlu1 %5806  ;;  %v5818_v38 = vunpack.i.l.bf16 %v9148_v62 }
 0x5e7   : > { %v5809_v56 = vunpack.i.h.bf16 %v5807_v25  ;;  %v5808_v11 = vunpack.i.l.bf16 %v5807_v25  ;;  %v3224_v13 = vsel %vm739_vm9, %v3223_v34, %v5813_v6  ;;  %v3692_v59 = vsel %vm739_vm9, %v3691_v17, %v5814_v36 }
 0x5e8   : > { %v3225_v42 = vsel %vm741_vm10, %v3224_v13, %v5743_v58  ;;  %v3693_v62 = vsel %vm741_vm10, %v3692_v59, %v5744_v51  ;;  %v5111_v58 = vsel %vm2638_vm12, %v3219_v63, %v5089_v21  ;;  %v5829_v21 = vunpack.i.h.bf16 %v9182_v0 }
 0x5e9   : > { %v3462_v35 = vsel %vm739_vm9, %v3461_v41, %v5808_v11  ;;  %v3930_v20 = vsel %vm739_vm9, %v3929_v43, %v5809_v56  ;;  %v3694_v2 = vsel %vm743_vm11, %v3693_v62, %v5824_v61  ;;  %v5338_v55 = vpack.c.bf16 %v5113_v47, %v5111_v58 }
 0x5ea   : > { %v9198_v14 = vpop.permute.xlu0 %5831  ;;  %v3463_v52 = vsel %vm741_vm10, %v3462_v35, %v5738_v57  ;;  %v3931_v23 = vsel %vm741_vm10, %v3930_v20, %v5739_v30  ;;  %v3226_v30 = vsel %vm743_vm11, %v3225_v42, %v5823_v50  ;;  %v5828_v26 = vunpack.i.l.bf16 %v9182_v0 }
 0x5eb   : > { %v3464_v15 = vsel %vm743_vm11, %v3463_v52, %v5818_v38  ;;  %v3932_v32 = vsel %vm743_vm11, %v3931_v23, %v5819_v29  ;;  %v5834_v56 = vunpack.i.h.bf16 %v9198_v14  ;;  %v5833_v11 = vunpack.i.l.bf16 %v9198_v14 }
 0x5ec   : > { %v5090_v10 = vrot.slane %v3464_v15, 4  ;;  %v5096_v9 = vrot.slane %v3932_v32, 4 }
 0x5ee   : > { %v9208_v40 = vpop.permute.xlu1 %5846  ;;  %v9210_v57 = vpop.permute.xlu0 %5836  ;;  %v5112_v51 = vsel %vm2638_vm12, %v3226_v30, %v5090_v10  ;;  %v5114_v39 = vsel %vm2638_vm12, %v3694_v2, %v5096_v9 }
 0x5ef   : > { %v5336_v7 = vpack.c.bf16 %v5114_v39, %v5112_v51  ;;  %v5849_v41 = vunpack.i.h.bf16 %v9208_v40  ;;  %v5848_v43 = vunpack.i.l.bf16 %v9208_v40  ;;  %v5839_v13 = vunpack.i.h.bf16 %v9210_v57 }
 0x5f0   : > { %v5838_v59 = vunpack.i.l.bf16 %v9210_v57 }
 0x5f1   : > { %5337 = vmatprep.subr.bf16.mxu1 %v5336_v7 }
 0x5f2   : > { %v9218_v22 = vpop.permute.xlu1 %5851  ;;  %v9220_v31 = vpop.permute.xlu0 %5841  ;;  %5339 = vmatpush1.bf16.msra.mxu1 %v5338_v55 }
 0x5f3   : > { %v5854_v29 = vunpack.i.h.bf16 %v9218_v22  ;;  %v5853_v20 = vunpack.i.l.bf16 %v9218_v22  ;;  %v5844_v0 = vunpack.i.h.bf16 %v9220_v31  ;;  %v5843_v52 = vunpack.i.l.bf16 %v9220_v31 }
 0x5f6   : > { %v9222_v46 = vpop.permute.xlu1 %5856  ;;  %v9224_v27 = vpop.permute.xlu0 %5866 }
 0x5f7   : > { %v5859_v45 = vunpack.i.h.bf16 %v9222_v46  ;;  %v5858_v42 = vunpack.i.l.bf16 %v9222_v46  ;;  %v5869_v32 = vunpack.i.h.bf16 %v9224_v27  ;;  %v5868_v61 = vunpack.i.l.bf16 %v9224_v27 }
 0x5fa   : > { %v9226_v5 = vpop.permute.xlu1 %5861  ;;  %v9228_v33 = vpop.permute.xlu0 %5871 }
 0x5fb   : > { %v5864_v50 = vunpack.i.h.bf16 %v9226_v5  ;;  %v5863_v10 = vunpack.i.l.bf16 %v9226_v5  ;;  %v5874_v9 = vunpack.i.h.bf16 %v9228_v33  ;;  %v5873_v58 = vunpack.i.l.bf16 %v9228_v33 }
 0x5fe   : > { %v9230_v48 = vpop.permute.xlu1 %5876  ;;  %v9232_v54 = vpop.permute.xlu0 %5050 }
 0x602   : > { %v9234_v53 = vpop.permute.xlu1 %5881  ;;  %v9236_v24 = vpop.permute.xlu0 %5058 }
 0x606   : > { %v9238_v12 = vpop.permute.xlu1 %5022  ;;  %v9240_v37 = vpop.permute.xlu0 %5066 }
 0x60a   : > { %v9242_v19 = vpop.permute.xlu1 %5030  ;;  %v5887_v36 = vpop.permute.xlu0 %5886 }
 0x60b   : > { %v5889_v38 = vunpack.i.h.bf16 %v5887_v36  ;;  %v5888_v35 = vunpack.i.l.bf16 %v5887_v36 }
 0x60d   : > { %v4850_v57 = vsel %vm731_vm5, %v8887_v18, %v5889_v38  ;;  %v4386_v30 = vsel %vm731_vm5, %v8898_v3, %v5888_v35 }
 0x60e   : > { %v9244_v6 = vpop.permute.xlu1 %5038  ;;  %v9246_v34 = vpop.permute.xlu0 %5916  ;;  %v4387_v38 = vsel %vm733_vm6, %v4386_v30, %v5828_v26  ;;  %v4851_v35 = vsel %vm733_vm6, %v4850_v57, %v5829_v21 }
 0x612   : > { %v5892_v17 = vpop.permute.xlu1 %5891  ;;  %v9248_v25 = vpop.permute.xlu0 %5921 }
 0x613   : > { %v5894_v23 = vunpack.i.h.bf16 %v5892_v17  ;;  %v5893_v15 = vunpack.i.l.bf16 %v5892_v17  ;;  %v5883_v17 = vunpack.i.l.bf16 %v9234_v53 }
 0x615   : > { %v4843_v39 = vsel %vm731_vm5, %v8923_v28, %v5894_v23  ;;  %v4379_v55 = vsel %vm731_vm5, %v8933_v8, %v5893_v15  ;;  %v5919_v28 = vunpack.i.h.bf16 %v9246_v34  ;;  %v5918_v23 = vunpack.i.l.bf16 %v9246_v34 }
 0x616   : > { %v5897_v14 = vpop.permute.xlu1 %5896  ;;  %v5927_v63 = vpop.permute.xlu0 %5926  ;;  %v4380_v47 = vsel %vm733_vm6, %v4379_v55, %v5833_v11  ;;  %v4844_v26 = vsel %vm733_vm6, %v4843_v39, %v5834_v56 }
 0x617   : > { %v5898_v62 = vunpack.i.l.bf16 %v5897_v14  ;;  %v5899_v2 = vunpack.i.h.bf16 %v5897_v14  ;;  %v5924_v14 = vunpack.i.h.bf16 %v9248_v25  ;;  %v5929_v51 = vunpack.i.h.bf16 %v5927_v63 }
 0x619   : > { %v4156_v18 = vsel %vm731_vm5, %v8943_v16, %v5898_v62  ;;  %v4620_v8 = vsel %vm731_vm5, %v8961_v4, %v5899_v2  ;;  %v5923_v16 = vunpack.i.l.bf16 %v9248_v25  ;;  %v5928_v4 = vunpack.i.l.bf16 %v5927_v63 }
 0x61a   : > { %v5902_v7 = vpop.permute.xlu1 %5901  ;;  %v5932_v31 = vpop.permute.xlu0 %5931  ;;  %v4157_v15 = vsel %vm733_vm6, %v4156_v18, %v5838_v59  ;;  %v4621_v36 = vsel %vm733_vm6, %v4620_v8, %v5839_v13 }
 0x61b   : > { %v5904_v27 = vunpack.i.h.bf16 %v5902_v7  ;;  %v5903_v3 = vunpack.i.l.bf16 %v5902_v7  ;;  %v5934_v2 = vunpack.i.h.bf16 %v5932_v31  ;;  %v5933_v25 = vunpack.i.l.bf16 %v5932_v31 }
 0x61c   : > { %v4158_v56 = vsel %vm735_vm7, %v4157_v15, %v5918_v23 }
 0x61d   : > { %v4388_v21 = vsel %vm735_vm7, %v4387_v38, %v5903_v3  ;;  %v4852_v57 = vsel %vm735_vm7, %v4851_v35, %v5904_v27  ;;  %v4622_v35 = vsel %vm735_vm7, %v4621_v36, %v5919_v28 }
 0x61e   : > { %v5907_v62 = vpop.permute.xlu1 %5906  ;;  %v5947_v7 = vpop.permute.xlu0 %5946  ;;  %v4389_v39 = vsel %vm737_vm8, %v4388_v21, %v5843_v52  ;;  %v4853_v55 = vsel %vm737_vm8, %v4852_v57, %v5844_v0  ;;  %v4623_v22 = vsel %vm737_vm8, %v4622_v35, %v5859_v45 }
 0x61f   : > { %v5909_v34 = vunpack.i.h.bf16 %v5907_v62  ;;  %v5908_v30 = vunpack.i.l.bf16 %v5907_v62  ;;  %v5949_v38 = vunpack.i.h.bf16 %v5947_v7  ;;  %v5948_v52 = vunpack.i.l.bf16 %v5947_v7 }
 0x620   : > { %v4390_v23 = vsel %vm739_vm9, %v4389_v39, %v5923_v16 }
 0x621   : > { %v4613_v59 = vsel %vm731_vm5, %v8991_v49, %v5909_v34  ;;  %v4149_v11 = vsel %vm731_vm5, %v8980_v60, %v5908_v30 }
 0x622   : > { %v4614_v13 = vsel %vm733_vm6, %v4613_v59, %v5849_v41  ;;  %v4150_v63 = vsel %vm733_vm6, %v4149_v11, %v5848_v43  ;;  %v5912_v31 = vpop.permute.xlu1 %5911  ;;  %v5952_v18 = vpop.permute.xlu0 %5951 }
 0x623   : > { %v4151_v49 = vsel %vm735_vm7, %v4150_v63, %v5928_v4  ;;  %v4615_v60 = vsel %vm735_vm7, %v4614_v13, %v5929_v51  ;;  %v5914_v27 = vunpack.i.h.bf16 %v5912_v31  ;;  %v5913_v3 = vunpack.i.l.bf16 %v5912_v31 }
 0x624   : > { %v4152_v0 = vsel %vm737_vm8, %v4151_v49, %v5868_v61  ;;  %v4616_v41 = vsel %vm737_vm8, %v4615_v60, %v5869_v32  ;;  %v4854_v32 = vsel %vm739_vm9, %v4853_v55, %v5924_v14  ;;  %v5954_v14 = vunpack.i.h.bf16 %v5952_v18 }
 0x625   : > { %v4381_v40 = vsel %vm735_vm7, %v4380_v47, %v5913_v3  ;;  %v4845_v43 = vsel %vm735_vm7, %v4844_v26, %v5914_v27  ;;  %v4153_v8 = vsel %vm739_vm9, %v4152_v0, %v5948_v52  ;;  %v4617_v7 = vsel %vm739_vm9, %v4616_v41, %v5949_v38 }
 0x626   : > { %v4382_v51 = vsel %vm737_vm8, %v4381_v40, %v5853_v20  ;;  %v4846_v61 = vsel %vm737_vm8, %v4845_v43, %v5854_v29  ;;  %v5937_v15 = vpop.permute.xlu1 %5936  ;;  %v5957_v36 = vpop.permute.xlu0 %5956  ;;  %v4159_v20 = vsel %vm737_vm8, %v4158_v56, %v5858_v42  ;;  %v4391_v29 = vsel %vm741_vm10, %v4390_v23, %v5863_v10 }
 0x627   : > { %v4383_v47 = vsel %vm739_vm9, %v4382_v51, %v5933_v25  ;;  %v4847_v28 = vsel %vm739_vm9, %v4846_v61, %v5934_v2  ;;  %v5939_v62 = vunpack.i.h.bf16 %v5937_v15  ;;  %v5938_v16 = vunpack.i.l.bf16 %v5937_v15 }
 0x628   : > { %v4855_v57 = vsel %vm741_vm10, %v4854_v32, %v5864_v50  ;;  %v5953_v34 = vunpack.i.l.bf16 %v5952_v18  ;;  %v4384_v46 = vsel %vm741_vm10, %v4383_v47, %v5873_v58  ;;  %v4848_v45 = vsel %vm741_vm10, %v4847_v28, %v5874_v9 }
 0x629   : > { %v4160_v26 = vsel %vm739_vm9, %v4159_v20, %v5938_v16  ;;  %v4624_v21 = vsel %vm739_vm9, %v4623_v22, %v5939_v62  ;;  %v4154_v30 = vsel %vm741_vm10, %v4153_v8, %v5883_v17  ;;  %v9547_v4 = vunpack.i.l.bf16 %v9230_v48 }
 0x62a   : > { %v5942_v42 = vpop.permute.xlu1 %5941  ;;  %v5047_v10 = vpop.permute.xlu0 %5046  ;;  %v9548_v25 = vunpack.i.h.bf16 %v9234_v53  ;;  %v5959_v59 = vunpack.i.h.bf16 %v5957_v36  ;;  %v5958_v33 = vunpack.i.l.bf16 %v5957_v36  ;;  %v9549_v9 = vunpack.i.h.bf16 %v9230_v48 }
 0x62b   : > { %v4161_v5 = vsel %vm741_vm10, %v4160_v26, %v9547_v4  ;;  %v5944_v50 = vunpack.i.h.bf16 %v5942_v42  ;;  %v5943_v2 = vunpack.i.l.bf16 %v5942_v42  ;;  %v5080_v56 = vsel %vm731_vm5, %v9032_v44, %v5047_v10 }
 0x62c   : > { %v4618_v58 = vsel %vm741_vm10, %v4617_v7, %v9548_v25  ;;  %v4625_v11 = vsel %vm741_vm10, %v4624_v21, %v9549_v9  ;;  %v4385_v17 = vsel %vm743_vm11, %v4384_v46, %v5953_v34  ;;  %v4849_v39 = vsel %vm743_vm11, %v4848_v45, %v5954_v14  ;;  %v5967_v21 = vld [vmem:[%s6223_s15] sm:$0xff]  ;;  %s5218_s15 = scalar_lea.sflag [#allocation4], %s6217_s13 }
 0x62d   : > { %v4392_v55 = vsel %vm743_vm11, %v4391_v29, %v5943_v2  ;;  %v4856_v13 = vsel %vm743_vm11, %v4855_v57, %v5944_v50  ;;  %v4162_v53 = vsel %vm743_vm11, %v4161_v5, %v5958_v33  ;;  %v5081_v48 = vsel %vm733_vm6, %v5080_v56, %v9232_v54 }
 0x62e   : > { %v5102_v63 = vrot.slane %v4392_v55, 4  ;;  %v5108_v31 = vrot.slane %v4856_v13, 4  ;;  %v5962_v18 = vpop.permute.xlu1 %5961  ;;  %v5055_v49 = vpop.permute.xlu0 %5054  ;;  %v4626_v60 = vsel %vm743_vm11, %v4625_v11, %v5959_v59  ;;  %v5101_v38 = vrot.slane %v4385_v17, 4 }
 0x62f   : > { %v5964_v44 = vunpack.i.h.bf16 %v5962_v18  ;;  %v5963_v27 = vunpack.i.l.bf16 %v5962_v18  ;;  %v5082_v3 = vsel %vm735_vm7, %v5081_v48, %v5055_v49  ;;  %v5107_v52 = vrot.slane %v4849_v39, 4 }
 0x630   : > { %v5116_v0 = vsel %vm2638_vm12, %v4162_v53, %v5102_v63  ;;  %v5118_v35 = vsel %vm2638_vm12, %v4626_v60, %v5108_v31  ;;  %v5083_v54 = vsel %vm737_vm8, %v5082_v3, %v9236_v24  ;;  %v5206_v57 = vcombine.high %v5967_v21, %v5967_v21 }
 0x631   : > { %v4155_v41 = vsel %vm743_vm11, %v4154_v30, %v5963_v27  ;;  %v4619_v40 = vsel %vm743_vm11, %v4618_v58, %v5964_v44  ;;  %v5340_v43 = vpack.c.bf16 %v5118_v35, %v5116_v0 }
 0x632   : > { %v5019_v23 = vpop.permute.xlu1 %5018  ;;  %v5063_v8 = vpop.permute.xlu0 %5062  ;;  %v5115_v51 = vsel %vm2638_vm12, %v4155_v41, %v5101_v38  ;;  %v5117_v61 = vsel %vm2638_vm12, %v4619_v40, %v5107_v52 }
 0x633   : > { %v5073_v15 = vsel %vm731_vm5, %v9055_v1, %v5019_v23  ;;  %v5084_v36 = vsel %vm739_vm9, %v5083_v54, %v5063_v8  ;;  %5341 = vmatprep.subr.bf16.mxu1 %v5340_v43  ;;  %v5342_v32 = vpack.c.bf16 %v5117_v61, %v5115_v51 }
 0x634   : > { %v5074_v47 = vsel %vm733_vm6, %v5073_v15, %v9238_v12  ;;  %v5085_v24 = vsel %vm741_vm10, %v5084_v36, %v9240_v37  ;;  %v5119_v37 = vld [vmem:[%s9456_s3] sm:$0xf] }
 0x635   : > { %5343 = vmatpush1.bf16.msra.mxu1 %v5342_v32 }
 0x636   : > { %v5027_v28 = vpop.permute.xlu1 %5026  ;;  %v5071_v62 = vpop.permute.xlu0 %5070 }
 0x637   : > { %v5075_v16 = vsel %vm735_vm7, %v5074_v47, %v5027_v28  ;;  %v5086_v7 = vsel %vm743_vm11, %v5085_v24, %v5071_v62 }
 0x638   : > { %5318 = vmatprep.subr.msk.mxu1 %vm2638_vm12, %v5086_v7  ;;  %v5076_v1 = vsel %vm737_vm8, %v5075_v16, %v9242_v19 }
 0x63a   : > { %v5035_v20 = vpop.permute.xlu1 %5034 }
 0x63b   : > { %v5077_v22 = vsel %vm739_vm9, %v5076_v1, %v5035_v20 }
 0x63c   : > { %v5078_v12 = vsel %vm741_vm10, %v5077_v22, %v9244_v6 }
 0x63e   : > { %v5043_v29 = vpop.permute.xlu1 %5042 }
 0x63f   : > { %v5079_v14 = vsel %vm743_vm11, %v5078_v12, %v5043_v29 }
 0x640   : > { %5319 = vmatpush1.msk.msra.mxu1 %vm2638_vm12, %v5079_v14 }
 0x641   : > { %5320 = vmatmul.mubr.msk.f32.vlgmr.msra.gmra.mrb[0].mxu1 %vm2654_vm13, %v5119_v37 }
 0x647   : > { %v5124_v19 = vpop.permute.xlu0 %5123 }
 0x714   : > { %v5201_v26 = vpop.f32.mrb[0].mxu1 }
 0x715   : > { %v5202_v34 = vadd.f32 %v5201_v26, %v5124_v19  ;;  %v5203_v6 = vpop.f32.mrb[1].mxu1 }
 0x716   : > { %v5204_v46 = vadd.f32 %v5203_v6, %v5124_v19 }
 0x717   : > { %v5208_v45 = vadd.f32 %v5967_v21, %v5202_v34 }
 0x718   : > { %v5209_v42 = vadd.f32 %v5206_v57, %v5204_v46 }
 0x719   : > { %v5210_v10 = vmax.f32 %v5208_v45, 0.0 }
 0x71a   : > { %v5211_v30 = vmax.f32 %v5209_v42, 0.0 }
 0x71c   : > { %v5214_v4 = vcombine.low %v5210_v10, %v5211_v30 }
 0x71e   : > { %5216 = vst [vmem:[%s240_s28] sm:$0xff] %v5214_v4 }
 0x71f   : > { %6011 = shalt.err (!%p6008_p4)
}
 0x720   : > { %s6012_s13 = scalar_lea.hbm %s9409_s9, 128  ;;  %s6016_s25 = scalar_lea.hbm %s9458_s5, 256 }
 0x721   : > { %p6013_p5 = scmp.ne.s32.totalorder %s9409_s9, %s6012_s13  ;;  %p6017_p0 = scmp.lt.u32.totalorder %s9409_s9, %s9458_s5 }
 0x722   : > { %p6018_p1 = scmp.lt.u32.totalorder %s6016_s25, %s6012_s13  ;;  %p6020_p6 = scmp.lt.u32.totalorder %s6012_s13, %s9409_s9 }
 0x723   : > { %p6014_p8 = pnand %p6013_p5, %p9550_p11 }
 0x724   : > { %p6019_p3 = por %p6018_p1, %p6017_p0 }
 0x725   : > { %p6015_p9 = pneg %p6014_p8 }
 0x726   : > { %p6021_p12 = por %p6020_p6, %p6019_p3 }
 0x728   : > { %p6022_p13 = pnand %p6021_p12, %p6015_p9 }
 0x72a   : > { %6025 = shalt.err (!%p6022_p13)
}
 0x72b   : > { %5346 = dma.vmem_to_hbm [thread:$0]  (%p9550_p11), %s9411_s29, 128, %s9409_s9, %s5218_s15  }
 0x72c PF: > { %s5244_s26 = sand.u32 1, %s6052_s18   ;;  %p9551_p7 = scmp.ne.s32.totalorder %s9482_s6, 0 }
 0x72d   : > { %p9552_p10 = scmp.ge.s32.totalorder %s6064_s21, 2  ;;  %s5245_s28 = scalar_lea.sflag [#allocation4], %s5244_s26 }
 0x72f   : > { %p5353_p2 = pnand %p9552_p10, %p9551_p7 }
 0x731   : > { %6047 = dma.done.wait (!%p5353_p2), %s5245_s28, 128  }
 0x732   : > { %6049 = vsyncadd (!%p5353_p2), %s5245_s28, 4294967168  ;;  %p18_p4 = scmp.ge.s32.totalorder %s6137_s24, 4   ;;  %s9553_s18 = smov %s6056_s19 }
 0x733   : > { %s9554_s19 = smov %s6060_s20  ;;  %s9555_s20 = smov %s6149_s27 }
 0x734   : > { %s9556_s21 = smov %s6137_s24  ;;  %20 = sbr.rel (!%p18_p4) target bundleno = 5 (0x5), region = 85 }
 0x73b   :  { %5250 = vsyncpa [#allocation3], 1 }
 0x73c   :  { %5252 = vsyncpa [#allocation3 + $0x1], 1 }
 0x73d   :  { %5253 = vsyncpa [#allocation4], 1 }
 0x73e   :  { %5255 = vsyncpa [#allocation4 + $0x1], 1 }

</bundles_post_ra>
